<compile_context>
chip_gen: v7x
topology: tpu7x:2x2x1
jax: 0.10.0
libtpu: 0.0.40
codegen_flags: <defaults>
</compile_context>

<pallas_src>
import functools

import jax
import jax.numpy as jnp
from jax.experimental import pallas as pl
from jax.experimental.pallas import tpu as pltpu

BN_EPS = 1e-5
LANE = 128


def _round_up(x, m):
    return (x + m - 1) // m * m


# ----------------------------- Pallas kernel ------------------------------- #
def _double_conv_kernel(xf_ref, w1_ref, b1_ref, w2_ref, b2_ref, mask_ref,
                        o_ref, mid_ref, *, wp):
    # xf_ref:   (1, P, Cin_p)     zero-padded input, flattened (H+2)*(W+2) rows
    # w1_ref:   (9, Cin_p, Cm_p)  conv1 weight (BN1 scale folded), tap-major
    # b1_ref:   (1, Cm_p)         folded BN1 bias
    # w2_ref:   (9, Cm_p, Co_p)   conv2 weight (BN2 scale folded)
    # b2_ref:   (1, Co_p)         folded BN2 bias
    # mask_ref: (HW2, 1)          1.0 where the "wide" row is a valid column
    # o_ref:    (1, HW2, Co_p)    wide output rows (H*(W+2)); wrapper trims
    # mid_ref:  (P, Cm_p)         VMEM scratch: conv1 output re-padded w/ halo
    # wp = W + 2 (padded width, static)
    hw2 = o_ref.shape[1]
    cm = w1_ref.shape[2]
    co = w2_ref.shape[2]
    taps = [(dy, dx) for dy in range(3) for dx in range(3)]

    # ---- conv1 + BN1 + ReLU: 9 accumulated matmuls over contiguous taps ----
    acc = jnp.zeros((hw2, cm), jnp.float32)
    for t, (dy, dx) in enumerate(taps):
        off = dy * wp + dx
        acc = acc + jnp.dot(xf_ref[0, pl.ds(off, hw2), :], w1_ref[t],
                            preferred_element_type=jnp.float32)
    # Zero the 2 wrap columns so they act as conv2's zero padding.
    y1 = jnp.maximum(acc + b1_ref[...], 0.0) * mask_ref[...]

    # Re-pad conv1's activation with a zero halo entirely inside VMEM.
    mid_ref[...] = jnp.zeros_like(mid_ref)
    mid_ref[pl.ds(wp + 1, hw2), :] = y1

    # ---- conv2 + BN2 + ReLU ----
    acc = jnp.zeros((hw2, co), jnp.float32)
    for t, (dy, dx) in enumerate(taps):
        off = dy * wp + dx
        acc = acc + jnp.dot(mid_ref[pl.ds(off, hw2), :], w2_ref[t],
                            preferred_element_type=jnp.float32)
    o_ref[0] = jnp.maximum(acc + b2_ref[...], 0.0).astype(o_ref.dtype)


# ------------------------------- JAX glue ----------------------------------- #
def _fold_bn_into_weight(w_hwio, bn, cin_p, cout_p):
    inv_std = 1.0 / jnp.sqrt(bn["var"] + BN_EPS)
    scale = bn["gamma"] * inv_std                   # (cout,)
    bias = bn["beta"] - bn["mean"] * scale          # (cout,)
    kh, kw, cin, cout = w_hwio.shape
    w = (w_hwio * scale).astype(jnp.float32)        # fold BN scale into weight
    w = jnp.pad(w, ((0, 0), (0, 0), (0, cin_p - cin), (0, cout_p - cout)))
    w = w.reshape(kh * kw, cin_p, cout_p)
    b = jnp.pad(bias, (0, cout_p - cout)).reshape(1, cout_p).astype(jnp.float32)
    return w, b


def double_conv(x_nchw, params):
    x = jnp.transpose(x_nchw, (0, 2, 3, 1)).astype(jnp.float32)   # NCHW -> NHWC
    n, h, w, cin = x.shape
    cout = params["w1"].shape[-1]

    cin_p = _round_up(cin, LANE)
    cmid_p = _round_up(cout, LANE)
    cout_p = _round_up(cout, LANE)

    wp = w + 2                                   # padded width
    hw2 = h * wp                                 # "wide" output rows per image
    p_rows = _round_up((h + 2) * wp + 2, 8)      # flat padded rows (+2 overrun)

    # Zero-pad spatially (1-px halo) and on channels (lane alignment); flatten.
    xpad = jnp.pad(x, ((0, 0), (1, 1), (1, 1), (0, cin_p - cin)))
    xf = xpad.reshape(n, (h + 2) * wp, cin_p)
    xf = jnp.pad(xf, ((0, 0), (0, p_rows - (h + 2) * wp), (0, 0)))

    w1, b1 = _fold_bn_into_weight(params["w1"], params["bn1"], cin_p, cmid_p)
    w2, b2 = _fold_bn_into_weight(params["w2"], params["bn2"], cmid_p, cout_p)

    # 1.0 for wide-row columns x < W (valid), 0.0 for the 2 wrap columns.
    mask = (jnp.arange(hw2) % wp < w).astype(jnp.float32).reshape(hw2, 1)

    kernel = functools.partial(_double_conv_kernel, wp=wp)
    out_wide = pl.pallas_call(
        kernel,
        out_shape=jax.ShapeDtypeStruct((n, hw2, cout_p), jnp.float32),
        grid_spec=pltpu.PrefetchScalarGridSpec(
            num_scalar_prefetch=0,
            grid=(n,),
            in_specs=[
                pl.BlockSpec((1, p_rows, cin_p), lambda i: (i, 0, 0)),
                pl.BlockSpec((9, cin_p, cmid_p), lambda i: (0, 0, 0)),
                pl.BlockSpec((1, cmid_p), lambda i: (0, 0)),
                pl.BlockSpec((9, cmid_p, cout_p), lambda i: (0, 0, 0)),
                pl.BlockSpec((1, cout_p), lambda i: (0, 0)),
                pl.BlockSpec((hw2, 1), lambda i: (0, 0)),
            ],
            out_specs=pl.BlockSpec((1, hw2, cout_p), lambda i: (i, 0, 0)),
            scratch_shapes=[pltpu.VMEM((p_rows, cmid_p), jnp.float32)],
        ),
        compiler_params=pltpu.CompilerParams(
            dimension_semantics=("parallel",),
            vmem_limit_bytes=64 * 1024 * 1024,
        ),
    )(xf, w1, b1, w2, b2, mask)

    # Trim the 2 wrap columns + channel padding; back to NCHW.
    out = out_wide.reshape(n, h, wp, cout_p)[:, :, :w, :cout]
    return jnp.transpose(out, (0, 3, 1, 2))


def init_double_conv_params(key, in_channels, out_channels):
    ks = jax.random.split(key, 10)
    w1 = jax.random.normal(ks[0], (3, 3, in_channels, out_channels), jnp.float32)
    w1 = w1 / jnp.sqrt(9.0 * in_channels)
    w2 = jax.random.normal(ks[1], (3, 3, out_channels, out_channels), jnp.float32)
    w2 = w2 / jnp.sqrt(9.0 * out_channels)

    def bn_params(k_a, k_b, k_c, k_d):
        return dict(
            gamma=1.0 + 0.1 * jax.random.normal(k_a, (out_channels,), jnp.float32),
            beta=0.1 * jax.random.normal(k_b, (out_channels,), jnp.float32),
            mean=0.1 * jax.random.normal(k_c, (out_channels,), jnp.float32),
            var=jax.random.uniform(k_d, (out_channels,), jnp.float32, 0.5, 1.5),
        )

    return dict(
        w1=w1, bn1=bn_params(ks[2], ks[3], ks[4], ks[5]),
        w2=w2, bn2=bn_params(ks[6], ks[7], ks[8], ks[9]),
    )


# --------------------------- plain-JAX reference ---------------------------- #
def _ref_conv_bn_relu(x_nchw, w_hwio, bn):
    w_oihw = jnp.transpose(w_hwio, (3, 2, 0, 1))
    y = jax.lax.conv_general_dilated(
        x_nchw, w_oihw, window_strides=(1, 1), padding=((1, 1), (1, 1)),
        dimension_numbers=("NCHW", "OIHW", "NCHW"))
    inv_std = 1.0 / jnp.sqrt(bn["var"] + BN_EPS)
    s = (bn["gamma"] * inv_std).reshape(1, -1, 1, 1)
    b = (bn["beta"] - bn["mean"] * bn["gamma"] * inv_std).reshape(1, -1, 1, 1)
    return jnp.maximum(y * s + b, 0.0)


def _ref_double_conv(x_nchw, params):
    y = _ref_conv_bn_relu(x_nchw, params["w1"], params["bn1"])
    return _ref_conv_bn_relu(y, params["w2"], params["bn2"])


if __name__ == "__main__":
    key = jax.random.PRNGKey(0)
    k_x, k_p = jax.random.split(key)

    N, C_IN, C_OUT, H, W = 2, 4, 8, 16, 16
    x = jax.random.normal(k_x, (N, C_IN, H, W), jnp.float32)
    params = init_double_conv_params(k_p, C_IN, C_OUT)

    out = jax.jit(double_conv)(x, params)
    out = jax.block_until_ready(out)

    ref = _ref_double_conv(x, params)
    assert out.shape == (N, C_OUT, H, W), out.shape
    assert jnp.allclose(out, ref, atol=1e-4, rtol=1e-4), float(
        jnp.max(jnp.abs(out - ref)))

    print("KERNEL_OK")
</pallas_src>

<mosaic_0001>
module attributes {stable_mosaic.version = 11 : i64} {
  func.func @_double_conv_kernel(%arg0: i32, %arg1: memref<1x328x128xf32, #tpu.memory_space<vmem>>, %arg2: memref<9x128x128xf32, #tpu.memory_space<vmem>>, %arg3: memref<1x128xf32, #tpu.memory_space<vmem>>, %arg4: memref<9x128x128xf32, #tpu.memory_space<vmem>>, %arg5: memref<1x128xf32, #tpu.memory_space<vmem>>, %arg6: memref<288x1xf32, #tpu.memory_space<vmem>>, %arg7: memref<1x288x128xf32, #tpu.memory_space<vmem>>, %arg8: memref<328x128xf32, #tpu.memory_space<vmem>>) attributes {dimension_semantics = [#tpu.dimension_semantics<parallel>], iteration_bounds = array<i64: 2>, scalar_prefetch = 0 : i64, scratch_operands = 1 : i64, tpu.core_type = #tpu.core_type<tc>, window_params = [{transform_indices = @transform_0, window_bounds = array<i64: 1, 328, 128>}, {pipeline_mode = #tpu.pipeline_mode<synchronous>, transform_indices = @transform_1, window_bounds = array<i64: 9, 128, 128>}, {pipeline_mode = #tpu.pipeline_mode<synchronous>, transform_indices = @transform_2, window_bounds = array<i64: 1, 128>}, {pipeline_mode = #tpu.pipeline_mode<synchronous>, transform_indices = @transform_3, window_bounds = array<i64: 9, 128, 128>}, {pipeline_mode = #tpu.pipeline_mode<synchronous>, transform_indices = @transform_4, window_bounds = array<i64: 1, 128>}, {pipeline_mode = #tpu.pipeline_mode<synchronous>, transform_indices = @transform_5, window_bounds = array<i64: 288, 1>}, {transform_indices = @transform_6, window_bounds = array<i64: 1, 288, 128>}]} {
    %cst = arith.constant 0.000000e+00 : f32
    %0 = vector.broadcast %cst : f32 to vector<288x128xf32>
    %c0 = arith.constant 0 : index
    %c0_0 = arith.constant 0 : index
    %c0_1 = arith.constant 0 : index
    %1 = vector.load %arg1[%c0, %c0_0, %c0_1] : memref<1x328x128xf32, #tpu.memory_space<vmem>>, vector<1x288x128xf32>
    %2 = vector.shape_cast %1 : vector<1x288x128xf32> to vector<288x128xf32>
    %c0_2 = arith.constant 0 : index
    %c0_3 = arith.constant 0 : index
    %c0_4 = arith.constant 0 : index
    %3 = vector.load %arg2[%c0_2, %c0_3, %c0_4] : memref<9x128x128xf32, #tpu.memory_space<vmem>>, vector<1x128x128xf32>
    %4 = vector.shape_cast %3 : vector<1x128x128xf32> to vector<128x128xf32>
    %cst_5 = arith.constant dense<0.000000e+00> : vector<288x128xf32>
    %5 = tpu.matmul %2, %4, %cst_5 {dimension_numbers = #tpu.dot_dimension_numbers<[1], [0], [0], [1], [0, 0, 1, 1], [], []>} : vector<288x128xf32>, vector<128x128xf32>, vector<288x128xf32> -> vector<288x128xf32>
    %6 = arith.addf %0, %5 : vector<288x128xf32>
    %c0_6 = arith.constant 0 : index
    %c1 = arith.constant 1 : index
    %c0_7 = arith.constant 0 : index
    %7 = vector.load %arg1[%c0_6, %c1, %c0_7] : memref<1x328x128xf32, #tpu.memory_space<vmem>>, vector<1x288x128xf32>
    %8 = vector.shape_cast %7 : vector<1x288x128xf32> to vector<288x128xf32>
    %c1_8 = arith.constant 1 : index
    %c0_9 = arith.constant 0 : index
    %c0_10 = arith.constant 0 : index
    %9 = vector.load %arg2[%c1_8, %c0_9, %c0_10] : memref<9x128x128xf32, #tpu.memory_space<vmem>>, vector<1x128x128xf32>
    %10 = vector.shape_cast %9 : vector<1x128x128xf32> to vector<128x128xf32>
    %cst_11 = arith.constant dense<0.000000e+00> : vector<288x128xf32>
    %11 = tpu.matmul %8, %10, %cst_11 {dimension_numbers = #tpu.dot_dimension_numbers<[1], [0], [0], [1], [0, 0, 1, 1], [], []>} : vector<288x128xf32>, vector<128x128xf32>, vector<288x128xf32> -> vector<288x128xf32>
    %12 = arith.addf %6, %11 : vector<288x128xf32>
    %c0_12 = arith.constant 0 : index
    %c2 = arith.constant 2 : index
    %c0_13 = arith.constant 0 : index
    %13 = vector.load %arg1[%c0_12, %c2, %c0_13] : memref<1x328x128xf32, #tpu.memory_space<vmem>>, vector<1x288x128xf32>
    %14 = vector.shape_cast %13 : vector<1x288x128xf32> to vector<288x128xf32>
    %c2_14 = arith.constant 2 : index
    %c0_15 = arith.constant 0 : index
    %c0_16 = arith.constant 0 : index
    %15 = vector.load %arg2[%c2_14, %c0_15, %c0_16] : memref<9x128x128xf32, #tpu.memory_space<vmem>>, vector<1x128x128xf32>
    %16 = vector.shape_cast %15 : vector<1x128x128xf32> to vector<128x128xf32>
    %cst_17 = arith.constant dense<0.000000e+00> : vector<288x128xf32>
    %17 = tpu.matmul %14, %16, %cst_17 {dimension_numbers = #tpu.dot_dimension_numbers<[1], [0], [0], [1], [0, 0, 1, 1], [], []>} : vector<288x128xf32>, vector<128x128xf32>, vector<288x128xf32> -> vector<288x128xf32>
    %18 = arith.addf %12, %17 : vector<288x128xf32>
    %c0_18 = arith.constant 0 : index
    %c18 = arith.constant 18 : index
    %c0_19 = arith.constant 0 : index
    %19 = vector.load %arg1[%c0_18, %c18, %c0_19] : memref<1x328x128xf32, #tpu.memory_space<vmem>>, vector<1x288x128xf32>
    %20 = vector.shape_cast %19 : vector<1x288x128xf32> to vector<288x128xf32>
    %c3 = arith.constant 3 : index
    %c0_20 = arith.constant 0 : index
    %c0_21 = arith.constant 0 : index
    %21 = vector.load %arg2[%c3, %c0_20, %c0_21] : memref<9x128x128xf32, #tpu.memory_space<vmem>>, vector<1x128x128xf32>
    %22 = vector.shape_cast %21 : vector<1x128x128xf32> to vector<128x128xf32>
    %cst_22 = arith.constant dense<0.000000e+00> : vector<288x128xf32>
    %23 = tpu.matmul %20, %22, %cst_22 {dimension_numbers = #tpu.dot_dimension_numbers<[1], [0], [0], [1], [0, 0, 1, 1], [], []>} : vector<288x128xf32>, vector<128x128xf32>, vector<288x128xf32> -> vector<288x128xf32>
    %24 = arith.addf %18, %23 : vector<288x128xf32>
    %c0_23 = arith.constant 0 : index
    %c19 = arith.constant 19 : index
    %c0_24 = arith.constant 0 : index
    %25 = vector.load %arg1[%c0_23, %c19, %c0_24] : memref<1x328x128xf32, #tpu.memory_space<vmem>>, vector<1x288x128xf32>
    %26 = vector.shape_cast %25 : vector<1x288x128xf32> to vector<288x128xf32>
    %c4 = arith.constant 4 : index
    %c0_25 = arith.constant 0 : index
    %c0_26 = arith.constant 0 : index
    %27 = vector.load %arg2[%c4, %c0_25, %c0_26] : memref<9x128x128xf32, #tpu.memory_space<vmem>>, vector<1x128x128xf32>
    %28 = vector.shape_cast %27 : vector<1x128x128xf32> to vector<128x128xf32>
    %cst_27 = arith.constant dense<0.000000e+00> : vector<288x128xf32>
    %29 = tpu.matmul %26, %28, %cst_27 {dimension_numbers = #tpu.dot_dimension_numbers<[1], [0], [0], [1], [0, 0, 1, 1], [], []>} : vector<288x128xf32>, vector<128x128xf32>, vector<288x128xf32> -> vector<288x128xf32>
    %30 = arith.addf %24, %29 : vector<288x128xf32>
    %c0_28 = arith.constant 0 : index
    %c20 = arith.constant 20 : index
    %c0_29 = arith.constant 0 : index
    %31 = vector.load %arg1[%c0_28, %c20, %c0_29] : memref<1x328x128xf32, #tpu.memory_space<vmem>>, vector<1x288x128xf32>
    %32 = vector.shape_cast %31 : vector<1x288x128xf32> to vector<288x128xf32>
    %c5 = arith.constant 5 : index
    %c0_30 = arith.constant 0 : index
    %c0_31 = arith.constant 0 : index
    %33 = vector.load %arg2[%c5, %c0_30, %c0_31] : memref<9x128x128xf32, #tpu.memory_space<vmem>>, vector<1x128x128xf32>
    %34 = vector.shape_cast %33 : vector<1x128x128xf32> to vector<128x128xf32>
    %cst_32 = arith.constant dense<0.000000e+00> : vector<288x128xf32>
    %35 = tpu.matmul %32, %34, %cst_32 {dimension_numbers = #tpu.dot_dimension_numbers<[1], [0], [0], [1], [0, 0, 1, 1], [], []>} : vector<288x128xf32>, vector<128x128xf32>, vector<288x128xf32> -> vector<288x128xf32>
    %36 = arith.addf %30, %35 : vector<288x128xf32>
    %c0_33 = arith.constant 0 : index
    %c36 = arith.constant 36 : index
    %c0_34 = arith.constant 0 : index
    %37 = vector.load %arg1[%c0_33, %c36, %c0_34] : memref<1x328x128xf32, #tpu.memory_space<vmem>>, vector<1x288x128xf32>
    %38 = vector.shape_cast %37 : vector<1x288x128xf32> to vector<288x128xf32>
    %c6 = arith.constant 6 : index
    %c0_35 = arith.constant 0 : index
    %c0_36 = arith.constant 0 : index
    %39 = vector.load %arg2[%c6, %c0_35, %c0_36] : memref<9x128x128xf32, #tpu.memory_space<vmem>>, vector<1x128x128xf32>
    %40 = vector.shape_cast %39 : vector<1x128x128xf32> to vector<128x128xf32>
    %cst_37 = arith.constant dense<0.000000e+00> : vector<288x128xf32>
    %41 = tpu.matmul %38, %40, %cst_37 {dimension_numbers = #tpu.dot_dimension_numbers<[1], [0], [0], [1], [0, 0, 1, 1], [], []>} : vector<288x128xf32>, vector<128x128xf32>, vector<288x128xf32> -> vector<288x128xf32>
    %42 = arith.addf %36, %41 : vector<288x128xf32>
    %c0_38 = arith.constant 0 : index
    %c37 = arith.constant 37 : index
    %c0_39 = arith.constant 0 : index
    %43 = vector.load %arg1[%c0_38, %c37, %c0_39] : memref<1x328x128xf32, #tpu.memory_space<vmem>>, vector<1x288x128xf32>
    %44 = vector.shape_cast %43 : vector<1x288x128xf32> to vector<288x128xf32>
    %c7 = arith.constant 7 : index
    %c0_40 = arith.constant 0 : index
    %c0_41 = arith.constant 0 : index
    %45 = vector.load %arg2[%c7, %c0_40, %c0_41] : memref<9x128x128xf32, #tpu.memory_space<vmem>>, vector<1x128x128xf32>
    %46 = vector.shape_cast %45 : vector<1x128x128xf32> to vector<128x128xf32>
    %cst_42 = arith.constant dense<0.000000e+00> : vector<288x128xf32>
    %47 = tpu.matmul %44, %46, %cst_42 {dimension_numbers = #tpu.dot_dimension_numbers<[1], [0], [0], [1], [0, 0, 1, 1], [], []>} : vector<288x128xf32>, vector<128x128xf32>, vector<288x128xf32> -> vector<288x128xf32>
    %48 = arith.addf %42, %47 : vector<288x128xf32>
    %c0_43 = arith.constant 0 : index
    %c38 = arith.constant 38 : index
    %c0_44 = arith.constant 0 : index
    %49 = vector.load %arg1[%c0_43, %c38, %c0_44] : memref<1x328x128xf32, #tpu.memory_space<vmem>>, vector<1x288x128xf32>
    %50 = vector.shape_cast %49 : vector<1x288x128xf32> to vector<288x128xf32>
    %c8 = arith.constant 8 : index
    %c0_45 = arith.constant 0 : index
    %c0_46 = arith.constant 0 : index
    %51 = vector.load %arg2[%c8, %c0_45, %c0_46] : memref<9x128x128xf32, #tpu.memory_space<vmem>>, vector<1x128x128xf32>
    %52 = vector.shape_cast %51 : vector<1x128x128xf32> to vector<128x128xf32>
    %cst_47 = arith.constant dense<0.000000e+00> : vector<288x128xf32>
    %53 = tpu.matmul %50, %52, %cst_47 {dimension_numbers = #tpu.dot_dimension_numbers<[1], [0], [0], [1], [0, 0, 1, 1], [], []>} : vector<288x128xf32>, vector<128x128xf32>, vector<288x128xf32> -> vector<288x128xf32>
    %54 = arith.addf %48, %53 : vector<288x128xf32>
    %c0_48 = arith.constant 0 : index
    %c0_49 = arith.constant 0 : index
    %55 = vector.load %arg3[%c0_48, %c0_49] : memref<1x128xf32, #tpu.memory_space<vmem>>, vector<1x128xf32>
    %56 = vector.broadcast %55 : vector<1x128xf32> to vector<288x128xf32>
    %57 = arith.addf %54, %56 : vector<288x128xf32>
    %cst_50 = arith.constant 0.000000e+00 : f32
    %58 = vector.broadcast %cst_50 : f32 to vector<288x128xf32>
    %59 = arith.maximumf %57, %58 : vector<288x128xf32>
    %c0_51 = arith.constant 0 : index
    %c0_52 = arith.constant 0 : index
    %60 = vector.load %arg6[%c0_51, %c0_52] : memref<288x1xf32, #tpu.memory_space<vmem>>, vector<288x1xf32>
    %61 = vector.broadcast %60 : vector<288x1xf32> to vector<288x128xf32>
    %62 = arith.mulf %59, %61 : vector<288x128xf32>
    %cst_53 = arith.constant 0.000000e+00 : f32
    %63 = vector.broadcast %cst_53 : f32 to vector<328x128xf32>
    %c0_54 = arith.constant 0 : index
    %c0_55 = arith.constant 0 : index
    %64 = vector.load %arg8[%c0_54, %c0_55] : memref<328x128xf32, #tpu.memory_space<vmem>>, vector<328x128xf32>
    tpu.vector_store %arg8[%c0_54, %c0_55], %63 {strides = array<i32>} : memref<328x128xf32, #tpu.memory_space<vmem>>, vector<328x128xf32>,
    %c19_56 = arith.constant 19 : index
    %c0_57 = arith.constant 0 : index
    %65 = vector.load %arg8[%c19_56, %c0_57] : memref<328x128xf32, #tpu.memory_space<vmem>>, vector<288x128xf32>
    tpu.vector_store %arg8[%c19_56, %c0_57], %62 {strides = array<i32>} : memref<328x128xf32, #tpu.memory_space<vmem>>, vector<288x128xf32>,
    %cst_58 = arith.constant 0.000000e+00 : f32
    %66 = vector.broadcast %cst_58 : f32 to vector<288x128xf32>
    %c0_59 = arith.constant 0 : index
    %c0_60 = arith.constant 0 : index
    %67 = vector.load %arg8[%c0_59, %c0_60] : memref<328x128xf32, #tpu.memory_space<vmem>>, vector<288x128xf32>
    %c0_61 = arith.constant 0 : index
    %c0_62 = arith.constant 0 : index
    %c0_63 = arith.constant 0 : index
    %68 = vector.load %arg4[%c0_61, %c0_62, %c0_63] : memref<9x128x128xf32, #tpu.memory_space<vmem>>, vector<1x128x128xf32>
    %69 = vector.shape_cast %68 : vector<1x128x128xf32> to vector<128x128xf32>
    %cst_64 = arith.constant dense<0.000000e+00> : vector<288x128xf32>
    %70 = tpu.matmul %67, %69, %cst_64 {dimension_numbers = #tpu.dot_dimension_numbers<[1], [0], [0], [1], [0, 0, 1, 1], [], []>} : vector<288x128xf32>, vector<128x128xf32>, vector<288x128xf32> -> vector<288x128xf32>
    %71 = arith.addf %66, %70 : vector<288x128xf32>
    %c1_65 = arith.constant 1 : index
    %c0_66 = arith.constant 0 : index
    %72 = vector.load %arg8[%c1_65, %c0_66] : memref<328x128xf32, #tpu.memory_space<vmem>>, vector<288x128xf32>
    %c1_67 = arith.constant 1 : index
    %c0_68 = arith.constant 0 : index
    %c0_69 = arith.constant 0 : index
    %73 = vector.load %arg4[%c1_67, %c0_68, %c0_69] : memref<9x128x128xf32, #tpu.memory_space<vmem>>, vector<1x128x128xf32>
    %74 = vector.shape_cast %73 : vector<1x128x128xf32> to vector<128x128xf32>
    %cst_70 = arith.constant dense<0.000000e+00> : vector<288x128xf32>
    %75 = tpu.matmul %72, %74, %cst_70 {dimension_numbers = #tpu.dot_dimension_numbers<[1], [0], [0], [1], [0, 0, 1, 1], [], []>} : vector<288x128xf32>, vector<128x128xf32>, vector<288x128xf32> -> vector<288x128xf32>
    %76 = arith.addf %71, %75 : vector<288x128xf32>
    %c2_71 = arith.constant 2 : index
    %c0_72 = arith.constant 0 : index
    %77 = vector.load %arg8[%c2_71, %c0_72] : memref<328x128xf32, #tpu.memory_space<vmem>>, vector<288x128xf32>
    %c2_73 = arith.constant 2 : index
    %c0_74 = arith.constant 0 : index
    %c0_75 = arith.constant 0 : index
    %78 = vector.load %arg4[%c2_73, %c0_74, %c0_75] : memref<9x128x128xf32, #tpu.memory_space<vmem>>, vector<1x128x128xf32>
    %79 = vector.shape_cast %78 : vector<1x128x128xf32> to vector<128x128xf32>
    %cst_76 = arith.constant dense<0.000000e+00> : vector<288x128xf32>
    %80 = tpu.matmul %77, %79, %cst_76 {dimension_numbers = #tpu.dot_dimension_numbers<[1], [0], [0], [1], [0, 0, 1, 1], [], []>} : vector<288x128xf32>, vector<128x128xf32>, vector<288x128xf32> -> vector<288x128xf32>
    %81 = arith.addf %76, %80 : vector<288x128xf32>
    %c18_77 = arith.constant 18 : index
    %c0_78 = arith.constant 0 : index
    %82 = vector.load %arg8[%c18_77, %c0_78] : memref<328x128xf32, #tpu.memory_space<vmem>>, vector<288x128xf32>
    %c3_79 = arith.constant 3 : index
    %c0_80 = arith.constant 0 : index
    %c0_81 = arith.constant 0 : index
    %83 = vector.load %arg4[%c3_79, %c0_80, %c0_81] : memref<9x128x128xf32, #tpu.memory_space<vmem>>, vector<1x128x128xf32>
    %84 = vector.shape_cast %83 : vector<1x128x128xf32> to vector<128x128xf32>
    %cst_82 = arith.constant dense<0.000000e+00> : vector<288x128xf32>
    %85 = tpu.matmul %82, %84, %cst_82 {dimension_numbers = #tpu.dot_dimension_numbers<[1], [0], [0], [1], [0, 0, 1, 1], [], []>} : vector<288x128xf32>, vector<128x128xf32>, vector<288x128xf32> -> vector<288x128xf32>
    %86 = arith.addf %81, %85 : vector<288x128xf32>
    %c19_83 = arith.constant 19 : index
    %c0_84 = arith.constant 0 : index
    %87 = vector.load %arg8[%c19_83, %c0_84] : memref<328x128xf32, #tpu.memory_space<vmem>>, vector<288x128xf32>
    %c4_85 = arith.constant 4 : index
    %c0_86 = arith.constant 0 : index
    %c0_87 = arith.constant 0 : index
    %88 = vector.load %arg4[%c4_85, %c0_86, %c0_87] : memref<9x128x128xf32, #tpu.memory_space<vmem>>, vector<1x128x128xf32>
    %89 = vector.shape_cast %88 : vector<1x128x128xf32> to vector<128x128xf32>
    %cst_88 = arith.constant dense<0.000000e+00> : vector<288x128xf32>
    %90 = tpu.matmul %87, %89, %cst_88 {dimension_numbers = #tpu.dot_dimension_numbers<[1], [0], [0], [1], [0, 0, 1, 1], [], []>} : vector<288x128xf32>, vector<128x128xf32>, vector<288x128xf32> -> vector<288x128xf32>
    %91 = arith.addf %86, %90 : vector<288x128xf32>
    %c20_89 = arith.constant 20 : index
    %c0_90 = arith.constant 0 : index
    %92 = vector.load %arg8[%c20_89, %c0_90] : memref<328x128xf32, #tpu.memory_space<vmem>>, vector<288x128xf32>
    %c5_91 = arith.constant 5 : index
    %c0_92 = arith.constant 0 : index
    %c0_93 = arith.constant 0 : index
    %93 = vector.load %arg4[%c5_91, %c0_92, %c0_93] : memref<9x128x128xf32, #tpu.memory_space<vmem>>, vector<1x128x128xf32>
    %94 = vector.shape_cast %93 : vector<1x128x128xf32> to vector<128x128xf32>
    %cst_94 = arith.constant dense<0.000000e+00> : vector<288x128xf32>
    %95 = tpu.matmul %92, %94, %cst_94 {dimension_numbers = #tpu.dot_dimension_numbers<[1], [0], [0], [1], [0, 0, 1, 1], [], []>} : vector<288x128xf32>, vector<128x128xf32>, vector<288x128xf32> -> vector<288x128xf32>
    %96 = arith.addf %91, %95 : vector<288x128xf32>
    %c36_95 = arith.constant 36 : index
    %c0_96 = arith.constant 0 : index
    %97 = vector.load %arg8[%c36_95, %c0_96] : memref<328x128xf32, #tpu.memory_space<vmem>>, vector<288x128xf32>
    %c6_97 = arith.constant 6 : index
    %c0_98 = arith.constant 0 : index
    %c0_99 = arith.constant 0 : index
    %98 = vector.load %arg4[%c6_97, %c0_98, %c0_99] : memref<9x128x128xf32, #tpu.memory_space<vmem>>, vector<1x128x128xf32>
    %99 = vector.shape_cast %98 : vector<1x128x128xf32> to vector<128x128xf32>
    %cst_100 = arith.constant dense<0.000000e+00> : vector<288x128xf32>
    %100 = tpu.matmul %97, %99, %cst_100 {dimension_numbers = #tpu.dot_dimension_numbers<[1], [0], [0], [1], [0, 0, 1, 1], [], []>} : vector<288x128xf32>, vector<128x128xf32>, vector<288x128xf32> -> vector<288x128xf32>
    %101 = arith.addf %96, %100 : vector<288x128xf32>
    %c37_101 = arith.constant 37 : index
    %c0_102 = arith.constant 0 : index
    %102 = vector.load %arg8[%c37_101, %c0_102] : memref<328x128xf32, #tpu.memory_space<vmem>>, vector<288x128xf32>
    %c7_103 = arith.constant 7 : index
    %c0_104 = arith.constant 0 : index
    %c0_105 = arith.constant 0 : index
    %103 = vector.load %arg4[%c7_103, %c0_104, %c0_105] : memref<9x128x128xf32, #tpu.memory_space<vmem>>, vector<1x128x128xf32>
    %104 = vector.shape_cast %103 : vector<1x128x128xf32> to vector<128x128xf32>
    %cst_106 = arith.constant dense<0.000000e+00> : vector<288x128xf32>
    %105 = tpu.matmul %102, %104, %cst_106 {dimension_numbers = #tpu.dot_dimension_numbers<[1], [0], [0], [1], [0, 0, 1, 1], [], []>} : vector<288x128xf32>, vector<128x128xf32>, vector<288x128xf32> -> vector<288x128xf32>
    %106 = arith.addf %101, %105 : vector<288x128xf32>
    %c38_107 = arith.constant 38 : index
    %c0_108 = arith.constant 0 : index
    %107 = vector.load %arg8[%c38_107, %c0_108] : memref<328x128xf32, #tpu.memory_space<vmem>>, vector<288x128xf32>
    %c8_109 = arith.constant 8 : index
    %c0_110 = arith.constant 0 : index
    %c0_111 = arith.constant 0 : index
    %108 = vector.load %arg4[%c8_109, %c0_110, %c0_111] : memref<9x128x128xf32, #tpu.memory_space<vmem>>, vector<1x128x128xf32>
    %109 = vector.shape_cast %108 : vector<1x128x128xf32> to vector<128x128xf32>
    %cst_112 = arith.constant dense<0.000000e+00> : vector<288x128xf32>
    %110 = tpu.matmul %107, %109, %cst_112 {dimension_numbers = #tpu.dot_dimension_numbers<[1], [0], [0], [1], [0, 0, 1, 1], [], []>} : vector<288x128xf32>, vector<128x128xf32>, vector<288x128xf32> -> vector<288x128xf32>
    %111 = arith.addf %106, %110 : vector<288x128xf32>
    %c0_113 = arith.constant 0 : index
    %c0_114 = arith.constant 0 : index
    %112 = vector.load %arg5[%c0_113, %c0_114] : memref<1x128xf32, #tpu.memory_space<vmem>>, vector<1x128xf32>
    %113 = vector.broadcast %112 : vector<1x128xf32> to vector<288x128xf32>
    %114 = arith.addf %111, %113 : vector<288x128xf32>
    %cst_115 = arith.constant 0.000000e+00 : f32
    %115 = vector.broadcast %cst_115 : f32 to vector<288x128xf32>
    %116 = arith.maximumf %114, %115 : vector<288x128xf32>
    %c0_116 = arith.constant 0 : index
    %c0_117 = arith.constant 0 : index
    %c0_118 = arith.constant 0 : index
    %117 = vector.load %arg7[%c0_116, %c0_117, %c0_118] : memref<1x288x128xf32, #tpu.memory_space<vmem>>, vector<1x288x128xf32>
    %118 = vector.shape_cast %117 : vector<1x288x128xf32> to vector<288x128xf32>
    %119 = vector.shape_cast %116 : vector<288x128xf32> to vector<1x288x128xf32>
    tpu.vector_store %arg7[%c0_116, %c0_117, %c0_118], %119 {strides = array<i32>} : memref<1x288x128xf32, #tpu.memory_space<vmem>>, vector<1x288x128xf32>,
    return
  }
  func.func @transform_0(%arg0: i32) -> (i32, i32, i32) {
    %c0_i32 = arith.constant 0 : i32
    %c0_i32_0 = arith.constant 0 : i32
    %c0_i32_1 = arith.constant 0 : i32
    return %arg0, %c0_i32, %c0_i32_0 : i32, i32, i32
  }
  func.func @transform_1(%arg0: i32) -> (i32, i32, i32) {
    %c0_i32 = arith.constant 0 : i32
    %c0_i32_0 = arith.constant 0 : i32
    %c0_i32_1 = arith.constant 0 : i32
    %c0_i32_2 = arith.constant 0 : i32
    return %c0_i32, %c0_i32_0, %c0_i32_1 : i32, i32, i32
  }
  func.func @transform_2(%arg0: i32) -> (i32, i32) {
    %c0_i32 = arith.constant 0 : i32
    %c0_i32_0 = arith.constant 0 : i32
    %c0_i32_1 = arith.constant 0 : i32
    return %c0_i32, %c0_i32_0 : i32, i32
  }
  func.func @transform_3(%arg0: i32) -> (i32, i32, i32) {
    %c0_i32 = arith.constant 0 : i32
    %c0_i32_0 = arith.constant 0 : i32
    %c0_i32_1 = arith.constant 0 : i32
    %c0_i32_2 = arith.constant 0 : i32
    return %c0_i32, %c0_i32_0, %c0_i32_1 : i32, i32, i32
  }
  func.func @transform_4(%arg0: i32) -> (i32, i32) {
    %c0_i32 = arith.constant 0 : i32
    %c0_i32_0 = arith.constant 0 : i32
    %c0_i32_1 = arith.constant 0 : i32
    return %c0_i32, %c0_i32_0 : i32, i32
  }
  func.func @transform_5(%arg0: i32) -> (i32, i32) {
    %c0_i32 = arith.constant 0 : i32
    %c0_i32_0 = arith.constant 0 : i32
    %c0_i32_1 = arith.constant 0 : i32
    return %c0_i32, %c0_i32_0 : i32, i32
  }
  func.func @transform_6(%arg0: i32) -> (i32, i32, i32) {
    %c0_i32 = arith.constant 0 : i32
    %c0_i32_0 = arith.constant 0 : i32
    %c0_i32_1 = arith.constant 0 : i32
    return %arg0, %c0_i32, %c0_i32_0 : i32, i32, i32
  }
}

</mosaic_0001>

<bundles_post_ra>
// kernel: double_conv.1
= control target key start
LH: loop header
LB: loop body
LE: loop exit
PB: predicated region body
PF: predicated region fallthrough
CT: control target
= control target key end

     0   :  { %11 = vsyncpa [#allocation4], 0  ;;  %s12282_s0 = inlined_call_operand.hbm [shape: f32[2,328,128], index: 0, kind: input, shape index: {}]   ;;  %s12283_s1 = inlined_call_operand.hbm [shape: f32[9,128,128], index: 1, kind: input, shape index: {}]   ;;  %s12284_s2 = inlined_call_operand.hbm [shape: f32[1,128], index: 2, kind: input, shape index: {}]   ;;  %s12285_s3 = inlined_call_operand.hbm [shape: f32[9,128,128], index: 3, kind: input, shape index: {}]   ;;  %s12286_s4 = inlined_call_operand.hbm [shape: f32[1,128], index: 4, kind: input, shape index: {}]   ;;  %s12287_s5 = inlined_call_operand.hbm [shape: f32[288,1], index: 5, kind: input, shape index: {}]   ;;  %s12288_s6 = inlined_call_operand.hbm [shape: f32[2,288,128], index: 6, kind: output, shape index: {}]  }
   0x1   :  { %13 = vsyncpa [#allocation4 + $0x1], 0 }
   0x2   :  { %14 = vsyncpa [#allocation7], 0 }
   0x3   :  { %15 = vsyncpa [#allocation10], 0 }
   0x4   :  { %16 = vsyncpa [#allocation13], 0 }
   0x5   :  { %17 = vsyncpa [#allocation5], 0 }
   0x6   :  { %19 = vsyncpa [#allocation5 + $0x1], 0  ;;  %s10927_s21 = smov 0   ;;  %s10929_s22 = smov 0  }
   0x7   :  { %s10931_s23 = smov 0   ;;  %s10933_s24 = smov 0  }
   0x8 LB: > { %s10879_s25 = smov [#allocation6]   ;;  %s10948_s27 = sadd.s32 4294967295, %s10877_s24   ;;  %s10877_s24 = sphi %s10933_s24, %s12317_s24   ;;  %s10873_s23 = sphi %s10931_s23, %s12316_s23   ;;  %s10869_s22 = sphi %s10929_s22, %s12315_s22   ;;  %s10865_s21 = sphi %s10927_s21, %s12314_s21  }
   0x9   : > { %s199_s26 = sshll.u32 %s10879_s25, 4  ;;  %p6864_p0 = scmp.ge.s32.totalorder %s10877_s24, 1  ;;  %s10953_s26 = int_to_ptr.vmem [resolvable:$true] %s199_s26 }
   0xa   : > { %p12289_p1 = scmp.eq.s32.totalorder %s10948_s27, 0  ;;  %p187_p2 = scmp.lt.s32.totalorder %s10877_s24, 3 }
   0xb   : > { %s10880_s29 = smov [#allocation9]   ;;  %s10881_s8 = smov [#allocation8]  }
   0xc   : > { %p10955_p3 = pnand %p6864_p0, %p187_p2  ;;  %s223_s30 = sshll.u32 %s10880_s29, 4  ;;  %s10968_s30 = int_to_ptr.vmem [resolvable:$true] %s223_s30 }
   0xd   : > { %s213_s9 = sshll.u32 %s10881_s8, 4  ;;  %s10629_s12 = scalar_lea.hbm %s12283_s1, 18432  ;;  %s10970_s9 = int_to_ptr.vmem [resolvable:$true] %s213_s9 }
   0xe   : > { %s12294_s28 = scalar_select %p10955_p3, 1, 0 }
   0xf   : > { %p10548_p5 = pneg %p10955_p3  ;;  %p10630_p7 = scmp.ne.s32.totalorder %s12283_s1, %s10629_s12 }
  0x10   : > { %p10636_p11 = scmp.lt.u32.totalorder %s10629_s12, %s12283_s1 }
  0x11   : > { %p10964_p6 = pnand %p10548_p5, %p12289_p1 }
  0x13   : > { %p10980_p8 = pneg %p10964_p6 }
  0x15   : > { %p10632_p9 = pnand %p10980_p8, %p10630_p7 }
  0x17   : > { %p10633_p10 = pneg %p10632_p9 }
  0x19   : > { %p10638_p12 = pnand %p10636_p11, %p10633_p10 }
  0x1b   : > { %10641 = shalt.err (!%p10638_p12)
}
  0x1c   : > { %s10642_s18 = scalar_lea.vmem %s10953_s26, 18432  ;;  %p10650_p5 = scmp.lt.s32.totalorder %s10953_s26, %s10953_s26 }
  0x1d   : > { %p10643_p13 = scmp.ne.s32.totalorder %s10953_s26, %s10642_s18  ;;  %p10651_p4 = scmp.lt.s32.totalorder %s10642_s18, %s10642_s18 }
  0x1f   : > { %p10645_p0 = pnand %p10643_p13, %p10980_p8  ;;  %p10652_p7 = por %p10651_p4, %p10650_p5 }
  0x21   : > { %p10646_p2 = pneg %p10645_p0 }
  0x23   : > { %p10653_p9 = pnand %p10652_p7, %p10646_p2 }
  0x25   : > { %10656 = shalt.err (!%p10653_p9)
}
  0x26   : > { %s12291_s19 = smov 128   ;;  %s12292_s20 = smov 8  }
  0x27   : > { %10551 = dma.hbm_to_vmem [thread:$0]  (!%p10964_p6), %s12283_s1, 18432, %s10953_s26, [#allocation7], %s12291_s19, %s12291_s19, %s12292_s20  }
  0x28   : > { %s10657_s11 = scalar_lea.hbm %s12285_s3, 18432 }
  0x29   : > { %p10658_p4 = scmp.ne.s32.totalorder %s12285_s3, %s10657_s11  ;;  %p10664_p12 = scmp.lt.u32.totalorder %s10657_s11, %s12285_s3 }
  0x2b   : > { %p10660_p10 = pnand %p10658_p4, %p10980_p8 }
  0x2d   : > { %p10661_p11 = pneg %p10660_p10 }
  0x2f   : > { %p10666_p13 = pnand %p10664_p12, %p10661_p11 }
  0x31   : > { %10669 = shalt.err (!%p10666_p13)
}
  0x32   : > { %s10670_s26 = scalar_lea.vmem %s10968_s30, 18432  ;;  %p10678_p7 = scmp.lt.s32.totalorder %s10968_s30, %s10968_s30 }
  0x33   : > { %p10671_p0 = scmp.ne.s32.totalorder %s10968_s30, %s10670_s26  ;;  %p10679_p9 = scmp.lt.s32.totalorder %s10670_s26, %s10670_s26 }
  0x35   : > { %p10673_p2 = pnand %p10671_p0, %p10980_p8  ;;  %p10680_p4 = por %p10679_p9, %p10678_p7 }
  0x37   : > { %p10674_p5 = pneg %p10673_p2 }
  0x39   : > { %p10681_p10 = pnand %p10680_p4, %p10674_p5 }
  0x3b   : > { %10684 = shalt.err (!%p10681_p10)
}
  0x3c   : > { %10557 = dma.hbm_to_vmem [thread:$0]  (!%p10964_p6), %s12285_s3, 18432, %s10968_s30, [#allocation10], %s12291_s19, %s12291_s19, %s12292_s20  }
  0x3d   : > { %s10685_s8 = scalar_lea.hbm %s12284_s2, 16 }
  0x3e   : > { %p10686_p11 = scmp.ne.s32.totalorder %s12284_s2, %s10685_s8  ;;  %p10692_p0 = scmp.lt.u32.totalorder %s10685_s8, %s12284_s2 }
  0x40   : > { %p10688_p12 = pnand %p10686_p11, %p10980_p8 }
  0x42   : > { %p10689_p13 = pneg %p10688_p12 }
  0x44   : > { %p10694_p2 = pnand %p10692_p0, %p10689_p13 }
  0x46   : > { %10697 = shalt.err (!%p10694_p2)
}
  0x47   : > { %s10698_s30 = scalar_lea.vmem %s10970_s9, 16  ;;  %s10705_s14 = scalar_lea.vmem %s10970_s9, 32 }
  0x48   : > { %p10699_p5 = scmp.ne.s32.totalorder %s10970_s9, %s10698_s30  ;;  %p10706_p4 = scmp.lt.s32.totalorder %s10970_s9, %s10970_s9 }
  0x49   : > { %p10707_p10 = scmp.lt.s32.totalorder %s10705_s14, %s10698_s30 }
  0x4a   : > { %p10701_p7 = pnand %p10699_p5, %p10980_p8 }
  0x4b   : > { %p10708_p11 = por %p10707_p10, %p10706_p4 }
  0x4c   : > { %p10702_p9 = pneg %p10701_p7 }
  0x4e   : > { %p10709_p12 = pnand %p10708_p11, %p10702_p9 }
  0x50   : > { %10712 = shalt.err (!%p10709_p12)
}
  0x51   : > { %10554 = dma.hbm_to_vmem [thread:$0]  (!%p10964_p6), %s12284_s2, 16, %s10970_s9, [#allocation7]  }
  0x52   : > { %s10884_s17 = smov [#allocation11]   ;;  %s10885_s25 = smov [#allocation12]  }
  0x53   : > { %s237_s18 = sshll.u32 %s10884_s17, 4  ;;  %s247_s29 = sshll.u32 %s10885_s25, 4  ;;  %s238_s18 = int_to_ptr.vmem [resolvable:$true] %s237_s18  ;;  %s248_s29 = int_to_ptr.vmem [resolvable:$true] %s247_s29 }
  0x54   : > { %s10713_s11 = scalar_lea.hbm %s12286_s4, 16 }
  0x55   : > { %p10714_p13 = scmp.ne.s32.totalorder %s12286_s4, %s10713_s11  ;;  %p10720_p5 = scmp.lt.u32.totalorder %s10713_s11, %s12286_s4 }
  0x57   : > { %p10716_p0 = pnand %p10714_p13, %p10980_p8 }
  0x59   : > { %p10717_p2 = pneg %p10716_p0 }
  0x5b   : > { %p10722_p7 = pnand %p10720_p5, %p10717_p2 }
  0x5d   : > { %10725 = shalt.err (!%p10722_p7)
}
  0x5e   : > { %s10726_s9 = scalar_lea.vmem %s238_s18, 16  ;;  %s10733_s16 = scalar_lea.vmem %s238_s18, 32 }
  0x5f   : > { %p10727_p9 = scmp.ne.s32.totalorder %s238_s18, %s10726_s9  ;;  %p10734_p11 = scmp.lt.s32.totalorder %s238_s18, %s238_s18 }
  0x60   : > { %p10735_p12 = scmp.lt.s32.totalorder %s10733_s16, %s10726_s9 }
  0x61   : > { %p10729_p4 = pnand %p10727_p9, %p10980_p8 }
  0x62   : > { %p10736_p1 = por %p10735_p12, %p10734_p11 }
  0x63   : > { %p10730_p10 = pneg %p10729_p4 }
  0x65   : > { %p10737_p3 = pnand %p10736_p1, %p10730_p10 }
  0x67   : > { %10740 = shalt.err (!%p10737_p3)
}
  0x68   : > { %10560 = dma.hbm_to_vmem [thread:$0]  (!%p10964_p6), %s12286_s4, 16, %s238_s18, [#allocation10]  }
  0x69   : > { %s10741_s10 = scalar_lea.hbm %s12287_s5, 4608 }
  0x6a   : > { %p10742_p13 = scmp.ne.s32.totalorder %s12287_s5, %s10741_s10  ;;  %p10748_p3 = scmp.lt.u32.totalorder %s10741_s10, %s12287_s5 }
  0x6c   : > { %p10744_p0 = pnand %p10742_p13, %p10980_p8 }
  0x6e   : > { %p10745_p1 = pneg %p10744_p0 }
  0x70   : > { %p10750_p2 = pnand %p10748_p3, %p10745_p1 }
  0x72   : > { %10753 = shalt.err (!%p10750_p2)
}
  0x73   : > { %s10754_s14 = scalar_lea.vmem %s248_s29, 4608  ;;  %p10762_p4 = scmp.lt.s32.totalorder %s248_s29, %s248_s29 }
  0x74   : > { %p10755_p5 = scmp.ne.s32.totalorder %s248_s29, %s10754_s14  ;;  %p10763_p10 = scmp.lt.s32.totalorder %s10754_s14, %s10754_s14 }
  0x76   : > { %p10757_p7 = pnand %p10755_p5, %p10980_p8  ;;  %p10764_p11 = por %p10763_p10, %p10762_p4 }
  0x78   : > { %p10758_p9 = pneg %p10757_p7 }
  0x7a   : > { %p10765_p12 = pnand %p10764_p11, %p10758_p9 }
  0x7c   : > { %10768 = shalt.err (!%p10765_p12)
}
  0x7d   : > { %10563 = dma.hbm_to_vmem [thread:$0]  (!%p10964_p6), %s12287_s5, 4608, %s248_s29, [#allocation13], %s12291_s19, %s12291_s19, %s12292_s20  }
  0x7e   : > { %s6863_s7 = sadd.s32 4294967294, %s10877_s24   ;;  %s11095_s15 = sadd.s32 1, %s10877_s24  }
  0x7f   : > { %s32_s16 = sadd.s32 1, %s10873_s23  ;;  %s29_s26 = ssub.s32 %s10877_s24, %s11095_s15 }
  0x80   : > { %p39_p8 = scmp.ne.s32.totalorder %s10873_s23, %s10869_s22  ;;  %p30_p13 = scmp.eq.s32.totalorder %s29_s26, 0 }
  0x81   : > { %p40_p0 = scmp.eq.s32.totalorder %s10877_s24, 0  ;;  %p45_p1 = scmp.ne.s32.totalorder %s10869_s22, %s10865_s21 }
  0x82   : > { %p174_p3 = scmp.eq.s32.totalorder %s10948_s27, 1  ;;  %p12297_p5 = scmp.eq.s32.totalorder %s10948_s27, 0 }
  0x83   : > { %s11107_s17 = scalar_select %p30_p13, %s10873_s23, %s32_s16  }
  0x84   : > { %p41_p2 = por %p40_p0, %p39_p8  ;;  %p11111_p7 = por %p12297_p5, %p45_p1 }
  0x85   : > { %p11115_p6 = por %p174_p3, %p39_p8  ;;  %p180_p9 = scmp.eq.s32.totalorder %s6863_s7, 1 }
  0x86   : > { %p10577_p4 = scmp.lt.s32.totalorder %s10877_s24, 2  ;;  %s261_s8 = sand.u32 1, %s10873_s23  }
  0x87   : > { %s12299_s29 = scalar_select %p11115_p6, 1, 0 }
  0x88   : > { %p11121_p10 = por %p180_p9, %p45_p1  ;;  %s10519_s11 = smul.u32 328, %s261_s8 }
  0x89   : > { %p11125_p11 = pnand %p10577_p4, %p41_p2  ;;  %s10520_s13 = smul.u32 5248, %s10877_s24 }
  0x8a   : > { %s12300_s10 = scalar_select %p11121_p10, 1, 0 }
  0x8b   : > { %s11133_s18 = scalar_lea.hbm %s12282_s0, %s10520_s13  ;;  %s265_s9 = scalar_lea.vmem [#allocation3], %s10519_s11 }
  0x8c   : > { %s272_s7 = sshll.u32 %s265_s9, 4  ;;  %s11137_s16 = scalar_lea.sflag [#allocation4], %s261_s8  ;;  %s11135_s7 = int_to_ptr.vmem [resolvable:$true] %s272_s7 }
  0x8d   : > { %s10769_s26 = scalar_lea.hbm %s11133_s18, 5248  ;;  %p10771_p8 = pneg %p11125_p11 }
  0x8e   : > { %p10770_p12 = scmp.ne.s32.totalorder %s11133_s18, %s10769_s26  ;;  %s10774_s14 = scalar_lea.hbm %s12282_s0, 10496 }
  0x8f   : > { %p10775_p1 = scmp.lt.u32.totalorder %s11133_s18, %s12282_s0  ;;  %p10776_p3 = scmp.lt.u32.totalorder %s10774_s14, %s10769_s26 }
  0x90   : > { %p10772_p13 = pnand %p10771_p8, %p10770_p12  ;;  %p10778_p5 = scmp.lt.u32.totalorder %s10769_s26, %s11133_s18 }
  0x91   : > { %p10777_p2 = por %p10776_p3, %p10775_p1 }
  0x92   : > { %p10773_p0 = pneg %p10772_p13 }
  0x93   : > { %p10779_p9 = por %p10778_p5, %p10777_p2 }
  0x95   : > { %p10780_p4 = pnand %p10779_p9, %p10773_p0 }
  0x97   : > { %10783 = shalt.err (!%p10780_p4)
}
  0x98   : > { %s10784_s8 = scalar_lea.vmem %s11135_s7, 5248  ;;  %s10886_s11 = smov [#allocation3]  }
  0x99   : > { %p10785_p12 = scmp.ne.s32.totalorder %s11135_s7, %s10784_s8  ;;  %s10789_s9 = sshll.u32 %s10886_s11, 4  ;;  %s10790_s9 = int_to_ptr.vmem [resolvable:$false] %s10789_s9 }
  0x9a   : > { %s10791_s19 = scalar_lea.vmem %s10790_s9, 10496  ;;  %p10792_p6 = scmp.lt.s32.totalorder %s11135_s7, %s10790_s9 }
  0x9b   : > { %p10787_p13 = pnand %p10785_p12, %p10771_p8  ;;  %p10793_p1 = scmp.lt.s32.totalorder %s10791_s19, %s10784_s8 }
  0x9d   : > { %p10788_p10 = pneg %p10787_p13  ;;  %p10794_p3 = por %p10793_p1, %p10792_p6 }
  0x9f   : > { %p10795_p2 = pnand %p10794_p3, %p10788_p10 }
  0xa1   : > { %10798 = shalt.err (!%p10795_p2)
}
  0xa2   : > { %s12302_s20 = smov 8   ;;  %s12303_s26 = smov 128  }
  0xa3   : > { %10567 = dma.hbm_to_vmem [thread:$0]  (!%p11125_p11), %s11133_s18, 5248, %s11135_s7, %s11137_s16, %s12303_s26, %s12303_s26, %s12302_s20  }
  0xa4   : > { %p12304_p8 = scmp.ne.s32.totalorder %s12294_s28, 0 }
  0xa5   : > { %s11171_s13 = sand.u32 (!%p12304_p8), 1, %s10869_s22  }
  0xa6   : > { %284 = sbr.rel (%p12304_p8) target bundleno = 1895 (0x767), region = 44  ;;  %s287_s14 = scalar_lea.sflag (!%p12304_p8), [#allocation4], %s11171_s13 }
  0xa7   : > { %s10521_s30 = smul.u32 (!%p12304_p8), 328, %s11171_s13 }
  0xa9   : > { %s11175_s8 = scalar_lea.vmem (!%p12304_p8), [#allocation3], %s10521_s30 }
  0xad   : > { %10844 = dma.done.wait (%p11111_p7), %s287_s14, 5248  }
  0xae   : > { %10846 = vsyncadd (%p11111_p7), %s287_s14, 4294962048  ;;  %p12305_p6 = scmp.eq.s32.totalorder %s10948_s27, 0 }
  0xb0   : > { %10848 = dma.done.wait (%p12305_p6), [#allocation7], 18448   ;;  %p12306_p10 = pmov %p12305_p6 }
  0xb1   : > { %p12307_p11 = pmov %p12305_p6 }
  0xb2   : > { %10850 = vsyncadd (%p12306_p10), [#allocation7], 4294948848 }
  0xb3   : > { %10852 = dma.done.wait (%p12307_p11), [#allocation10], 18448   ;;  %p12308_p0 = pmov %p12305_p6 }
  0xb5   : > { %10854 = vsyncadd (%p12308_p0), [#allocation10], 4294948848  ;;  %p12309_p5 = pmov %p12308_p0 }
  0xb6   : > { %p12310_p9 = pmov %p12308_p0 }
  0xb7   : > { %10856 = dma.done.wait (%p12309_p5), [#allocation13], 4608  }
  0xb8   : > { %10858 = vsyncadd (%p12310_p9), [#allocation13], 4294962688  ;;  %v428_v0 = vld [vmem:[#allocation6 + $0x80] sm:$0xff]  ;;  %v429_v1 = vld [vmem:[#allocation6 + $0x88] sm:$0xff]  ;;  %s10522_s28 = smul.u32 288, %s11171_s13  ;;  %p12311_p4 = scmp.ne.s32.totalorder %s12299_s29, 0 }
  0xb9   : > { %v430_v2 = vld [vmem:[#allocation6 + $0x90] sm:$0xff]  ;;  %v9367_v3 = vpack.c.bf16 %v429_v1, %v428_v0  ;;  %v431_v4 = vld [vmem:[#allocation6 + $0x98] sm:$0xff]  ;;  %v432_v6 = vld [vmem:[#allocation6 + $0xa0] sm:$0xff]  ;;  %s10523_s12 = smul.u32 4608, %s10948_s27  ;;  %s6729_s27 = scalar_lea.sflag [#allocation5], %s11171_s13 }
  0xba   : > { %v9371_v5 = vpack.c.bf16 %v431_v4, %v430_v2  ;;  %v433_v7 = vld [vmem:[#allocation6 + $0xa8] sm:$0xff]  ;;  %v391_v9 = vld [vmem:[%s11175_s8 + $0x1] sm:$0xff]  ;;  %s12159_s25 = scalar_lea.vmem [#allocation14], %s10522_s28  ;;  %s10889_s19 = smov [#allocation14]  }
  0xbb   : > { %9368 = vmatprep.subr.bf16.mxu0 %v9367_v3  ;;  %v9375_v8 = vpack.c.bf16 %v433_v7, %v432_v6  ;;  %v434_v10 = vld [vmem:[#allocation6 + $0xb0] sm:$0xff]  ;;  %v435_v11 = vld [vmem:[#allocation6 + $0xb8] sm:$0xff]  ;;  %7851 = vmatprep.mubr.f32.mxu0 %v391_v9  ;;  %v436_v13 = vld [vmem:[#allocation6 + $0xc0] sm:$0xff]  ;;  %s6742_s18 = sshll.u32 %s12159_s25, 4  ;;  %s12234_s11 = scalar_lea.hbm %s12288_s6, %s10523_s12  ;;  %s12236_s18 = int_to_ptr.vmem [resolvable:$true] %s6742_s18 }
  0xbc   : > { %9370 = vmatpush3.bf16.msra.mxu0 %v9367_v3  ;;  %v9379_v12 = vpack.c.bf16 %v435_v11, %v434_v10  ;;  %v437_v14 = vld [vmem:[#allocation6 + $0xc8] sm:$0xff]  ;;  %v438_v16 = vld [vmem:[#allocation6 + $0xd0] sm:$0xff]  ;;  %v439_v17 = vld [vmem:[#allocation6 + $0xd8] sm:$0xff]  ;;  %s10799_s9 = scalar_lea.vmem %s12236_s18, 4608  ;;  %s10803_s20 = sshll.u32 %s10889_s19, 4  ;;  %s10804_s20 = int_to_ptr.vmem [resolvable:$false] %s10803_s20 }
  0xbd   : > { %9372 = vmatprep.subr.bf16.mxu0 %v9371_v5  ;;  %v9383_v15 = vpack.c.bf16 %v437_v14, %v436_v13  ;;  %v9387_v18 = vpack.c.bf16 %v439_v17, %v438_v16  ;;  %v440_v19 = vld [vmem:[#allocation6 + $0xe0] sm:$0xff]  ;;  %v441_v20 = vld [vmem:[#allocation6 + $0xe8] sm:$0xff]  ;;  %v442_v22 = vld [vmem:[#allocation6 + $0xf0] sm:$0xff]  ;;  %p10800_p7 = scmp.ne.s32.totalorder %s12236_s18, %s10799_s9  ;;  %s10805_s26 = scalar_lea.vmem %s10804_s20, 9216 }
  0xbe   : > { %v9391_v21 = vpack.c.bf16 %v441_v20, %v440_v19  ;;  %v443_v23 = vld [vmem:[#allocation6 + $0xf8] sm:$0xff]  ;;  %v375_v25 = vld [vmem:[#allocation6] sm:$0xff]  ;;  %v376_v26 = vld [vmem:[#allocation6 + $0x8] sm:$0xff]  ;;  %p10806_p1 = scmp.lt.s32.totalorder %s12236_s18, %s10804_s20  ;;  %p10807_p3 = scmp.lt.s32.totalorder %s10805_s26, %s10799_s9 }
  0xbf   : > { %v9395_v24 = vpack.c.bf16 %v443_v23, %v442_v22  ;;  %v9399_v27 = vpack.c.bf16 %v376_v26, %v375_v25  ;;  %v377_v28 = vld [vmem:[#allocation6 + $0x10] sm:$0xff]  ;;  %v378_v29 = vld [vmem:[#allocation6 + $0x18] sm:$0xff]  ;;  %v379_v33 = vld [vmem:[#allocation6 + $0x20] sm:$0xff]  ;;  %p10801_p12 = pnand %p10800_p7, %p12311_p4 }
  0xc0   : > { %9374 = vmatpush3.bf16.msra.mxu0 %v9371_v5  ;;  %v392_v30 = vld [vmem:[%s11175_s8 + $0x9] sm:$0xff]  ;;  %v393_v31 = vld [vmem:[%s11175_s8 + $0x11] sm:$0xff]  ;;  %v9403_v32 = vpack.c.bf16 %v378_v29, %v377_v28  ;;  %v394_v35 = vld [vmem:[%s11175_s8 + $0x19] sm:$0xff]  ;;  %p10808_p2 = por %p10807_p3, %p10806_p1 }
  0xc1   : > { %9376 = vmatprep.subr.bf16.mxu0 %v9375_v8  ;;  %v380_v34 = vld [vmem:[#allocation6 + $0x28] sm:$0xff]  ;;  %v395_v36 = vld [vmem:[%s11175_s8 + $0x21] sm:$0xff]  ;;  %p10802_p13 = pneg %p10801_p12 }
  0xc2   : > { %v9407_v37 = vpack.c.bf16 %v380_v34, %v379_v33  ;;  %v381_v38 = vld [vmem:[#allocation6 + $0x30] sm:$0xff]  ;;  %v382_v39 = vld [vmem:[#allocation6 + $0x38] sm:$0xff]  ;;  %v383_v43 = vld [vmem:[#allocation6 + $0x40] sm:$0xff] }
  0xc3   : > { %v396_v40 = vld [vmem:[%s11175_s8 + $0x29] sm:$0xff]  ;;  %v397_v41 = vld [vmem:[%s11175_s8 + $0x31] sm:$0xff]  ;;  %v9411_v42 = vpack.c.bf16 %v382_v39, %v381_v38  ;;  %v398_v45 = vld [vmem:[%s11175_s8 + $0x39] sm:$0xff]  ;;  %p10809_p8 = pnand %p10808_p2, %p10802_p13 }
  0xc4   : > { %9378 = vmatpush3.bf16.msra.mxu0 %v9375_v8  ;;  %v384_v44 = vld [vmem:[#allocation6 + $0x48] sm:$0xff]  ;;  %v399_v46 = vld [vmem:[%s11175_s8 + $0x41] sm:$0xff] }
  0xc5   : > { %9380 = vmatprep.subr.bf16.mxu0 %v9379_v12  ;;  %v9415_v47 = vpack.c.bf16 %v384_v44, %v383_v43  ;;  %v385_v48 = vld [vmem:[#allocation6 + $0x50] sm:$0xff]  ;;  %v386_v49 = vld [vmem:[#allocation6 + $0x58] sm:$0xff]  ;;  %v387_v53 = vld [vmem:[#allocation6 + $0x60] sm:$0xff] }
  0xc6   : > { %v400_v50 = vld [vmem:[%s11175_s8 + $0x49] sm:$0xff]  ;;  %v401_v51 = vld [vmem:[%s11175_s8 + $0x51] sm:$0xff]  ;;  %v9419_v52 = vpack.c.bf16 %v386_v49, %v385_v48  ;;  %v402_v55 = vld [vmem:[%s11175_s8 + $0x59] sm:$0xff] }
  0xc7   : > { %v388_v54 = vld [vmem:[#allocation6 + $0x68] sm:$0xff]  ;;  %v403_v56 = vld [vmem:[%s11175_s8 + $0x61] sm:$0xff] }
  0xc8   : > { %9382 = vmatpush3.bf16.msra.mxu0 %v9379_v12  ;;  %v9423_v57 = vpack.c.bf16 %v388_v54, %v387_v53  ;;  %v389_v58 = vld [vmem:[#allocation6 + $0x70] sm:$0xff]  ;;  %v390_v59 = vld [vmem:[#allocation6 + $0x78] sm:$0xff]  ;;  %v971_v63 = vld [vmem:[#allocation6 + $0x100] sm:$0xff] }
  0xc9   : > { %9384 = vmatprep.subr.bf16.mxu0 %v9383_v15  ;;  %v404_v60 = vld [vmem:[%s11175_s8 + $0x69] sm:$0xff]  ;;  %v405_v61 = vld [vmem:[%s11175_s8 + $0x71] sm:$0xff]  ;;  %v9427_v62 = vpack.c.bf16 %v390_v59, %v389_v58  ;;  %v406_v1 = vld [vmem:[%s11175_s8 + $0x79] sm:$0xff] }
  0xca   : > { %v972_v0 = vld [vmem:[#allocation6 + $0x108] sm:$0xff]  ;;  %v407_v2 = vld [vmem:[%s11175_s8 + $0x81] sm:$0xff] }
  0xcb   : > { %v9431_v3 = vpack.c.bf16 %v972_v0, %v971_v63  ;;  %v408_v4 = vld [vmem:[%s11175_s8 + $0x89] sm:$0xff]  ;;  %v409_v5 = vld [vmem:[%s11175_s8 + $0x91] sm:$0xff]  ;;  %v410_v6 = vld [vmem:[%s11175_s8 + $0x99] sm:$0xff] }
  0xcc   : > { %9386 = vmatpush3.bf16.msra.mxu0 %v9383_v15  ;;  %v411_v7 = vld [vmem:[%s11175_s8 + $0xa1] sm:$0xff]  ;;  %v412_v8 = vld [vmem:[%s11175_s8 + $0xa9] sm:$0xff]  ;;  %v413_v9 = vld [vmem:[%s11175_s8 + $0xb1] sm:$0xff] }
  0xcd   : > { %9388 = vmatprep.subr.bf16.mxu0 %v9387_v18  ;;  %v414_v10 = vld [vmem:[%s11175_s8 + $0xb9] sm:$0xff]  ;;  %v415_v11 = vld [vmem:[%s11175_s8 + $0xc1] sm:$0xff]  ;;  %v416_v12 = vld [vmem:[%s11175_s8 + $0xc9] sm:$0xff] }
  0xce   : > { %v417_v13 = vld [vmem:[%s11175_s8 + $0xd1] sm:$0xff]  ;;  %v418_v14 = vld [vmem:[%s11175_s8 + $0xd9] sm:$0xff]  ;;  %v419_v15 = vld [vmem:[%s11175_s8 + $0xe1] sm:$0xff] }
  0xcf   : > { %v420_v16 = vld [vmem:[%s11175_s8 + $0xe9] sm:$0xff]  ;;  %v421_v17 = vld [vmem:[%s11175_s8 + $0xf1] sm:$0xff]  ;;  %v423_v19 = vld [vmem:[%s11175_s8 + $0x101] sm:$0xff] }
  0xd0   : > { %9390 = vmatpush3.bf16.msra.mxu0 %v9387_v18  ;;  %v422_v18 = vld [vmem:[%s11175_s8 + $0xf9] sm:$0xff]  ;;  %v424_v20 = vld [vmem:[%s11175_s8 + $0x109] sm:$0xff] }
  0xd1   : > { %9392 = vmatprep.subr.bf16.mxu0 %v9391_v21  ;;  %v426_v22 = vld [vmem:[%s11175_s8 + $0x119] sm:$0xff]  ;;  %v340_v26 = vld [vmem:[%s11175_s8 + $0x8] sm:$0xff] }
  0xd2   : > { %v339_v23 = vld [vmem:[%s11175_s8] sm:$0xff]  ;;  %v975_v29 = vld [vmem:[#allocation6 + $0x120] sm:$0xff] }
  0xd3   : > { %v974_v25 = vld [vmem:[#allocation6 + $0x118] sm:$0xff]  ;;  %v977_v34 = vld [vmem:[#allocation6 + $0x130] sm:$0xff]  ;;  %v979_v39 = vld [vmem:[#allocation6 + $0x140] sm:$0xff] }
  0xd4   : > { %9394 = vmatpush3.bf16.msra.mxu0 %v9391_v21  ;;  %v425_v21 = vld [vmem:[%s11175_s8 + $0x111] sm:$0xff]  ;;  %v356_v0 = vld [vmem:[%s11175_s8 + $0x88] sm:$0xff] }
  0xd5   : > { %9396 = vmatprep.subr.bf16.mxu0 %v9395_v24  ;;  %v981_v44 = vld [vmem:[#allocation6 + $0x150] sm:$0xff]  ;;  %v983_v49 = vld [vmem:[#allocation6 + $0x160] sm:$0xff] }
  0xd6   : > { %v985_v54 = vld [vmem:[#allocation6 + $0x170] sm:$0xff]  ;;  %v1305_v59 = vld [vmem:[#allocation6 + $0x180] sm:$0xff] }
  0xd8   : > { %9398 = vmatpush3.bf16.msra.mxu0 %v9395_v24  ;;  %v973_v24 = vld [vmem:[#allocation6 + $0x110] sm:$0xff] }
  0xd9   : > { %9400 = vmatprep.subr.bf16.mxu0 %v9399_v27  ;;  %v9435_v28 = vpack.c.bf16 %v974_v25, %v973_v24  ;;  %v1309_v25 = vld [vmem:[#allocation6 + $0x1a0] sm:$0xff] }
  0xdb   : > { %7852 = vmatmul.mubr.f32.vlgmr.msra.gmra.mrb[0].mxu0 %v392_v30  ;;  %v976_v30 = vld [vmem:[#allocation6 + $0x128] sm:$0xff] }
  0xdc   : > { %9402 = vmatpush3.bf16.msra.mxu0 %v9399_v27  ;;  %7854 = vmatprep.mubr.f32.mxu0 %v393_v31  ;;  %v341_v27 = vld [vmem:[%s11175_s8 + $0x10] sm:$0xff]  ;;  %v342_v31 = vld [vmem:[%s11175_s8 + $0x18] sm:$0xff]  ;;  %v9439_v33 = vpack.c.bf16 %v976_v30, %v975_v29 }
  0xdd   : > { %9404 = vmatprep.subr.bf16.mxu0 %v9403_v32  ;;  %v1311_v30 = vld [vmem:[#allocation6 + $0x1b0] sm:$0xff] }
  0xdf   : > { %7855 = vmatmul.mubr.f32.gmra.mrb[2].mxu0 %v394_v35  ;;  %v978_v35 = vld [vmem:[#allocation6 + $0x138] sm:$0xff] }
  0xe0   : > { %7857 = vmatprep.mubr.f32.mxu0 %v395_v36  ;;  %9406 = vmatpush3.bf16.msra.mxu0 %v9403_v32  ;;  %v343_v32 = vld [vmem:[%s11175_s8 + $0x20] sm:$0xff]  ;;  %v344_v36 = vld [vmem:[%s11175_s8 + $0x28] sm:$0xff]  ;;  %v9443_v38 = vpack.c.bf16 %v978_v35, %v977_v34 }
  0xe1   : > { %9408 = vmatprep.subr.bf16.mxu0 %v9407_v37  ;;  %v1313_v35 = vld [vmem:[#allocation6 + $0x1c0] sm:$0xff] }
  0xe3   : > { %7858 = vmatmul.mubr.f32.gmra.mrb[4].mxu0 %v396_v40  ;;  %v980_v40 = vld [vmem:[#allocation6 + $0x148] sm:$0xff] }
  0xe4   : > { %7860 = vmatprep.mubr.f32.mxu0 %v397_v41  ;;  %9410 = vmatpush3.bf16.msra.mxu0 %v9407_v37  ;;  %v345_v37 = vld [vmem:[%s11175_s8 + $0x30] sm:$0xff]  ;;  %v346_v41 = vld [vmem:[%s11175_s8 + $0x38] sm:$0xff]  ;;  %v9447_v43 = vpack.c.bf16 %v980_v40, %v979_v39 }
  0xe5   : > { %9412 = vmatprep.subr.bf16.mxu0 %v9411_v42  ;;  %v1315_v40 = vld [vmem:[#allocation6 + $0x1d0] sm:$0xff] }
  0xe7   : > { %7861 = vmatmul.mubr.f32.gmra.mrb[6].mxu0 %v398_v45  ;;  %v982_v45 = vld [vmem:[#allocation6 + $0x158] sm:$0xff] }
  0xe8   : > { %7863 = vmatprep.mubr.f32.mxu0 %v399_v46  ;;  %9414 = vmatpush3.bf16.msra.mxu0 %v9411_v42  ;;  %v347_v42 = vld [vmem:[%s11175_s8 + $0x40] sm:$0xff]  ;;  %v348_v46 = vld [vmem:[%s11175_s8 + $0x48] sm:$0xff]  ;;  %v9451_v48 = vpack.c.bf16 %v982_v45, %v981_v44 }
  0xe9   : > { %9416 = vmatprep.subr.bf16.mxu0 %v9415_v47  ;;  %v1317_v45 = vld [vmem:[#allocation6 + $0x1e0] sm:$0xff] }
  0xeb   : > { %7864 = vmatmul.mubr.f32.gmra.mrb[8].mxu0 %v400_v50  ;;  %v984_v50 = vld [vmem:[#allocation6 + $0x168] sm:$0xff] }
  0xec   : > { %7866 = vmatprep.mubr.f32.mxu0 %v401_v51  ;;  %9418 = vmatpush3.bf16.msra.mxu0 %v9415_v47  ;;  %v349_v47 = vld [vmem:[%s11175_s8 + $0x50] sm:$0xff]  ;;  %v350_v51 = vld [vmem:[%s11175_s8 + $0x58] sm:$0xff]  ;;  %v9455_v53 = vpack.c.bf16 %v984_v50, %v983_v49 }
  0xed   : > { %9420 = vmatprep.subr.bf16.mxu0 %v9419_v52  ;;  %v1319_v50 = vld [vmem:[#allocation6 + $0x1f0] sm:$0xff] }
  0xef   : > { %7867 = vmatmul.mubr.f32.gmra.mrb[10].mxu0 %v402_v55  ;;  %v986_v55 = vld [vmem:[#allocation6 + $0x178] sm:$0xff] }
  0xf0   : > { %7869 = vmatprep.mubr.f32.mxu0 %v403_v56  ;;  %9422 = vmatpush3.bf16.msra.mxu0 %v9419_v52  ;;  %v351_v52 = vld [vmem:[%s11175_s8 + $0x60] sm:$0xff]  ;;  %v352_v56 = vld [vmem:[%s11175_s8 + $0x68] sm:$0xff]  ;;  %v9459_v58 = vpack.c.bf16 %v986_v55, %v985_v54 }
  0xf1   : > { %9424 = vmatprep.subr.bf16.mxu0 %v9423_v57  ;;  %v1639_v55 = vld [vmem:[#allocation6 + $0x200] sm:$0xff] }
  0xf3   : > { %7870 = vmatmul.mubr.f32.gmra.mrb[12].mxu0 %v404_v60  ;;  %v1306_v60 = vld [vmem:[#allocation6 + $0x188] sm:$0xff] }
  0xf4   : > { %7872 = vmatprep.mubr.f32.mxu0 %v405_v61  ;;  %9426 = vmatpush3.bf16.msra.mxu0 %v9423_v57  ;;  %v353_v57 = vld [vmem:[%s11175_s8 + $0x70] sm:$0xff]  ;;  %v354_v61 = vld [vmem:[%s11175_s8 + $0x78] sm:$0xff]  ;;  %v9463_v63 = vpack.c.bf16 %v1306_v60, %v1305_v59 }
  0xf5   : > { %9428 = vmatprep.subr.bf16.mxu0 %v9427_v62  ;;  %v11328_v60 = vld [vmem:[%s11175_s8 + $0x8a] sm:$0xff] }
  0xf7   : > { %7873 = vmatmul.mubr.f32.gmra.mrb[14].mxu0 %v406_v1  ;;  %v357_v1 = vld [vmem:[%s11175_s8 + $0x90] sm:$0xff] }
  0xf8   : > { %7875 = vmatprep.mubr.f32.mxu0 %v407_v2  ;;  %9430 = vmatpush3.bf16.msra.mxu0 %v9427_v62  ;;  %v355_v62 = vld [vmem:[%s11175_s8 + $0x80] sm:$0xff]  ;;  %v358_v2 = vld [vmem:[%s11175_s8 + $0x98] sm:$0xff] }
  0xf9   : > { %9432 = vmatprep.subr.bf16.mxu0 %v9431_v3 }
  0xfb   : > { %7876 = vmatmul.mubr.f32.gmra.mrb[16].mxu0 %v408_v4  ;;  %v360_v4 = vld [vmem:[%s11175_s8 + $0xa8] sm:$0xff] }
  0xfc   : > { %7878 = vmatprep.mubr.f32.mxu0 %v409_v5  ;;  %v361_v5 = vld [vmem:[%s11175_s8 + $0xb0] sm:$0xff] }
  0xff   : > { %7879 = vmatmul.mubr.f32.gmra.mrb[18].mxu0 %v410_v6  ;;  %v362_v6 = vld [vmem:[%s11175_s8 + $0xb8] sm:$0xff] }
 0x100   : > { %7881 = vmatprep.mubr.f32.mxu0 %v411_v7  ;;  %v363_v7 = vld [vmem:[%s11175_s8 + $0xc0] sm:$0xff] }
 0x103   : > { %7882 = vmatmul.mubr.f32.gmra.mrb[20].mxu0 %v412_v8  ;;  %v364_v8 = vld [vmem:[%s11175_s8 + $0xc8] sm:$0xff] }
 0x104   : > { %7884 = vmatprep.mubr.f32.mxu0 %v413_v9  ;;  %v365_v9 = vld [vmem:[%s11175_s8 + $0xd0] sm:$0xff] }
 0x107   : > { %7885 = vmatmul.mubr.f32.gmra.mrb[22].mxu0 %v414_v10  ;;  %v366_v10 = vld [vmem:[%s11175_s8 + $0xd8] sm:$0xff] }
 0x108   : > { %7887 = vmatprep.mubr.f32.mxu0 %v415_v11  ;;  %v367_v11 = vld [vmem:[%s11175_s8 + $0xe0] sm:$0xff] }
 0x10b   : > { %7888 = vmatmul.mubr.f32.gmra.mrb[24].mxu0 %v416_v12  ;;  %v368_v12 = vld [vmem:[%s11175_s8 + $0xe8] sm:$0xff] }
 0x10c   : > { %7890 = vmatprep.mubr.f32.mxu0 %v417_v13  ;;  %v369_v13 = vld [vmem:[%s11175_s8 + $0xf0] sm:$0xff] }
 0x10f   : > { %7891 = vmatmul.mubr.f32.gmra.mrb[26].mxu0 %v418_v14  ;;  %v370_v14 = vld [vmem:[%s11175_s8 + $0xf8] sm:$0xff] }
 0x110   : > { %7893 = vmatprep.mubr.f32.mxu0 %v419_v15  ;;  %v371_v15 = vld [vmem:[%s11175_s8 + $0x100] sm:$0xff] }
 0x113   : > { %7894 = vmatmul.mubr.f32.gmra.mrb[28].mxu0 %v420_v16  ;;  %v372_v16 = vld [vmem:[%s11175_s8 + $0x108] sm:$0xff] }
 0x114   : > { %7896 = vmatprep.mubr.f32.mxu0 %v421_v17  ;;  %v373_v17 = vld [vmem:[%s11175_s8 + $0x110] sm:$0xff] }
 0x117   : > { %7897 = vmatmul.mubr.f32.gmra.mrb[30].mxu0 %v422_v18  ;;  %v374_v18 = vld [vmem:[%s11175_s8 + $0x118] sm:$0xff] }
 0x118   : > { %7899 = vmatprep.mubr.f32.mxu0 %v423_v19  ;;  %v934_v19 = vld [vmem:[%s11175_s8 + $0x2] sm:$0xff] }
 0x11b   : > { %7900 = vmatmul.mubr.f32.gmra.mrb[32].mxu0 %v424_v20  ;;  %v1307_v20 = vld [vmem:[#allocation6 + $0x190] sm:$0xff] }
 0x11c   : > { %7902 = vmatprep.mubr.f32.mxu0 %v425_v21  ;;  %v1308_v21 = vld [vmem:[#allocation6 + $0x198] sm:$0xff] }
 0x11d   : > { %v9467_v24 = vpack.c.bf16 %v1308_v21, %v1307_v20  ;;  %v1645_v21 = vld [vmem:[#allocation6 + $0x230] sm:$0xff] }
 0x11f   : > { %7903 = vmatmul.mubr.f32.gmra.mrb[34].mxu0 %v426_v22  ;;  %v935_v22 = vld [vmem:[%s11175_s8 + $0xa] sm:$0xff] }
 0x120   : > { %7937 = vmatprep.mubr.f32.mxu0 %v339_v23  ;;  %v11268_v23 = vld [vmem:[%s11175_s8 + $0x12] sm:$0xff] }
 0x123   : > { %7938 = vmatmul.mubr.f32.vlgmr.msra.gmra.mrb[0].mxu0 %v340_v26  ;;  %v1310_v26 = vld [vmem:[#allocation6 + $0x1a8] sm:$0xff] }
 0x124   : > { %9434 = vmatpush3.bf16.msra.mxu0 %v9431_v3  ;;  %7940 = vmatprep.mubr.f32.mxu0 %v341_v27  ;;  %v359_v3 = vld [vmem:[%s11175_s8 + $0xa0] sm:$0xff]  ;;  %v9471_v29 = vpack.c.bf16 %v1310_v26, %v1309_v25  ;;  %v1648_v25 = vld [vmem:[#allocation6 + $0x248] sm:$0xff] }
 0x125   : > { %9436 = vmatprep.subr.bf16.mxu0 %v9435_v28  ;;  %v11272_v27 = vld [vmem:[%s11175_s8 + $0x1a] sm:$0xff] }
 0x127   : > { %7941 = vmatmul.mubr.f32.gmra.mrb[2].mxu0 %v342_v31  ;;  %v1312_v31 = vld [vmem:[#allocation6 + $0x1b8] sm:$0xff] }
 0x128   : > { %7943 = vmatprep.mubr.f32.mxu0 %v343_v32  ;;  %9438 = vmatpush3.bf16.msra.mxu0 %v9435_v28  ;;  %v11275_v28 = vld [vmem:[%s11175_s8 + $0x22] sm:$0xff]  ;;  %v11280_v32 = vld [vmem:[%s11175_s8 + $0x2a] sm:$0xff]  ;;  %v9475_v34 = vpack.c.bf16 %v1312_v31, %v1311_v30 }
 0x129   : > { %9440 = vmatprep.subr.bf16.mxu0 %v9439_v33  ;;  %v1651_v30 = vld [vmem:[#allocation6 + $0x260] sm:$0xff]  ;;  %v1652_v31 = vld [vmem:[#allocation6 + $0x268] sm:$0xff] }
 0x12b   : > { %7944 = vmatmul.mubr.f32.gmra.mrb[4].mxu0 %v344_v36  ;;  %v1314_v36 = vld [vmem:[#allocation6 + $0x1c8] sm:$0xff] }
 0x12c   : > { %7946 = vmatprep.mubr.f32.mxu0 %v345_v37  ;;  %9442 = vmatpush3.bf16.msra.mxu0 %v9439_v33  ;;  %v11283_v33 = vld [vmem:[%s11175_s8 + $0x32] sm:$0xff]  ;;  %v11288_v37 = vld [vmem:[%s11175_s8 + $0x3a] sm:$0xff]  ;;  %v9479_v39 = vpack.c.bf16 %v1314_v36, %v1313_v35 }
 0x12d   : > { %9444 = vmatprep.subr.bf16.mxu0 %v9443_v38  ;;  %v1973_v36 = vld [vmem:[#allocation6 + $0x280] sm:$0xff] }
 0x12f   : > { %7947 = vmatmul.mubr.f32.gmra.mrb[6].mxu0 %v346_v41  ;;  %v1316_v41 = vld [vmem:[#allocation6 + $0x1d8] sm:$0xff] }
 0x130   : > { %7949 = vmatprep.mubr.f32.mxu0 %v347_v42  ;;  %9446 = vmatpush3.bf16.msra.mxu0 %v9443_v38  ;;  %v11291_v38 = vld [vmem:[%s11175_s8 + $0x42] sm:$0xff]  ;;  %v11296_v42 = vld [vmem:[%s11175_s8 + $0x4a] sm:$0xff]  ;;  %v9483_v44 = vpack.c.bf16 %v1316_v41, %v1315_v40  ;;  %v1602_v41 = vld [vmem:[%s11175_s8 + $0x13] sm:$0xff] }
 0x131   : > { %9448 = vmatprep.subr.bf16.mxu0 %v9447_v43  ;;  %v1303_v40 = vld [vmem:[%s11175_s8 + $0x12a] sm:$0xff] }
 0x133   : > { %7950 = vmatmul.mubr.f32.gmra.mrb[8].mxu0 %v348_v46  ;;  %v1318_v46 = vld [vmem:[#allocation6 + $0x1e8] sm:$0xff] }
 0x134   : > { %7952 = vmatprep.mubr.f32.mxu0 %v349_v47  ;;  %9450 = vmatpush3.bf16.msra.mxu0 %v9447_v43  ;;  %v11299_v43 = vld [vmem:[%s11175_s8 + $0x52] sm:$0xff]  ;;  %v11304_v47 = vld [vmem:[%s11175_s8 + $0x5a] sm:$0xff]  ;;  %v9487_v49 = vpack.c.bf16 %v1318_v46, %v1317_v45  ;;  %v1604_v45 = vld [vmem:[%s11175_s8 + $0x23] sm:$0xff] }
 0x135   : > { %9452 = vmatprep.subr.bf16.mxu0 %v9451_v48 }
 0x137   : > { %7953 = vmatmul.mubr.f32.gmra.mrb[10].mxu0 %v350_v51  ;;  %v1320_v51 = vld [vmem:[#allocation6 + $0x1f8] sm:$0xff] }
 0x138   : > { %7955 = vmatprep.mubr.f32.mxu0 %v351_v52  ;;  %9454 = vmatpush3.bf16.msra.mxu0 %v9451_v48  ;;  %v11307_v48 = vld [vmem:[%s11175_s8 + $0x62] sm:$0xff]  ;;  %v11312_v52 = vld [vmem:[%s11175_s8 + $0x6a] sm:$0xff]  ;;  %v9491_v54 = vpack.c.bf16 %v1320_v51, %v1319_v50  ;;  %v1606_v50 = vld [vmem:[%s11175_s8 + $0x33] sm:$0xff] }
 0x139   : > { %9456 = vmatprep.subr.bf16.mxu0 %v9455_v53 }
 0x13b   : > { %7956 = vmatmul.mubr.f32.gmra.mrb[12].mxu0 %v352_v56  ;;  %v1640_v56 = vld [vmem:[#allocation6 + $0x208] sm:$0xff] }
 0x13c   : > { %7958 = vmatprep.mubr.f32.mxu0 %v353_v57  ;;  %9458 = vmatpush3.bf16.msra.mxu0 %v9455_v53  ;;  %v11315_v53 = vld [vmem:[%s11175_s8 + $0x72] sm:$0xff]  ;;  %v11320_v57 = vld [vmem:[%s11175_s8 + $0x7a] sm:$0xff]  ;;  %v9495_v59 = vpack.c.bf16 %v1640_v56, %v1639_v55  ;;  %v1608_v55 = vld [vmem:[%s11175_s8 + $0x43] sm:$0xff] }
 0x13d   : > { %9460 = vmatprep.subr.bf16.mxu0 %v9459_v58 }
 0x13f   : > { %7959 = vmatmul.mubr.f32.gmra.mrb[14].mxu0 %v354_v61  ;;  %v11331_v61 = vld [vmem:[%s11175_s8 + $0x92] sm:$0xff] }
 0x140   : > { %7961 = vmatprep.mubr.f32.mxu0 %v355_v62  ;;  %9462 = vmatpush3.bf16.msra.mxu0 %v9459_v58  ;;  %v11323_v58 = vld [vmem:[%s11175_s8 + $0x82] sm:$0xff]  ;;  %v11336_v62 = vld [vmem:[%s11175_s8 + $0x9a] sm:$0xff] }
 0x141   : > { %9464 = vmatprep.subr.bf16.mxu0 %v9463_v63 }
 0x143   : > { %7962 = vmatmul.mubr.f32.gmra.mrb[16].mxu0 %v356_v0  ;;  %v11344_v0 = vld [vmem:[%s11175_s8 + $0xaa] sm:$0xff] }
 0x144   : > { %7964 = vmatprep.mubr.f32.mxu0 %v357_v1  ;;  %v11347_v1 = vld [vmem:[%s11175_s8 + $0xb2] sm:$0xff] }
 0x147   : > { %7965 = vmatmul.mubr.f32.gmra.mrb[18].mxu0 %v358_v2  ;;  %v11352_v2 = vld [vmem:[%s11175_s8 + $0xba] sm:$0xff] }
 0x148   : > { %7967 = vmatprep.mubr.f32.mxu0 %v359_v3  ;;  %v11355_v3 = vld [vmem:[%s11175_s8 + $0xc2] sm:$0xff] }
 0x14b   : > { %7968 = vmatmul.mubr.f32.gmra.mrb[20].mxu0 %v360_v4  ;;  %v11360_v4 = vld [vmem:[%s11175_s8 + $0xca] sm:$0xff] }
 0x14c   : > { %7970 = vmatprep.mubr.f32.mxu0 %v361_v5  ;;  %v11363_v5 = vld [vmem:[%s11175_s8 + $0xd2] sm:$0xff] }
 0x14f   : > { %7971 = vmatmul.mubr.f32.gmra.mrb[22].mxu0 %v362_v6  ;;  %v11368_v6 = vld [vmem:[%s11175_s8 + $0xda] sm:$0xff] }
 0x150   : > { %7973 = vmatprep.mubr.f32.mxu0 %v363_v7  ;;  %v11371_v7 = vld [vmem:[%s11175_s8 + $0xe2] sm:$0xff] }
 0x153   : > { %7974 = vmatmul.mubr.f32.gmra.mrb[24].mxu0 %v364_v8  ;;  %v11376_v8 = vld [vmem:[%s11175_s8 + $0xea] sm:$0xff] }
 0x154   : > { %7976 = vmatprep.mubr.f32.mxu0 %v365_v9  ;;  %v11379_v9 = vld [vmem:[%s11175_s8 + $0xf2] sm:$0xff] }
 0x157   : > { %7977 = vmatmul.mubr.f32.gmra.mrb[26].mxu0 %v366_v10  ;;  %v11384_v10 = vld [vmem:[%s11175_s8 + $0xfa] sm:$0xff] }
 0x158   : > { %7979 = vmatprep.mubr.f32.mxu0 %v367_v11  ;;  %v11387_v11 = vld [vmem:[%s11175_s8 + $0x102] sm:$0xff] }
 0x15b   : > { %7980 = vmatmul.mubr.f32.gmra.mrb[28].mxu0 %v368_v12  ;;  %v11392_v12 = vld [vmem:[%s11175_s8 + $0x10a] sm:$0xff] }
 0x15c   : > { %7982 = vmatprep.mubr.f32.mxu0 %v369_v13  ;;  %v11395_v13 = vld [vmem:[%s11175_s8 + $0x112] sm:$0xff] }
 0x15f   : > { %7983 = vmatmul.mubr.f32.gmra.mrb[30].mxu0 %v370_v14  ;;  %v11400_v14 = vld [vmem:[%s11175_s8 + $0x11a] sm:$0xff] }
 0x160   : > { %7985 = vmatprep.mubr.f32.mxu0 %v371_v15  ;;  %v1641_v15 = vld [vmem:[#allocation6 + $0x210] sm:$0xff] }
 0x163   : > { %7986 = vmatmul.mubr.f32.gmra.mrb[32].mxu0 %v372_v16  ;;  %v1642_v16 = vld [vmem:[#allocation6 + $0x218] sm:$0xff] }
 0x164   : > { %7988 = vmatprep.mubr.f32.mxu0 %v373_v17  ;;  %v9499_v17 = vpack.c.bf16 %v1642_v16, %v1641_v15  ;;  %v1617_v15 = vld [vmem:[%s11175_s8 + $0x8b] sm:$0xff]  ;;  %v1618_v16 = vld [vmem:[%s11175_s8 + $0x93] sm:$0xff] }
 0x167   : > { %7989 = vmatmul.mubr.f32.gmra.mrb[34].mxu0 %v374_v18  ;;  %v1643_v18 = vld [vmem:[#allocation6 + $0x220] sm:$0xff] }
 0x168   : > { %8023 = vmatprep.mubr.f32.mxu0 %v934_v19  ;;  %v1644_v19 = vld [vmem:[#allocation6 + $0x228] sm:$0xff] }
 0x169   : > { %v9503_v20 = vpack.c.bf16 %v1644_v19, %v1643_v18  ;;  %v1619_v18 = vld [vmem:[%s11175_s8 + $0x9b] sm:$0xff]  ;;  %v1620_v19 = vld [vmem:[%s11175_s8 + $0xa3] sm:$0xff] }
 0x16b   : > { %8024 = vmatmul.mubr.f32.vlgmr.msra.gmra.mrb[0].mxu0 %v935_v22  ;;  %v1646_v22 = vld [vmem:[#allocation6 + $0x238] sm:$0xff] }
 0x16c   : > { %9466 = vmatpush3.bf16.msra.mxu0 %v9463_v63  ;;  %8026 = vmatprep.mubr.f32.mxu0 %v11268_v23  ;;  %v11339_v63 = vld [vmem:[%s11175_s8 + $0xa2] sm:$0xff] }
 0x16d   : > { %9468 = vmatprep.subr.bf16.mxu0 %v9467_v24 }
 0x16f   : > { %8027 = vmatmul.mubr.f32.gmra.mrb[2].mxu0 %v11272_v27 }
 0x170   : > { %8029 = vmatprep.mubr.f32.mxu0 %v11275_v28  ;;  %9470 = vmatpush3.bf16.msra.mxu0 %v9467_v24  ;;  %v9507_v24 = vpack.c.bf16 %v1646_v22, %v1645_v21  ;;  %v1622_v21 = vld [vmem:[%s11175_s8 + $0xb3] sm:$0xff]  ;;  %v1623_v22 = vld [vmem:[%s11175_s8 + $0xbb] sm:$0xff] }
 0x171   : > { %9472 = vmatprep.subr.bf16.mxu0 %v9471_v29 }
 0x173   : > { %8030 = vmatmul.mubr.f32.gmra.mrb[4].mxu0 %v11280_v32 }
 0x174   : > { %8032 = vmatprep.mubr.f32.mxu0 %v11283_v33  ;;  %9474 = vmatpush3.bf16.msra.mxu0 %v9471_v29 }
 0x175   : > { %9476 = vmatprep.subr.bf16.mxu0 %v9475_v34 }
 0x177   : > { %8033 = vmatmul.mubr.f32.gmra.mrb[6].mxu0 %v11288_v37 }
 0x178   : > { %8035 = vmatprep.mubr.f32.mxu0 %v11291_v38  ;;  %9478 = vmatpush3.bf16.msra.mxu0 %v9475_v34  ;;  %v1654_v34 = vld [vmem:[#allocation6 + $0x278] sm:$0xff] }
 0x179   : > { %9480 = vmatprep.subr.bf16.mxu0 %v9479_v39 }
 0x17b   : > { %8036 = vmatmul.mubr.f32.gmra.mrb[8].mxu0 %v11296_v42 }
 0x17c   : > { %8038 = vmatprep.mubr.f32.mxu0 %v11299_v43  ;;  %9482 = vmatpush3.bf16.msra.mxu0 %v9479_v39  ;;  %v1302_v39 = vld [vmem:[%s11175_s8 + $0x122] sm:$0xff] }
 0x17d   : > { %9484 = vmatprep.subr.bf16.mxu0 %v9483_v44 }
 0x17f   : > { %8039 = vmatmul.mubr.f32.gmra.mrb[10].mxu0 %v11304_v47 }
 0x180   : > { %8041 = vmatprep.mubr.f32.mxu0 %v11307_v48  ;;  %9486 = vmatpush3.bf16.msra.mxu0 %v9483_v44  ;;  %v1603_v44 = vld [vmem:[%s11175_s8 + $0x1b] sm:$0xff] }
 0x181   : > { %9488 = vmatprep.subr.bf16.mxu0 %v9487_v49 }
 0x183   : > { %8042 = vmatmul.mubr.f32.gmra.mrb[12].mxu0 %v11312_v52 }
 0x184   : > { %8044 = vmatprep.mubr.f32.mxu0 %v11315_v53  ;;  %9490 = vmatpush3.bf16.msra.mxu0 %v9487_v49  ;;  %v1605_v49 = vld [vmem:[%s11175_s8 + $0x2b] sm:$0xff] }
 0x185   : > { %9492 = vmatprep.subr.bf16.mxu0 %v9491_v54 }
 0x187   : > { %8045 = vmatmul.mubr.f32.gmra.mrb[14].mxu0 %v11320_v57 }
 0x188   : > { %8047 = vmatprep.mubr.f32.mxu0 %v11323_v58  ;;  %9494 = vmatpush3.bf16.msra.mxu0 %v9491_v54  ;;  %v1607_v54 = vld [vmem:[%s11175_s8 + $0x3b] sm:$0xff] }
 0x189   : > { %9496 = vmatprep.subr.bf16.mxu0 %v9495_v59 }
 0x18b   : > { %8048 = vmatmul.mubr.f32.gmra.mrb[16].mxu0 %v11328_v60 }
 0x18c   : > { %8050 = vmatprep.mubr.f32.mxu0 %v11331_v61 }
 0x18f   : > { %8051 = vmatmul.mubr.f32.gmra.mrb[18].mxu0 %v11336_v62 }
 0x190   : > { %8053 = vmatprep.mubr.f32.mxu0 %v11339_v63 }
 0x193   : > { %8054 = vmatmul.mubr.f32.gmra.mrb[20].mxu0 %v11344_v0 }
 0x194   : > { %8056 = vmatprep.mubr.f32.mxu0 %v11347_v1 }
 0x197   : > { %8057 = vmatmul.mubr.f32.gmra.mrb[22].mxu0 %v11352_v2 }
 0x198   : > { %8059 = vmatprep.mubr.f32.mxu0 %v11355_v3 }
 0x19b   : > { %8060 = vmatmul.mubr.f32.gmra.mrb[24].mxu0 %v11360_v4 }
 0x19c   : > { %8062 = vmatprep.mubr.f32.mxu0 %v11363_v5 }
 0x19f   : > { %8063 = vmatmul.mubr.f32.gmra.mrb[26].mxu0 %v11368_v6 }
 0x1a0   : > { %8065 = vmatprep.mubr.f32.mxu0 %v11371_v7 }
 0x1a3   : > { %8066 = vmatmul.mubr.f32.gmra.mrb[28].mxu0 %v11376_v8 }
 0x1a4   : > { %8068 = vmatprep.mubr.f32.mxu0 %v11379_v9 }
 0x1a7   : > { %8069 = vmatmul.mubr.f32.gmra.mrb[30].mxu0 %v11384_v10 }
 0x1a8   : > { %8071 = vmatprep.mubr.f32.mxu0 %v11387_v11 }
 0x1ab   : > { %8072 = vmatmul.mubr.f32.gmra.mrb[32].mxu0 %v11392_v12 }
 0x1ac   : > { %8074 = vmatprep.mubr.f32.mxu0 %v11395_v13 }
 0x1af   : > { %8075 = vmatmul.mubr.f32.gmra.mrb[34].mxu0 %v11400_v14 }
 0x1b0   : > { %8109 = vmatprep.mubr.f32.mxu0 %v11268_v23  ;;  %v1647_v23 = vld [vmem:[#allocation6 + $0x240] sm:$0xff] }
 0x1b1   : > { %v9511_v26 = vpack.c.bf16 %v1648_v25, %v1647_v23  ;;  %v1625_v23 = vld [vmem:[%s11175_s8 + $0xcb] sm:$0xff]  ;;  %v1626_v25 = vld [vmem:[%s11175_s8 + $0xd3] sm:$0xff] }
 0x1b3   : > { %8110 = vmatmul.mubr.f32.vlgmr.msra.gmra.mrb[0].mxu0 %v11272_v27  ;;  %v1649_v27 = vld [vmem:[#allocation6 + $0x250] sm:$0xff] }
 0x1b4   : > { %9498 = vmatpush3.bf16.msra.mxu0 %v9495_v59  ;;  %8112 = vmatprep.mubr.f32.mxu0 %v11275_v28  ;;  %v1650_v28 = vld [vmem:[#allocation6 + $0x258] sm:$0xff] }
 0x1b5   : > { %9500 = vmatprep.subr.bf16.mxu0 %v9499_v17  ;;  %v9515_v29 = vpack.c.bf16 %v1650_v28, %v1649_v27  ;;  %v1609_v59 = vld [vmem:[%s11175_s8 + $0x4b] sm:$0xff]  ;;  %v1628_v27 = vld [vmem:[%s11175_s8 + $0xe3] sm:$0xff] }
 0x1b6   : > { %v1629_v28 = vld [vmem:[%s11175_s8 + $0xeb] sm:$0xff] }
 0x1b7   : > { %8113 = vmatmul.mubr.f32.gmra.mrb[2].mxu0 %v11280_v32  ;;  %v9519_v32 = vpack.c.bf16 %v1652_v31, %v1651_v30  ;;  %v1631_v30 = vld [vmem:[%s11175_s8 + $0xfb] sm:$0xff]  ;;  %v1632_v31 = vld [vmem:[%s11175_s8 + $0x103] sm:$0xff] }
 0x1b8   : > { %8115 = vmatprep.mubr.f32.mxu0 %v11283_v33  ;;  %9502 = vmatpush3.bf16.msra.mxu0 %v9499_v17  ;;  %v1653_v33 = vld [vmem:[#allocation6 + $0x270] sm:$0xff] }
 0x1b9   : > { %9504 = vmatprep.subr.bf16.mxu0 %v9503_v20  ;;  %v9523_v35 = vpack.c.bf16 %v1654_v34, %v1653_v33  ;;  %v1634_v33 = vld [vmem:[%s11175_s8 + $0x113] sm:$0xff]  ;;  %v1635_v34 = vld [vmem:[%s11175_s8 + $0x11b] sm:$0xff] }
 0x1bb   : > { %8116 = vmatmul.mubr.f32.gmra.mrb[4].mxu0 %v11288_v37  ;;  %v1974_v37 = vld [vmem:[#allocation6 + $0x288] sm:$0xff] }
 0x1bc   : > { %8118 = vmatprep.mubr.f32.mxu0 %v11291_v38  ;;  %9506 = vmatpush3.bf16.msra.mxu0 %v9503_v20  ;;  %v9527_v38 = vpack.c.bf16 %v1974_v37, %v1973_v36  ;;  %v1621_v20 = vld [vmem:[%s11175_s8 + $0xab] sm:$0xff]  ;;  %v1936_v37 = vld [vmem:[%s11175_s8 + $0x14] sm:$0xff] }
 0x1bd   : > { %9508 = vmatprep.subr.bf16.mxu0 %v9507_v24  ;;  %v1637_v36 = vld [vmem:[%s11175_s8 + $0x12b] sm:$0xff] }
 0x1bf   : > { %8119 = vmatmul.mubr.f32.gmra.mrb[6].mxu0 %v11296_v42  ;;  %v1975_v42 = vld [vmem:[#allocation6 + $0x290] sm:$0xff] }
 0x1c0   : > { %8121 = vmatprep.mubr.f32.mxu0 %v11299_v43  ;;  %9510 = vmatpush3.bf16.msra.mxu0 %v9507_v24  ;;  %v1976_v43 = vld [vmem:[#allocation6 + $0x298] sm:$0xff] }
 0x1c1   : > { %9512 = vmatprep.subr.bf16.mxu0 %v9511_v26  ;;  %v9531_v46 = vpack.c.bf16 %v1976_v43, %v1975_v42  ;;  %v1624_v24 = vld [vmem:[%s11175_s8 + $0xc3] sm:$0xff] }
 0x1c2   : > { %v2311_v43 = vld [vmem:[#allocation6 + $0x320] sm:$0xff] }
 0x1c3   : > { %8122 = vmatmul.mubr.f32.gmra.mrb[8].mxu0 %v11304_v47  ;;  %v1977_v47 = vld [vmem:[#allocation6 + $0x2a0] sm:$0xff] }
 0x1c4   : > { %8124 = vmatprep.mubr.f32.mxu0 %v11307_v48  ;;  %9514 = vmatpush3.bf16.msra.mxu0 %v9511_v26  ;;  %v1978_v48 = vld [vmem:[#allocation6 + $0x2a8] sm:$0xff] }
 0x1c5   : > { %9516 = vmatprep.subr.bf16.mxu0 %v9515_v29  ;;  %v9535_v51 = vpack.c.bf16 %v1978_v48, %v1977_v47  ;;  %v1627_v26 = vld [vmem:[%s11175_s8 + $0xdb] sm:$0xff] }
 0x1c6   : > { %v2313_v48 = vld [vmem:[#allocation6 + $0x330] sm:$0xff] }
 0x1c7   : > { %8125 = vmatmul.mubr.f32.gmra.mrb[10].mxu0 %v11312_v52  ;;  %v1979_v52 = vld [vmem:[#allocation6 + $0x2b0] sm:$0xff] }
 0x1c8   : > { %8127 = vmatprep.mubr.f32.mxu0 %v11315_v53  ;;  %9518 = vmatpush3.bf16.msra.mxu0 %v9515_v29  ;;  %v1980_v53 = vld [vmem:[#allocation6 + $0x2b8] sm:$0xff]  ;;  %v1630_v29 = vld [vmem:[%s11175_s8 + $0xf3] sm:$0xff] }
 0x1c9   : > { %9520 = vmatprep.subr.bf16.mxu0 %v9519_v32  ;;  %v9539_v56 = vpack.c.bf16 %v1980_v53, %v1979_v52  ;;  %v2315_v53 = vld [vmem:[#allocation6 + $0x340] sm:$0xff] }
 0x1cb   : > { %8128 = vmatmul.mubr.f32.gmra.mrb[12].mxu0 %v11320_v57  ;;  %v1981_v57 = vld [vmem:[#allocation6 + $0x2c0] sm:$0xff] }
 0x1cc   : > { %8130 = vmatprep.mubr.f32.mxu0 %v11323_v58  ;;  %9522 = vmatpush3.bf16.msra.mxu0 %v9519_v32  ;;  %v1982_v58 = vld [vmem:[#allocation6 + $0x2c8] sm:$0xff] }
 0x1cd   : > { %9524 = vmatprep.subr.bf16.mxu0 %v9523_v35  ;;  %v1633_v32 = vld [vmem:[%s11175_s8 + $0x10b] sm:$0xff] }
 0x1cf   : > { %8131 = vmatmul.mubr.f32.gmra.mrb[14].mxu0 %v11328_v60  ;;  %v1610_v60 = vld [vmem:[%s11175_s8 + $0x53] sm:$0xff] }
 0x1d0   : > { %8133 = vmatprep.mubr.f32.mxu0 %v11331_v61  ;;  %9526 = vmatpush3.bf16.msra.mxu0 %v9523_v35  ;;  %v9543_v61 = vpack.c.bf16 %v1982_v58, %v1981_v57  ;;  %v1636_v35 = vld [vmem:[%s11175_s8 + $0x123] sm:$0xff] }
 0x1d1   : > { %9528 = vmatprep.subr.bf16.mxu0 %v9527_v38  ;;  %v2317_v58 = vld [vmem:[#allocation6 + $0x350] sm:$0xff] }
 0x1d3   : > { %8134 = vmatmul.mubr.f32.gmra.mrb[16].mxu0 %v11336_v62  ;;  %v1983_v62 = vld [vmem:[#allocation6 + $0x2d0] sm:$0xff] }
 0x1d4   : > { %8136 = vmatprep.mubr.f32.mxu0 %v11339_v63  ;;  %v1984_v63 = vld [vmem:[#allocation6 + $0x2d8] sm:$0xff] }
 0x1d7   : > { %8137 = vmatmul.mubr.f32.gmra.mrb[18].mxu0 %v11344_v0  ;;  %v1611_v0 = vld [vmem:[%s11175_s8 + $0x5b] sm:$0xff] }
 0x1d8   : > { %8139 = vmatprep.mubr.f32.mxu0 %v11347_v1  ;;  %v1612_v1 = vld [vmem:[%s11175_s8 + $0x63] sm:$0xff] }
 0x1db   : > { %8140 = vmatmul.mubr.f32.gmra.mrb[20].mxu0 %v11352_v2  ;;  %v9547_v2 = vpack.c.bf16 %v1984_v63, %v1983_v62  ;;  %v2319_v63 = vld [vmem:[#allocation6 + $0x360] sm:$0xff] }
 0x1dc   : > { %8142 = vmatprep.mubr.f32.mxu0 %v11355_v3  ;;  %v1985_v3 = vld [vmem:[#allocation6 + $0x2e0] sm:$0xff] }
 0x1df   : > { %8143 = vmatmul.mubr.f32.gmra.mrb[22].mxu0 %v11360_v4  ;;  %v1986_v4 = vld [vmem:[#allocation6 + $0x2e8] sm:$0xff] }
 0x1e0   : > { %8145 = vmatprep.mubr.f32.mxu0 %v11363_v5  ;;  %v1613_v5 = vld [vmem:[%s11175_s8 + $0x6b] sm:$0xff] }
 0x1e3   : > { %8146 = vmatmul.mubr.f32.gmra.mrb[24].mxu0 %v11368_v6  ;;  %v1614_v6 = vld [vmem:[%s11175_s8 + $0x73] sm:$0xff] }
 0x1e4   : > { %8148 = vmatprep.mubr.f32.mxu0 %v11371_v7  ;;  %v9551_v7 = vpack.c.bf16 %v1986_v4, %v1985_v3  ;;  %v2321_v4 = vld [vmem:[#allocation6 + $0x370] sm:$0xff] }
 0x1e7   : > { %8149 = vmatmul.mubr.f32.gmra.mrb[26].mxu0 %v11376_v8  ;;  %v1987_v8 = vld [vmem:[#allocation6 + $0x2f0] sm:$0xff] }
 0x1e8   : > { %8151 = vmatprep.mubr.f32.mxu0 %v11379_v9  ;;  %v1988_v9 = vld [vmem:[#allocation6 + $0x2f8] sm:$0xff] }
 0x1eb   : > { %8152 = vmatmul.mubr.f32.gmra.mrb[28].mxu0 %v11384_v10  ;;  %v1615_v10 = vld [vmem:[%s11175_s8 + $0x7b] sm:$0xff] }
 0x1ec   : > { %8154 = vmatprep.mubr.f32.mxu0 %v11387_v11  ;;  %v1616_v11 = vld [vmem:[%s11175_s8 + $0x83] sm:$0xff] }
 0x1ef   : > { %8155 = vmatmul.mubr.f32.gmra.mrb[30].mxu0 %v11392_v12  ;;  %v9555_v12 = vpack.c.bf16 %v1988_v9, %v1987_v8  ;;  %v2641_v9 = vld [vmem:[#allocation6 + $0x380] sm:$0xff] }
 0x1f0   : > { %8157 = vmatprep.mubr.f32.mxu0 %v11395_v13  ;;  %v2307_v13 = vld [vmem:[#allocation6 + $0x300] sm:$0xff] }
 0x1f3   : > { %8158 = vmatmul.mubr.f32.gmra.mrb[32].mxu0 %v11400_v14  ;;  %v2308_v14 = vld [vmem:[#allocation6 + $0x308] sm:$0xff] }
 0x1f4   : > { %8160 = vmatprep.mubr.f32.mxu0 %v1302_v39  ;;  %v9559_v17 = vpack.c.bf16 %v2308_v14, %v2307_v13  ;;  %v2310_v39 = vld [vmem:[#allocation6 + $0x318] sm:$0xff] }
 0x1f5   : > { %v11538_v14 = vld [vmem:[%s11175_s8 + $0x9c] sm:$0xff] }
 0x1f7   : > { %8161 = vmatmul.mubr.f32.gmra.mrb[34].mxu0 %v1303_v40  ;;  %v1937_v40 = vld [vmem:[%s11175_s8 + $0x1c] sm:$0xff] }
 0x1f8   : > { %8195 = vmatprep.mubr.f32.mxu0 %v1602_v41  ;;  %v11478_v41 = vld [vmem:[%s11175_s8 + $0x24] sm:$0xff] }
 0x1fb   : > { %8196 = vmatmul.mubr.f32.vlgmr.msra.gmra.mrb[0].mxu0 %v1603_v44  ;;  %v2312_v44 = vld [vmem:[#allocation6 + $0x328] sm:$0xff] }
 0x1fc   : > { %9530 = vmatpush3.bf16.msra.mxu0 %v9527_v38  ;;  %8198 = vmatprep.mubr.f32.mxu0 %v1604_v45  ;;  %v2309_v38 = vld [vmem:[#allocation6 + $0x310] sm:$0xff]  ;;  %v11482_v45 = vld [vmem:[%s11175_s8 + $0x2c] sm:$0xff]  ;;  %v9567_v47 = vpack.c.bf16 %v2312_v44, %v2311_v43 }
 0x1fd   : > { %9532 = vmatprep.subr.bf16.mxu0 %v9531_v46  ;;  %v9563_v42 = vpack.c.bf16 %v2310_v39, %v2309_v38  ;;  %v2647_v39 = vld [vmem:[#allocation6 + $0x3b0] sm:$0xff]  ;;  %v2650_v43 = vld [vmem:[#allocation6 + $0x3c8] sm:$0xff] }
 0x1ff   : > { %8199 = vmatmul.mubr.f32.gmra.mrb[2].mxu0 %v1605_v49  ;;  %v2314_v49 = vld [vmem:[#allocation6 + $0x338] sm:$0xff] }
 0x200   : > { %8201 = vmatprep.mubr.f32.mxu0 %v1606_v50  ;;  %9534 = vmatpush3.bf16.msra.mxu0 %v9531_v46  ;;  %v11485_v46 = vld [vmem:[%s11175_s8 + $0x34] sm:$0xff]  ;;  %v11490_v50 = vld [vmem:[%s11175_s8 + $0x3c] sm:$0xff]  ;;  %v9571_v52 = vpack.c.bf16 %v2314_v49, %v2313_v48 }
 0x201   : > { %9536 = vmatprep.subr.bf16.mxu0 %v9535_v51  ;;  %v2653_v48 = vld [vmem:[#allocation6 + $0x3e0] sm:$0xff]  ;;  %v2654_v49 = vld [vmem:[#allocation6 + $0x3e8] sm:$0xff] }
 0x203   : > { %8202 = vmatmul.mubr.f32.gmra.mrb[4].mxu0 %v1607_v54  ;;  %v2316_v54 = vld [vmem:[#allocation6 + $0x348] sm:$0xff] }
 0x204   : > { %8204 = vmatprep.mubr.f32.mxu0 %v1608_v55  ;;  %9538 = vmatpush3.bf16.msra.mxu0 %v9535_v51  ;;  %v11493_v51 = vld [vmem:[%s11175_s8 + $0x44] sm:$0xff]  ;;  %v11498_v55 = vld [vmem:[%s11175_s8 + $0x4c] sm:$0xff]  ;;  %v9575_v57 = vpack.c.bf16 %v2316_v54, %v2315_v53 }
 0x205   : > { %9540 = vmatprep.subr.bf16.mxu0 %v9539_v56  ;;  %v2975_v54 = vld [vmem:[#allocation6 + $0x400] sm:$0xff] }
 0x207   : > { %8205 = vmatmul.mubr.f32.gmra.mrb[6].mxu0 %v1609_v59  ;;  %v2318_v59 = vld [vmem:[#allocation6 + $0x358] sm:$0xff] }
 0x208   : > { %8207 = vmatprep.mubr.f32.mxu0 %v1610_v60  ;;  %9542 = vmatpush3.bf16.msra.mxu0 %v9539_v56  ;;  %v11501_v56 = vld [vmem:[%s11175_s8 + $0x54] sm:$0xff]  ;;  %v11506_v60 = vld [vmem:[%s11175_s8 + $0x5c] sm:$0xff]  ;;  %v9579_v62 = vpack.c.bf16 %v2318_v59, %v2317_v58  ;;  %v10887_v58 = vmov 0  }
 0x209   : > { %9544 = vmatprep.subr.bf16.mxu0 %v9543_v61  ;;  %10627 = vset.pattern.permute.xlu0 %v10887_v58  ;;  %v3353_v59 = vld [vmem:[#allocation12 + $0x10] sm:$0xff] }
 0x20a   : > { %10628 = vset.pattern.permute.xlu1 %v10887_v58 }
 0x20b   : > { %8208 = vmatmul.mubr.f32.gmra.mrb[8].mxu0 %v1611_v0  ;;  %v2320_v0 = vld [vmem:[#allocation6 + $0x368] sm:$0xff]  ;;  %3399 = vperm.xlu1 %10628, %v3353_v59   ;;  %v2616_v59 = vld [vmem:[%s11175_s8 + $0x85] sm:$0xff] }
 0x20c   : > { %8210 = vmatprep.mubr.f32.mxu0 %v1612_v1  ;;  %9546 = vmatpush3.bf16.msra.mxu0 %v9543_v61  ;;  %v11509_v61 = vld [vmem:[%s11175_s8 + $0x64] sm:$0xff]  ;;  %v11514_v1 = vld [vmem:[%s11175_s8 + $0x6c] sm:$0xff]  ;;  %v9583_v3 = vpack.c.bf16 %v2320_v0, %v2319_v63  ;;  %v3356_v63 = vld [vmem:[#allocation12 + $0x28] sm:$0xff] }
 0x20d   : > { %9548 = vmatprep.subr.bf16.mxu0 %v9547_v2  ;;  %v3357_v0 = vld [vmem:[#allocation12 + $0x30] sm:$0xff] }
 0x20f   : > { %8211 = vmatmul.mubr.f32.gmra.mrb[10].mxu0 %v1613_v5  ;;  %v2322_v5 = vld [vmem:[#allocation6 + $0x378] sm:$0xff] }
 0x210   : > { %8213 = vmatprep.mubr.f32.mxu0 %v1614_v6  ;;  %9550 = vmatpush3.bf16.msra.mxu0 %v9547_v2  ;;  %v11517_v2 = vld [vmem:[%s11175_s8 + $0x74] sm:$0xff]  ;;  %v11522_v6 = vld [vmem:[%s11175_s8 + $0x7c] sm:$0xff]  ;;  %v9587_v8 = vpack.c.bf16 %v2322_v5, %v2321_v4  ;;  %v3362_v5 = vld [vmem:[#allocation12 + $0x58] sm:$0xff] }
 0x211   : > { %9552 = vmatprep.subr.bf16.mxu0 %v9551_v7  ;;  %v3361_v4 = vld [vmem:[#allocation12 + $0x50] sm:$0xff] }
 0x213   : > { %8214 = vmatmul.mubr.f32.gmra.mrb[12].mxu0 %v1615_v10  ;;  %v2642_v10 = vld [vmem:[#allocation6 + $0x388] sm:$0xff] }
 0x214   : > { %8216 = vmatprep.mubr.f32.mxu0 %v1616_v11  ;;  %9554 = vmatpush3.bf16.msra.mxu0 %v9551_v7  ;;  %v11525_v7 = vld [vmem:[%s11175_s8 + $0x84] sm:$0xff]  ;;  %v11530_v11 = vld [vmem:[%s11175_s8 + $0x8c] sm:$0xff]  ;;  %v9591_v13 = vpack.c.bf16 %v2642_v10, %v2641_v9  ;;  %v2304_v9 = vld [vmem:[%s11175_s8 + $0x134] sm:$0xff] }
 0x215   : > { %9556 = vmatprep.subr.bf16.mxu0 %v9555_v12  ;;  %v3366_v10 = vld [vmem:[#allocation12 + $0x78] sm:$0xff] }
 0x217   : > { %8217 = vmatmul.mubr.f32.gmra.mrb[14].mxu0 %v1617_v15  ;;  %v11541_v15 = vld [vmem:[%s11175_s8 + $0xa4] sm:$0xff] }
 0x218   : > { %8219 = vmatprep.mubr.f32.mxu0 %v1618_v16  ;;  %9558 = vmatpush3.bf16.msra.mxu0 %v9555_v12  ;;  %v11533_v12 = vld [vmem:[%s11175_s8 + $0x94] sm:$0xff]  ;;  %v11546_v16 = vld [vmem:[%s11175_s8 + $0xac] sm:$0xff] }
 0x219   : > { %9560 = vmatprep.subr.bf16.mxu0 %v9559_v17 }
 0x21b   : > { %8220 = vmatmul.mubr.f32.gmra.mrb[16].mxu0 %v1619_v18  ;;  %v11554_v18 = vld [vmem:[%s11175_s8 + $0xbc] sm:$0xff] }
 0x21c   : > { %8222 = vmatprep.mubr.f32.mxu0 %v1620_v19  ;;  %v11557_v19 = vld [vmem:[%s11175_s8 + $0xc4] sm:$0xff] }
 0x21f   : > { %8223 = vmatmul.mubr.f32.gmra.mrb[18].mxu0 %v1621_v20  ;;  %v11562_v20 = vld [vmem:[%s11175_s8 + $0xcc] sm:$0xff] }
 0x220   : > { %8225 = vmatprep.mubr.f32.mxu0 %v1622_v21  ;;  %v11565_v21 = vld [vmem:[%s11175_s8 + $0xd4] sm:$0xff] }
 0x223   : > { %8226 = vmatmul.mubr.f32.gmra.mrb[20].mxu0 %v1623_v22  ;;  %v11570_v22 = vld [vmem:[%s11175_s8 + $0xdc] sm:$0xff] }
 0x224   : > { %8228 = vmatprep.mubr.f32.mxu0 %v1624_v24  ;;  %v11573_v24 = vld [vmem:[%s11175_s8 + $0xe4] sm:$0xff] }
 0x227   : > { %8229 = vmatmul.mubr.f32.gmra.mrb[22].mxu0 %v1625_v23  ;;  %v11578_v23 = vld [vmem:[%s11175_s8 + $0xec] sm:$0xff] }
 0x228   : > { %8231 = vmatprep.mubr.f32.mxu0 %v1626_v25  ;;  %v11581_v25 = vld [vmem:[%s11175_s8 + $0xf4] sm:$0xff] }
 0x22b   : > { %8232 = vmatmul.mubr.f32.gmra.mrb[24].mxu0 %v1627_v26  ;;  %v11586_v26 = vld [vmem:[%s11175_s8 + $0xfc] sm:$0xff] }
 0x22c   : > { %8234 = vmatprep.mubr.f32.mxu0 %v1628_v27  ;;  %v11589_v27 = vld [vmem:[%s11175_s8 + $0x104] sm:$0xff] }
 0x22f   : > { %8235 = vmatmul.mubr.f32.gmra.mrb[26].mxu0 %v1629_v28  ;;  %v11594_v28 = vld [vmem:[%s11175_s8 + $0x10c] sm:$0xff] }
 0x230   : > { %8237 = vmatprep.mubr.f32.mxu0 %v1630_v29  ;;  %v11597_v29 = vld [vmem:[%s11175_s8 + $0x114] sm:$0xff] }
 0x233   : > { %8238 = vmatmul.mubr.f32.gmra.mrb[28].mxu0 %v1631_v30  ;;  %v11602_v30 = vld [vmem:[%s11175_s8 + $0x11c] sm:$0xff] }
 0x234   : > { %8240 = vmatprep.mubr.f32.mxu0 %v1632_v31  ;;  %v11605_v31 = vld [vmem:[%s11175_s8 + $0x124] sm:$0xff] }
 0x237   : > { %8241 = vmatmul.mubr.f32.gmra.mrb[30].mxu0 %v1633_v32  ;;  %v11610_v32 = vld [vmem:[%s11175_s8 + $0x12c] sm:$0xff] }
 0x238   : > { %8243 = vmatprep.mubr.f32.mxu0 %v1634_v33  ;;  %v2643_v33 = vld [vmem:[#allocation6 + $0x390] sm:$0xff] }
 0x23b   : > { %8244 = vmatmul.mubr.f32.gmra.mrb[32].mxu0 %v1635_v34  ;;  %v2644_v34 = vld [vmem:[#allocation6 + $0x398] sm:$0xff] }
 0x23c   : > { %8246 = vmatprep.mubr.f32.mxu0 %v1636_v35  ;;  %v9595_v35 = vpack.c.bf16 %v2644_v34, %v2643_v33  ;;  %v2610_v33 = vld [vmem:[%s11175_s8 + $0x55] sm:$0xff] }
 0x23f   : > { %8247 = vmatmul.mubr.f32.gmra.mrb[34].mxu0 %v1637_v36  ;;  %v2645_v36 = vld [vmem:[#allocation6 + $0x3a0] sm:$0xff] }
 0x240   : > { %8281 = vmatprep.mubr.f32.mxu0 %v1936_v37  ;;  %v2646_v37 = vld [vmem:[#allocation6 + $0x3a8] sm:$0xff] }
 0x241   : > { %v9599_v38 = vpack.c.bf16 %v2646_v37, %v2645_v36  ;;  %v2984_v36 = vld [vmem:[#allocation6 + $0x448] sm:$0xff]  ;;  %v3374_v37 = vld [vmem:[#allocation12 + $0xb8] sm:$0xff] }
 0x243   : > { %8282 = vmatmul.mubr.f32.vlgmr.msra.gmra.mrb[0].mxu0 %v1937_v40  ;;  %v2648_v40 = vld [vmem:[#allocation6 + $0x3b8] sm:$0xff] }
 0x244   : > { %9562 = vmatpush3.bf16.msra.mxu0 %v9559_v17  ;;  %8284 = vmatprep.mubr.f32.mxu0 %v11478_v41  ;;  %v11549_v17 = vld [vmem:[%s11175_s8 + $0xb4] sm:$0xff] }
 0x245   : > { %9564 = vmatprep.subr.bf16.mxu0 %v9563_v42 }
 0x247   : > { %8285 = vmatmul.mubr.f32.gmra.mrb[2].mxu0 %v11482_v45 }
 0x248   : > { %8287 = vmatprep.mubr.f32.mxu0 %v11485_v46  ;;  %9566 = vmatpush3.bf16.msra.mxu0 %v9563_v42  ;;  %v9603_v42 = vpack.c.bf16 %v2648_v40, %v2647_v39  ;;  %v2611_v39 = vld [vmem:[%s11175_s8 + $0x5d] sm:$0xff]  ;;  %v2612_v40 = vld [vmem:[%s11175_s8 + $0x65] sm:$0xff] }
 0x249   : > { %9568 = vmatprep.subr.bf16.mxu0 %v9567_v47 }
 0x24b   : > { %8288 = vmatmul.mubr.f32.gmra.mrb[4].mxu0 %v11490_v50 }
 0x24c   : > { %8290 = vmatprep.mubr.f32.mxu0 %v11493_v51  ;;  %9570 = vmatpush3.bf16.msra.mxu0 %v9567_v47 }
 0x24d   : > { %9572 = vmatprep.subr.bf16.mxu0 %v9571_v52 }
 0x24f   : > { %8291 = vmatmul.mubr.f32.gmra.mrb[6].mxu0 %v11498_v55 }
 0x250   : > { %8293 = vmatprep.mubr.f32.mxu0 %v11501_v56  ;;  %9574 = vmatpush3.bf16.msra.mxu0 %v9571_v52  ;;  %v2656_v52 = vld [vmem:[#allocation6 + $0x3f8] sm:$0xff] }
 0x251   : > { %9576 = vmatprep.subr.bf16.mxu0 %v9575_v57 }
 0x253   : > { %8294 = vmatmul.mubr.f32.gmra.mrb[8].mxu0 %v11506_v60 }
 0x254   : > { %8296 = vmatprep.mubr.f32.mxu0 %v11509_v61  ;;  %9578 = vmatpush3.bf16.msra.mxu0 %v9575_v57  ;;  %v3351_v57 = vld [vmem:[#allocation12] sm:$0xff] }
 0x255   : > { %9580 = vmatprep.subr.bf16.mxu0 %v9579_v62  ;;  %3389 = vperm.xlu0 %10627, %v3351_v57   ;;  %v2615_v57 = vld [vmem:[%s11175_s8 + $0x7d] sm:$0xff] }
 0x257   : > { %8297 = vmatmul.mubr.f32.gmra.mrb[10].mxu0 %v11514_v1 }
 0x258   : > { %8299 = vmatprep.mubr.f32.mxu0 %v11517_v2  ;;  %9582 = vmatpush3.bf16.msra.mxu0 %v9579_v62  ;;  %v3355_v62 = vld [vmem:[#allocation12 + $0x20] sm:$0xff] }
 0x259   : > { %9584 = vmatprep.subr.bf16.mxu0 %v9583_v3 }
 0x25b   : > { %8300 = vmatmul.mubr.f32.gmra.mrb[12].mxu0 %v11522_v6 }
 0x25c   : > { %8302 = vmatprep.mubr.f32.mxu0 %v11525_v7  ;;  %9586 = vmatpush3.bf16.msra.mxu0 %v9583_v3  ;;  %v3360_v3 = vld [vmem:[#allocation12 + $0x48] sm:$0xff] }
 0x25d   : > { %9588 = vmatprep.subr.bf16.mxu0 %v9587_v8 }
 0x25f   : > { %8303 = vmatmul.mubr.f32.gmra.mrb[14].mxu0 %v11530_v11 }
 0x260   : > { %8305 = vmatprep.mubr.f32.mxu0 %v11533_v12  ;;  %9590 = vmatpush3.bf16.msra.mxu0 %v9587_v8  ;;  %v3365_v8 = vld [vmem:[#allocation12 + $0x70] sm:$0xff] }
 0x261   : > { %9592 = vmatprep.subr.bf16.mxu0 %v9591_v13 }
 0x263   : > { %8306 = vmatmul.mubr.f32.gmra.mrb[16].mxu0 %v11538_v14 }
 0x264   : > { %8308 = vmatprep.mubr.f32.mxu0 %v11541_v15 }
 0x267   : > { %8309 = vmatmul.mubr.f32.gmra.mrb[18].mxu0 %v11546_v16 }
 0x268   : > { %8311 = vmatprep.mubr.f32.mxu0 %v11549_v17 }
 0x26b   : > { %8312 = vmatmul.mubr.f32.gmra.mrb[20].mxu0 %v11554_v18 }
 0x26c   : > { %8314 = vmatprep.mubr.f32.mxu0 %v11557_v19 }
 0x26f   : > { %8315 = vmatmul.mubr.f32.gmra.mrb[22].mxu0 %v11562_v20 }
 0x270   : > { %8317 = vmatprep.mubr.f32.mxu0 %v11565_v21 }
 0x273   : > { %8318 = vmatmul.mubr.f32.gmra.mrb[24].mxu0 %v11570_v22 }
 0x274   : > { %8320 = vmatprep.mubr.f32.mxu0 %v11573_v24 }
 0x277   : > { %8321 = vmatmul.mubr.f32.gmra.mrb[26].mxu0 %v11578_v23 }
 0x278   : > { %8323 = vmatprep.mubr.f32.mxu0 %v11581_v25 }
 0x27b   : > { %8324 = vmatmul.mubr.f32.gmra.mrb[28].mxu0 %v11586_v26 }
 0x27c   : > { %8326 = vmatprep.mubr.f32.mxu0 %v11589_v27 }
 0x27f   : > { %8327 = vmatmul.mubr.f32.gmra.mrb[30].mxu0 %v11594_v28 }
 0x280   : > { %8329 = vmatprep.mubr.f32.mxu0 %v11597_v29 }
 0x283   : > { %8330 = vmatmul.mubr.f32.gmra.mrb[32].mxu0 %v11602_v30 }
 0x284   : > { %8332 = vmatprep.mubr.f32.mxu0 %v11605_v31 }
 0x287   : > { %8333 = vmatmul.mubr.f32.gmra.mrb[34].mxu0 %v11610_v32 }
 0x288   : > { %8367 = vmatprep.mubr.f32.mxu0 %v11478_v41  ;;  %v2649_v41 = vld [vmem:[#allocation6 + $0x3c0] sm:$0xff] }
 0x289   : > { %v9607_v44 = vpack.c.bf16 %v2650_v43, %v2649_v41  ;;  %v2985_v41 = vld [vmem:[#allocation6 + $0x450] sm:$0xff]  ;;  %v2986_v43 = vld [vmem:[#allocation6 + $0x458] sm:$0xff] }
 0x28b   : > { %8368 = vmatmul.mubr.f32.vlgmr.msra.gmra.mrb[0].mxu0 %v11482_v45  ;;  %v2651_v45 = vld [vmem:[#allocation6 + $0x3d0] sm:$0xff] }
 0x28c   : > { %9594 = vmatpush3.bf16.msra.mxu0 %v9591_v13  ;;  %8370 = vmatprep.mubr.f32.mxu0 %v11485_v46  ;;  %v2652_v46 = vld [vmem:[#allocation6 + $0x3d8] sm:$0xff] }
 0x28d   : > { %9596 = vmatprep.subr.bf16.mxu0 %v9595_v35  ;;  %v9611_v47 = vpack.c.bf16 %v2652_v46, %v2651_v45  ;;  %v2604_v13 = vld [vmem:[%s11175_s8 + $0x25] sm:$0xff]  ;;  %v2613_v46 = vld [vmem:[%s11175_s8 + $0x6d] sm:$0xff] }
 0x28e   : > { %v3377_v45 = vld [vmem:[#allocation12 + $0xd0] sm:$0xff] }
 0x28f   : > { %8371 = vmatmul.mubr.f32.gmra.mrb[2].mxu0 %v11490_v50  ;;  %v9615_v50 = vpack.c.bf16 %v2654_v49, %v2653_v48  ;;  %v9643_v48 = vpack.c.bf16 %v2986_v43, %v2985_v41  ;;  %v2987_v49 = vld [vmem:[#allocation6 + $0x460] sm:$0xff]  ;;  %v2941_v43 = vld [vmem:[%s11175_s8 + $0x3e] sm:$0xff] }
 0x290   : > { %8373 = vmatprep.mubr.f32.mxu0 %v11493_v51  ;;  %9598 = vmatpush3.bf16.msra.mxu0 %v9595_v35  ;;  %v2655_v51 = vld [vmem:[#allocation6 + $0x3f0] sm:$0xff]  ;;  %v2983_v35 = vld [vmem:[#allocation6 + $0x440] sm:$0xff] }
 0x291   : > { %9600 = vmatprep.subr.bf16.mxu0 %v9599_v38  ;;  %v9619_v53 = vpack.c.bf16 %v2656_v52, %v2655_v51  ;;  %v3378_v51 = vld [vmem:[#allocation12 + $0xd8] sm:$0xff]  ;;  %v3379_v52 = vld [vmem:[#allocation12 + $0xe0] sm:$0xff] }
 0x292   : > { %v2940_v41 = vld [vmem:[%s11175_s8 + $0x36] sm:$0xff] }
 0x293   : > { %8374 = vmatmul.mubr.f32.gmra.mrb[4].mxu0 %v11498_v55  ;;  %v2976_v55 = vld [vmem:[#allocation6 + $0x408] sm:$0xff] }
 0x294   : > { %8376 = vmatprep.mubr.f32.mxu0 %v11501_v56  ;;  %9602 = vmatpush3.bf16.msra.mxu0 %v9599_v38  ;;  %v11628_v56 = vpack.c.bf16 %v2976_v55, %v2975_v54  ;;  %v3375_v38 = vld [vmem:[#allocation12 + $0xc0] sm:$0xff]  ;;  %v3771_v55 = vld [vmem:[#allocation9 + $0x90] sm:$0xff] }
 0x295   : > { %9604 = vmatprep.subr.bf16.mxu0 %v9603_v42  ;;  %v3770_v54 = vld [vmem:[#allocation9 + $0x88] sm:$0xff] }
 0x297   : > { %8377 = vmatmul.mubr.f32.gmra.mrb[6].mxu0 %v11506_v60  ;;  %v3352_v60 = vld [vmem:[#allocation12 + $0x8] sm:$0xff] }
 0x298   : > { %8379 = vmatprep.mubr.f32.mxu0 %v11509_v61  ;;  %9606 = vmatpush3.bf16.msra.mxu0 %v9603_v42  ;;  %v3354_v61 = vld [vmem:[#allocation12 + $0x18] sm:$0xff]  ;;  %v9639_v42 = vpack.c.bf16 %v2984_v36, %v2983_v35 }
 0x299   : > { %9608 = vmatprep.subr.bf16.mxu0 %v9607_v44  ;;  %3394 = vperm.xlu0 %10627, %v3352_v60   ;;  %v2635_v35 = vld [vmem:[%s11175_s8 + $0x11d] sm:$0xff]  ;;  %v2636_v36 = vld [vmem:[%s11175_s8 + $0x125] sm:$0xff] }
 0x29a   : > { %3404 = vperm.xlu1 %10628, %v3354_v61   ;;  %v2989_v61 = vld [vmem:[#allocation6 + $0x470] sm:$0xff] }
 0x29b   : > { %8380 = vmatmul.mubr.f32.gmra.mrb[8].mxu0 %v11514_v1  ;;  %v3358_v1 = vld [vmem:[#allocation12 + $0x38] sm:$0xff] }
 0x29c   : > { %8382 = vmatprep.mubr.f32.mxu0 %v11517_v2  ;;  %9610 = vmatpush3.bf16.msra.mxu0 %v9607_v44  ;;  %v3359_v2 = vld [vmem:[#allocation12 + $0x40] sm:$0xff]  ;;  %v3376_v44 = vld [vmem:[#allocation12 + $0xc8] sm:$0xff] }
 0x29d   : > { %9612 = vmatprep.subr.bf16.mxu0 %v9611_v47  ;;  %3409 = vperm.xlu0 %10627, %v3355_v62   ;;  %v2990_v62 = vld [vmem:[#allocation6 + $0x478] sm:$0xff] }
 0x29e   : > { %3414 = vperm.xlu1 %10628, %v3356_v63   ;;  %v3380_v63 = vld [vmem:[#allocation12 + $0xe8] sm:$0xff] }
 0x29f   : > { %8383 = vmatmul.mubr.f32.gmra.mrb[10].mxu0 %v11522_v6  ;;  %v3363_v6 = vld [vmem:[#allocation12 + $0x60] sm:$0xff] }
 0x2a0   : > { %8385 = vmatprep.mubr.f32.mxu0 %v11525_v7  ;;  %9614 = vmatpush3.bf16.msra.mxu0 %v9611_v47  ;;  %v3364_v7 = vld [vmem:[#allocation12 + $0x68] sm:$0xff] }
 0x2a1   : > { %9616 = vmatprep.subr.bf16.mxu0 %v9615_v50  ;;  %3419 = vperm.xlu0 %10627, %v3357_v0   ;;  %v2614_v47 = vld [vmem:[%s11175_s8 + $0x75] sm:$0xff] }
 0x2a2   : > { %3424 = vperm.xlu1 %10628, %v3358_v1   ;;  %v3381_v1 = vld [vmem:[#allocation12 + $0xf0] sm:$0xff] }
 0x2a3   : > { %8386 = vmatmul.mubr.f32.gmra.mrb[12].mxu0 %v11530_v11  ;;  %v3367_v11 = vld [vmem:[#allocation12 + $0x80] sm:$0xff] }
 0x2a4   : > { %8388 = vmatprep.mubr.f32.mxu0 %v11533_v12  ;;  %9618 = vmatpush3.bf16.msra.mxu0 %v9615_v50  ;;  %v2305_v12 = vld [vmem:[%s11175_s8 + $0x13c] sm:$0xff] }
 0x2a5   : > { %9620 = vmatprep.subr.bf16.mxu0 %v9619_v53  ;;  %3429 = vperm.xlu0 %10627, %v3359_v2   ;;  %v2988_v50 = vld [vmem:[#allocation6 + $0x468] sm:$0xff] }
 0x2a6   : > { %3434 = vperm.xlu1 %10628, %v3360_v3   ;;  %v9647_v60 = vpack.c.bf16 %v2988_v50, %v2987_v49  ;;  %v3773_v2 = vld [vmem:[#allocation9 + $0xa0] sm:$0xff]  ;;  %v3774_v3 = vld [vmem:[#allocation9 + $0xa8] sm:$0xff] }
 0x2a7   : > { %8389 = vmatmul.mubr.f32.gmra.mrb[14].mxu0 %v11538_v14  ;;  %v2977_v14 = vld [vmem:[#allocation6 + $0x410] sm:$0xff]  ;;  %v2947_v49 = vld [vmem:[%s11175_s8 + $0x6e] sm:$0xff] }
 0x2a8   : > { %8391 = vmatprep.mubr.f32.mxu0 %v11541_v15  ;;  %9622 = vmatpush3.bf16.msra.mxu0 %v9619_v53  ;;  %v2978_v15 = vld [vmem:[#allocation6 + $0x418] sm:$0xff]  ;;  %v3769_v53 = vld [vmem:[#allocation9 + $0x80] sm:$0xff] }
 0x2a9   : > { %9624 = vmatprep.subr.bf16.mxu0 %v11628_v56  ;;  %3439 = vperm.xlu0 %10627, %v3361_v4   ;;  %v9655_v58 = vpack.c.bf16 %v3770_v54, %v3769_v53  ;;  %v2617_v4 = vld [vmem:[%s11175_s8 + $0x8d] sm:$0xff]  ;;  %v2948_v50 = vld [vmem:[%s11175_s8 + $0x76] sm:$0xff] }
 0x2aa   : > { %3444 = vperm.xlu1 %10628, %v3362_v5   ;;  %v2618_v5 = vld [vmem:[%s11175_s8 + $0x95] sm:$0xff] }
 0x2ab   : > { %8392 = vmatmul.mubr.f32.gmra.mrb[16].mxu0 %v11546_v16  ;;  %v3368_v16 = vld [vmem:[#allocation12 + $0x88] sm:$0xff]  ;;  %9656 = vmatprep.subr.bf16.mxu1 %v9655_v58 }
 0x2ac   : > { %8394 = vmatprep.mubr.f32.mxu0 %v11549_v17  ;;  %v3369_v17 = vld [vmem:[#allocation12 + $0x90] sm:$0xff]  ;;  %9658 = vmatpush3.bf16.msra.mxu1 %v9655_v58  ;;  %v2951_v53 = vld [vmem:[%s11175_s8 + $0x8e] sm:$0xff] }
 0x2ad   : > { %3449 = vperm.xlu0 %10627, %v3363_v6   ;;  %v9651_v6 = vpack.c.bf16 %v2990_v62, %v2989_v61  ;;  %v2952_v54 = vld [vmem:[%s11175_s8 + $0x96] sm:$0xff]  ;;  %v2959_v61 = vld [vmem:[%s11175_s8 + $0xce] sm:$0xff] }
 0x2ae   : > { %3454 = vperm.xlu1 %10628, %v3364_v7   ;;  %v3382_v7 = vld [vmem:[#allocation12 + $0xf8] sm:$0xff]  ;;  %v2956_v58 = vld [vmem:[%s11175_s8 + $0xb6] sm:$0xff] }
 0x2af   : > { %8395 = vmatmul.mubr.f32.gmra.mrb[18].mxu0 %v11554_v18  ;;  %v2605_v18 = vld [vmem:[%s11175_s8 + $0x2d] sm:$0xff]  ;;  %v2960_v62 = vld [vmem:[%s11175_s8 + $0xd6] sm:$0xff] }
 0x2b0   : > { %8397 = vmatprep.mubr.f32.mxu0 %v11557_v19  ;;  %v2606_v19 = vld [vmem:[%s11175_s8 + $0x35] sm:$0xff] }
 0x2b1   : > { %3459 = vperm.xlu0 %10627, %v3365_v8   ;;  %v9663_v8 = vpack.c.bf16 %v3774_v3, %v3773_v2  ;;  %v2964_v2 = vld [vmem:[%s11175_s8 + $0xf6] sm:$0xff]  ;;  %v2965_v3 = vld [vmem:[%s11175_s8 + $0xfe] sm:$0xff] }
 0x2b2   : > { %3464 = vperm.xlu1 %10628, %v3366_v10   ;;  %v3776_v10 = vld [vmem:[#allocation9 + $0xb8] sm:$0xff] }
 0x2b3   : > { %8398 = vmatmul.mubr.f32.gmra.mrb[20].mxu0 %v11562_v20  ;;  %v9627_v20 = vpack.c.bf16 %v2978_v15, %v2977_v14  ;;  %v3777_v15 = vld [vmem:[#allocation9 + $0xc0] sm:$0xff] }
 0x2b4   : > { %8400 = vmatprep.mubr.f32.mxu0 %v11565_v21  ;;  %v2979_v21 = vld [vmem:[#allocation6 + $0x420] sm:$0xff] }
 0x2b5   : > { %3469 = vperm.xlu0 %10627, %v3367_v11   ;;  %v3383_v11 = vld [vmem:[#allocation12 + $0x100] sm:$0xff] }
 0x2b6   : > { %3474 = vperm.xlu1 %10628, %v3368_v16   ;;  %v3778_v16 = vld [vmem:[#allocation9 + $0xc8] sm:$0xff] }
 0x2b7   : > { %8401 = vmatmul.mubr.f32.gmra.mrb[22].mxu0 %v11570_v22  ;;  %v2980_v22 = vld [vmem:[#allocation6 + $0x428] sm:$0xff] }
 0x2b8   : > { %8403 = vmatprep.mubr.f32.mxu0 %v11573_v24  ;;  %v3370_v24 = vld [vmem:[#allocation12 + $0x98] sm:$0xff] }
 0x2b9   : > { %3479 = vperm.xlu0 %10627, %v3369_v17   ;;  %v3384_v17 = vld [vmem:[#allocation12 + $0x108] sm:$0xff] }
 0x2ba   : > { %3484 = vperm.xlu1 %10628, %v3370_v24   ;;  %v2623_v24 = vld [vmem:[%s11175_s8 + $0xbd] sm:$0xff] }
 0x2bb   : > { %8404 = vmatmul.mubr.f32.gmra.mrb[24].mxu0 %v11578_v23  ;;  %v3371_v23 = vld [vmem:[#allocation12 + $0xa0] sm:$0xff] }
 0x2bc   : > { %8406 = vmatprep.mubr.f32.mxu0 %v11581_v25  ;;  %v2607_v25 = vld [vmem:[%s11175_s8 + $0x3d] sm:$0xff] }
 0x2bd   : > { %3489 = vperm.xlu0 %10627, %v3371_v23   ;;  %v2624_v23 = vld [vmem:[%s11175_s8 + $0xc5] sm:$0xff] }
 0x2bf   : > { %8407 = vmatmul.mubr.f32.gmra.mrb[26].mxu0 %v11586_v26  ;;  %v2608_v26 = vld [vmem:[%s11175_s8 + $0x45] sm:$0xff] }
 0x2c0   : > { %8409 = vmatprep.mubr.f32.mxu0 %v11589_v27  ;;  %v9631_v27 = vpack.c.bf16 %v2980_v22, %v2979_v21  ;;  %v2622_v21 = vld [vmem:[%s11175_s8 + $0xb5] sm:$0xff]  ;;  %v3386_v22 = vld [vmem:[#allocation12 + $0x118] sm:$0xff] }
 0x2c3   : > { %8410 = vmatmul.mubr.f32.gmra.mrb[28].mxu0 %v11594_v28  ;;  %v2981_v28 = vld [vmem:[#allocation6 + $0x430] sm:$0xff] }
 0x2c4   : > { %8412 = vmatprep.mubr.f32.mxu0 %v11597_v29  ;;  %v2982_v29 = vld [vmem:[#allocation6 + $0x438] sm:$0xff] }
 0x2c5   : > { %v9635_v34 = vpack.c.bf16 %v2982_v29, %v2981_v28  ;;  %v2628_v28 = vld [vmem:[%s11175_s8 + $0xe5] sm:$0xff]  ;;  %v2629_v29 = vld [vmem:[%s11175_s8 + $0xed] sm:$0xff] }
 0x2c7   : > { %8413 = vmatmul.mubr.f32.gmra.mrb[30].mxu0 %v11602_v30  ;;  %v3372_v30 = vld [vmem:[#allocation12 + $0xa8] sm:$0xff] }
 0x2c8   : > { %8415 = vmatprep.mubr.f32.mxu0 %v11605_v31  ;;  %v3373_v31 = vld [vmem:[#allocation12 + $0xb0] sm:$0xff]  ;;  %3494 = vperm.xlu1 %10628, %v3372_v30  }
 0x2c9   : > { %3499 = vperm.xlu0 %10627, %v3373_v31   ;;  %v2630_v30 = vld [vmem:[%s11175_s8 + $0xf5] sm:$0xff]  ;;  %v2631_v31 = vld [vmem:[%s11175_s8 + $0xfd] sm:$0xff] }
 0x2cb   : > { %8416 = vmatmul.mubr.f32.gmra.mrb[32].mxu0 %v11610_v32  ;;  %v2609_v32 = vld [vmem:[%s11175_s8 + $0x4d] sm:$0xff] }
 0x2cc   : > { %8418 = vmatprep.mubr.f32.mxu0 %v2304_v9  ;;  %3504 = vperm.xlu1 %10628, %v3374_v37   ;;  %v3775_v9 = vld [vmem:[#allocation9 + $0xb0] sm:$0xff]  ;;  %v2637_v37 = vld [vmem:[%s11175_s8 + $0x12d] sm:$0xff] }
 0x2cd   : > { %3509 = vperm.xlu0 %10627, %v3375_v38   ;;  %v9667_v14 = vpack.c.bf16 %v3776_v10, %v3775_v9  ;;  %v2638_v38 = vld [vmem:[%s11175_s8 + $0x135] sm:$0xff] }
 0x2ce   : > { %v2971_v9 = vld [vmem:[%s11175_s8 + $0x12e] sm:$0xff]  ;;  %v2972_v10 = vld [vmem:[%s11175_s8 + $0x136] sm:$0xff] }
 0x2cf   : > { %8419 = vmatmul.mubr.f32.gmra.mrb[34].mxu0 %v2305_v12  ;;  %v2619_v12 = vld [vmem:[%s11175_s8 + $0x9d] sm:$0xff] }
 0x2d0   : > { %8453 = vmatprep.mubr.f32.mxu0 %v2604_v13  ;;  %3514 = vperm.xlu1 %10628, %v3376_v44   ;;  %v2620_v13 = vld [vmem:[%s11175_s8 + $0xa5] sm:$0xff] }
 0x2d1   : > { %3519 = vperm.xlu0 %10627, %v3377_v45   ;;  %v2942_v44 = vld [vmem:[%s11175_s8 + $0x46] sm:$0xff]  ;;  %v2943_v45 = vld [vmem:[%s11175_s8 + $0x4e] sm:$0xff] }
 0x2d3   : > { %8454 = vmatmul.mubr.f32.vlgmr.msra.gmra.mrb[0].mxu0 %v2605_v18  ;;  %v3385_v18 = vld [vmem:[#allocation12 + $0x110] sm:$0xff] }
 0x2d4   : > { %9626 = vmatpush3.bf16.msra.mxu0 %v11628_v56  ;;  %8456 = vmatprep.mubr.f32.mxu0 %v2606_v19  ;;  %v3772_v56 = vld [vmem:[#allocation9 + $0x98] sm:$0xff] }
 0x2d5   : > { %9628 = vmatprep.subr.bf16.mxu0 %v9627_v20  ;;  %3524 = vperm.xlu1 %10628, %v3378_v51   ;;  %v9659_v0 = vpack.c.bf16 %v3772_v56, %v3771_v55  ;;  %v2621_v19 = vld [vmem:[%s11175_s8 + $0xad] sm:$0xff]  ;;  %v2949_v51 = vld [vmem:[%s11175_s8 + $0x7e] sm:$0xff] }
 0x2d6   : > { %3529 = vperm.xlu0 %10627, %v3379_v52   ;;  %v2950_v52 = vld [vmem:[%s11175_s8 + $0x86] sm:$0xff]  ;;  %v2953_v55 = vld [vmem:[%s11175_s8 + $0x9e] sm:$0xff] }
 0x2d7   : > { %8457 = vmatmul.mubr.f32.gmra.mrb[2].mxu0 %v2607_v25  ;;  %9660 = vmatprep.subr.bf16.mxu1 %v9659_v0  ;;  %v2625_v25 = vld [vmem:[%s11175_s8 + $0xcd] sm:$0xff] }
 0x2d8   : > { %8459 = vmatprep.mubr.f32.mxu0 %v2608_v26  ;;  %9630 = vmatpush3.bf16.msra.mxu0 %v9627_v20  ;;  %v9671_v20 = vpack.c.bf16 %v3778_v16, %v3777_v15  ;;  %v2626_v26 = vld [vmem:[%s11175_s8 + $0xd5] sm:$0xff]  ;;  %v2954_v56 = vld [vmem:[%s11175_s8 + $0xa6] sm:$0xff] }
 0x2d9   : > { %9632 = vmatprep.subr.bf16.mxu0 %v9631_v27  ;;  %3534 = vperm.xlu1 %10628, %v3380_v63   ;;  %v2961_v63 = vld [vmem:[%s11175_s8 + $0xde] sm:$0xff]  ;;  %v3781_v15 = vld [vmem:[#allocation9 + $0xe0] sm:$0xff] }
 0x2da   : > { %3539 = vperm.xlu0 %10627, %v3381_v1   ;;  %9662 = vmatpush3.bf16.msra.mxu1 %v9659_v0  ;;  %v2962_v0 = vld [vmem:[%s11175_s8 + $0xe6] sm:$0xff]  ;;  %v2963_v1 = vld [vmem:[%s11175_s8 + $0xee] sm:$0xff] }
 0x2db   : > { %8460 = vmatmul.mubr.f32.gmra.mrb[4].mxu0 %v2609_v32  ;;  %9664 = vmatprep.subr.bf16.mxu1 %v9663_v8  ;;  %v2632_v32 = vld [vmem:[%s11175_s8 + $0x105] sm:$0xff]  ;;  %v3782_v16 = vld [vmem:[#allocation9 + $0xe8] sm:$0xff] }
 0x2dc   : > { %8462 = vmatprep.mubr.f32.mxu0 %v2610_v33  ;;  %9634 = vmatpush3.bf16.msra.mxu0 %v9631_v27  ;;  %v2627_v27 = vld [vmem:[%s11175_s8 + $0xdd] sm:$0xff]  ;;  %v2633_v33 = vld [vmem:[%s11175_s8 + $0x10d] sm:$0xff] }
 0x2dd   : > { %9636 = vmatprep.subr.bf16.mxu0 %v9635_v34  ;;  %3544 = vperm.xlu1 %10628, %v3382_v7   ;;  %v2969_v7 = vld [vmem:[%s11175_s8 + $0x11e] sm:$0xff] }
 0x2de   : > { %3549 = vperm.xlu0 %10627, %v3383_v11   ;;  %9666 = vmatpush3.bf16.msra.mxu1 %v9663_v8  ;;  %v2970_v8 = vld [vmem:[%s11175_s8 + $0x126] sm:$0xff]  ;;  %v2973_v11 = vld [vmem:[%s11175_s8 + $0x13e] sm:$0xff] }
 0x2df   : > { %8463 = vmatmul.mubr.f32.gmra.mrb[6].mxu0 %v2611_v39  ;;  %9668 = vmatprep.subr.bf16.mxu1 %v9667_v14  ;;  %v2639_v39 = vld [vmem:[%s11175_s8 + $0x13d] sm:$0xff] }
 0x2e0   : > { %8465 = vmatprep.mubr.f32.mxu0 %v2612_v40  ;;  %9638 = vmatpush3.bf16.msra.mxu0 %v9635_v34  ;;  %v2634_v34 = vld [vmem:[%s11175_s8 + $0x115] sm:$0xff]  ;;  %v2938_v40 = vld [vmem:[%s11175_s8 + $0x26] sm:$0xff] }
 0x2e1   : > { %9640 = vmatprep.subr.bf16.mxu0 %v9639_v42  ;;  %3554 = vperm.xlu1 %10628, %v3384_v17   ;;  %v9679_v17 = vpack.c.bf16 %v3782_v16, %v3781_v15 }
 0x2e2   : > { %3559 = vperm.xlu0 %10627, %v3385_v18   ;;  %9670 = vmatpush3.bf16.msra.mxu1 %v9667_v14  ;;  %v10888_v18 = vmov 0.0  }
 0x2e3   : > { %8466 = vmatmul.mubr.f32.gmra.mrb[8].mxu0 %v2613_v46  ;;  %9672 = vmatprep.subr.bf16.mxu1 %v9671_v20  ;;  %v2944_v46 = vld [vmem:[%s11175_s8 + $0x56] sm:$0xff]  ;;  %3606 = vst [vmem:[#allocation2 + $0x18] sm:$0xff] %v10888_v18  ;;  %3607 = vst [vmem:[#allocation2 + $0x20] sm:$0xff] %v10888_v18 }
 0x2e4   : > { %8468 = vmatprep.mubr.f32.mxu0 %v2614_v47  ;;  %9642 = vmatpush3.bf16.msra.mxu0 %v9639_v42  ;;  %v2939_v42 = vld [vmem:[%s11175_s8 + $0x2e] sm:$0xff]  ;;  %v2945_v47 = vld [vmem:[%s11175_s8 + $0x5e] sm:$0xff]  ;;  %3603 = vst [vmem:[#allocation2] sm:$0xff] %v10888_v18  ;;  %3604 = vst [vmem:[#allocation2 + $0x8] sm:$0xff] %v10888_v18 }
 0x2e5   : > { %9644 = vmatprep.subr.bf16.mxu0 %v9643_v48  ;;  %3564 = vperm.xlu1 %10628, %v3386_v22   ;;  %3605 = vst [vmem:[#allocation2 + $0x10] sm:$0xff] %v10888_v18  ;;  %3608 = vst [vmem:[#allocation2 + $0x28] sm:$0xff] %v10888_v18 }
 0x2e6   : > { %9674 = vmatpush3.bf16.msra.mxu1 %v9671_v20  ;;  %3609 = vst [vmem:[#allocation2 + $0x30] sm:$0xff] %v10888_v18  ;;  %3610 = vst [vmem:[#allocation2 + $0x38] sm:$0xff] %v10888_v18  ;;  %v3784_v20 = vld [vmem:[#allocation9 + $0xf8] sm:$0xff] }
 0x2e7   : > { %8469 = vmatmul.mubr.f32.gmra.mrb[10].mxu0 %v2615_v57  ;;  %v2955_v57 = vld [vmem:[%s11175_s8 + $0xae] sm:$0xff]  ;;  %3611 = vst [vmem:[#allocation2 + $0x40] sm:$0xff] %v10888_v18  ;;  %3612 = vst [vmem:[#allocation2 + $0x48] sm:$0xff] %v10888_v18 }
 0x2e8   : > { %8471 = vmatprep.mubr.f32.mxu0 %v2616_v59  ;;  %9646 = vmatpush3.bf16.msra.mxu0 %v9643_v48  ;;  %v2946_v48 = vld [vmem:[%s11175_s8 + $0x66] sm:$0xff]  ;;  %v2957_v59 = vld [vmem:[%s11175_s8 + $0xbe] sm:$0xff]  ;;  %3613 = vst [vmem:[#allocation2 + $0x50] sm:$0xff] %v10888_v18  ;;  %3614 = vst [vmem:[#allocation2 + $0x58] sm:$0xff] %v10888_v18 }
 0x2e9   : > { %9648 = vmatprep.subr.bf16.mxu0 %v9647_v60  ;;  %3615 = vst [vmem:[#allocation2 + $0x60] sm:$0xff] %v10888_v18  ;;  %3616 = vst [vmem:[#allocation2 + $0x68] sm:$0xff] %v10888_v18 }
 0x2ea   : > { %3617 = vst [vmem:[#allocation2 + $0x70] sm:$0xff] %v10888_v18  ;;  %3618 = vst [vmem:[#allocation2 + $0x78] sm:$0xff] %v10888_v18 }
 0x2eb   : > { %8472 = vmatmul.mubr.f32.gmra.mrb[12].mxu0 %v2617_v4  ;;  %v2966_v4 = vld [vmem:[%s11175_s8 + $0x106] sm:$0xff]  ;;  %3619 = vst [vmem:[#allocation2 + $0x80] sm:$0xff] %v10888_v18  ;;  %3620 = vst [vmem:[#allocation2 + $0x88] sm:$0xff] %v10888_v18  ;;  %v3732_v22 = vld [vmem:[#allocation2 + $0x1] sm:$0xff] }
 0x2ec   : > { %8474 = vmatprep.mubr.f32.mxu0 %v2618_v5  ;;  %9650 = vmatpush3.bf16.msra.mxu0 %v9647_v60  ;;  %v2958_v60 = vld [vmem:[%s11175_s8 + $0xc6] sm:$0xff]  ;;  %v2967_v5 = vld [vmem:[%s11175_s8 + $0x10e] sm:$0xff]  ;;  %3621 = vst [vmem:[#allocation2 + $0x90] sm:$0xff] %v10888_v18  ;;  %3622 = vst [vmem:[#allocation2 + $0x98] sm:$0xff] %v10888_v18 }
 0x2ed   : > { %9652 = vmatprep.subr.bf16.mxu0 %v9651_v6  ;;  %3623 = vst [vmem:[#allocation2 + $0xa0] sm:$0xff] %v10888_v18  ;;  %3624 = vst [vmem:[#allocation2 + $0xa8] sm:$0xff] %v10888_v18  ;;  %8625 = vmatprep.mubr.f32.mxu1 %v3732_v22 }
 0x2ee   : > { %3625 = vst [vmem:[#allocation2 + $0xb0] sm:$0xff] %v10888_v18  ;;  %3626 = vst [vmem:[#allocation2 + $0xb8] sm:$0xff] %v10888_v18 }
 0x2ef   : > { %8475 = vmatmul.mubr.f32.gmra.mrb[14].mxu0 %v2619_v12  ;;  %v3779_v12 = vld [vmem:[#allocation9 + $0xd0] sm:$0xff]  ;;  %3627 = vst [vmem:[#allocation2 + $0xc0] sm:$0xff] %v10888_v18  ;;  %3628 = vst [vmem:[#allocation2 + $0xc8] sm:$0xff] %v10888_v18 }
 0x2f0   : > { %8477 = vmatprep.mubr.f32.mxu0 %v2620_v13  ;;  %9654 = vmatpush3.bf16.msra.mxu0 %v9651_v6  ;;  %v2968_v6 = vld [vmem:[%s11175_s8 + $0x116] sm:$0xff]  ;;  %v3780_v13 = vld [vmem:[#allocation9 + $0xd8] sm:$0xff]  ;;  %3629 = vst [vmem:[#allocation2 + $0xd0] sm:$0xff] %v10888_v18  ;;  %3630 = vst [vmem:[#allocation2 + $0xd8] sm:$0xff] %v10888_v18 }
 0x2f1   : > { %v9675_v14 = vpack.c.bf16 %v3780_v13, %v3779_v12  ;;  %3631 = vst [vmem:[#allocation2 + $0xe0] sm:$0xff] %v10888_v18  ;;  %3632 = vst [vmem:[#allocation2 + $0xe8] sm:$0xff] %v10888_v18 }
 0x2f2   : > { %3633 = vst [vmem:[#allocation2 + $0xf0] sm:$0xff] %v10888_v18  ;;  %3634 = vst [vmem:[#allocation2 + $0xf8] sm:$0xff] %v10888_v18 }
 0x2f3   : > { %8478 = vmatmul.mubr.f32.gmra.mrb[16].mxu0 %v2621_v19  ;;  %9676 = vmatprep.subr.bf16.mxu1 %v9675_v14  ;;  %3635 = vst [vmem:[#allocation2 + $0x100] sm:$0xff] %v10888_v18  ;;  %3636 = vst [vmem:[#allocation2 + $0x108] sm:$0xff] %v10888_v18  ;;  %v3783_v19 = vld [vmem:[#allocation9 + $0xf0] sm:$0xff] }
 0x2f4   : > { %8480 = vmatprep.mubr.f32.mxu0 %v2622_v21  ;;  %9678 = vmatpush3.bf16.msra.mxu1 %v9675_v14  ;;  %3637 = vst [vmem:[#allocation2 + $0x110] sm:$0xff] %v10888_v18  ;;  %3638 = vst [vmem:[#allocation2 + $0x118] sm:$0xff] %v10888_v18  ;;  %v9683_v21 = vpack.c.bf16 %v3784_v20, %v3783_v19 }
 0x2f5   : > { %3639 = vst [vmem:[#allocation2 + $0x120] sm:$0xff] %v10888_v18  ;;  %3640 = vst [vmem:[#allocation2 + $0x128] sm:$0xff] %v10888_v18  ;;  %9680 = vmatprep.subr.bf16.mxu1 %v9679_v17 }
 0x2f6   : > { %3641 = vst [vmem:[#allocation2 + $0x130] sm:$0xff] %v10888_v18  ;;  %3642 = vst [vmem:[#allocation2 + $0x138] sm:$0xff] %v10888_v18 }
 0x2f7   : > { %8481 = vmatmul.mubr.f32.gmra.mrb[18].mxu0 %v2623_v24  ;;  %3643 = vst [vmem:[#allocation2 + $0x140] sm:$0xff] %v10888_v18  ;;  %v3733_v24 = vld [vmem:[#allocation2 + $0x9] sm:$0xff] }
 0x2f8   : > { %8483 = vmatprep.mubr.f32.mxu0 %v2624_v23  ;;  %9682 = vmatpush3.bf16.msra.mxu1 %v9679_v17  ;;  %v3716_v23 = vld [vmem:[#allocation9] sm:$0xff] }
 0x2f9   : > { %9684 = vmatprep.subr.bf16.mxu1 %v9683_v21 }
 0x2fb   : > { %8484 = vmatmul.mubr.f32.gmra.mrb[20].mxu0 %v2625_v25  ;;  %v3717_v25 = vld [vmem:[#allocation9 + $0x8] sm:$0xff] }
 0x2fc   : > { %8486 = vmatprep.mubr.f32.mxu0 %v2626_v26  ;;  %9686 = vmatpush3.bf16.msra.mxu1 %v9683_v21  ;;  %v9687_v26 = vpack.c.bf16 %v3717_v25, %v3716_v23 }
 0x2fe   : > { %9688 = vmatprep.subr.bf16.mxu1 %v9687_v26 }
 0x2ff   : > { %8487 = vmatmul.mubr.f32.gmra.mrb[22].mxu0 %v2627_v27  ;;  %8626 = vmatmul.mubr.f32.vlgmr.msra.gmra.mrb[0].mxu1 %v3733_v24  ;;  %v3718_v27 = vld [vmem:[#allocation9 + $0x10] sm:$0xff] }
 0x300   : > { %8489 = vmatprep.mubr.f32.mxu0 %v2628_v28  ;;  %9690 = vmatpush3.bf16.msra.mxu1 %v9687_v26  ;;  %v3719_v28 = vld [vmem:[#allocation9 + $0x18] sm:$0xff] }
 0x303   : > { %8490 = vmatmul.mubr.f32.gmra.mrb[24].mxu0 %v2629_v29  ;;  %v9691_v29 = vpack.c.bf16 %v3719_v28, %v3718_v27 }
 0x304   : > { %8492 = vmatprep.mubr.f32.mxu0 %v2630_v30  ;;  %v3720_v30 = vld [vmem:[#allocation9 + $0x20] sm:$0xff] }
 0x305   : > { %9692 = vmatprep.subr.bf16.mxu1 %v9691_v29 }
 0x306   : > { %9694 = vmatpush3.bf16.msra.mxu1 %v9691_v29 }
 0x307   : > { %8493 = vmatmul.mubr.f32.gmra.mrb[26].mxu0 %v2631_v31  ;;  %v3721_v31 = vld [vmem:[#allocation9 + $0x28] sm:$0xff] }
 0x308   : > { %8495 = vmatprep.mubr.f32.mxu0 %v2632_v32  ;;  %v9695_v32 = vpack.c.bf16 %v3721_v31, %v3720_v30 }
 0x30a   : > { %9696 = vmatprep.subr.bf16.mxu1 %v9695_v32 }
 0x30b   : > { %8496 = vmatmul.mubr.f32.gmra.mrb[28].mxu0 %v2633_v33  ;;  %9698 = vmatpush3.bf16.msra.mxu1 %v9695_v32  ;;  %v3722_v33 = vld [vmem:[#allocation9 + $0x30] sm:$0xff] }
 0x30c   : > { %8498 = vmatprep.mubr.f32.mxu0 %v2634_v34  ;;  %v3723_v34 = vld [vmem:[#allocation9 + $0x38] sm:$0xff] }
 0x30f   : > { %8499 = vmatmul.mubr.f32.gmra.mrb[30].mxu0 %v2635_v35  ;;  %v9699_v35 = vpack.c.bf16 %v3723_v34, %v3722_v33 }
 0x310   : > { %8501 = vmatprep.mubr.f32.mxu0 %v2636_v36  ;;  %v3724_v36 = vld [vmem:[#allocation9 + $0x40] sm:$0xff] }
 0x311   : > { %9700 = vmatprep.subr.bf16.mxu1 %v9699_v35 }
 0x312   : > { %9702 = vmatpush3.bf16.msra.mxu1 %v9699_v35 }
 0x313   : > { %8502 = vmatmul.mubr.f32.gmra.mrb[32].mxu0 %v2637_v37  ;;  %v3725_v37 = vld [vmem:[#allocation9 + $0x48] sm:$0xff] }
 0x314   : > { %8504 = vmatprep.mubr.f32.mxu0 %v2638_v38  ;;  %v9703_v38 = vpack.c.bf16 %v3725_v37, %v3724_v36 }
 0x316   : > { %9704 = vmatprep.subr.bf16.mxu1 %v9703_v38 }
 0x317   : > { %8505 = vmatmul.mubr.f32.gmra.mrb[34].mxu0 %v2639_v39  ;;  %9706 = vmatpush3.bf16.msra.mxu1 %v9703_v38  ;;  %v3726_v39 = vld [vmem:[#allocation9 + $0x50] sm:$0xff] }
 0x318   : > { %8539 = vmatprep.mubr.f32.mxu0 %v2938_v40  ;;  %v3727_v40 = vld [vmem:[#allocation9 + $0x58] sm:$0xff] }
 0x31b   : > { %8540 = vmatmul.mubr.f32.vlgmr.msra.gmra.mrb[0].mxu0 %v2939_v42  ;;  %v9707_v42 = vpack.c.bf16 %v3727_v40, %v3726_v39 }
 0x31c   : > { %8542 = vmatprep.mubr.f32.mxu0 %v2940_v41  ;;  %v3728_v41 = vld [vmem:[#allocation9 + $0x60] sm:$0xff] }
 0x31d   : > { %9708 = vmatprep.subr.bf16.mxu1 %v9707_v42 }
 0x31e   : > { %9710 = vmatpush3.bf16.msra.mxu1 %v9707_v42 }
 0x31f   : > { %8543 = vmatmul.mubr.f32.gmra.mrb[2].mxu0 %v2941_v43  ;;  %v3729_v43 = vld [vmem:[#allocation9 + $0x68] sm:$0xff] }
 0x320   : > { %8545 = vmatprep.mubr.f32.mxu0 %v2942_v44  ;;  %v9711_v44 = vpack.c.bf16 %v3729_v43, %v3728_v41 }
 0x322   : > { %9712 = vmatprep.subr.bf16.mxu1 %v9711_v44 }
 0x323   : > { %8546 = vmatmul.mubr.f32.gmra.mrb[4].mxu0 %v2943_v45  ;;  %9714 = vmatpush3.bf16.msra.mxu1 %v9711_v44  ;;  %v3730_v45 = vld [vmem:[#allocation9 + $0x70] sm:$0xff] }
 0x324   : > { %8548 = vmatprep.mubr.f32.mxu0 %v2944_v46  ;;  %v3731_v46 = vld [vmem:[#allocation9 + $0x78] sm:$0xff] }
 0x327   : > { %8549 = vmatmul.mubr.f32.gmra.mrb[6].mxu0 %v2945_v47  ;;  %v9715_v47 = vpack.c.bf16 %v3731_v46, %v3730_v45 }
 0x328   : > { %8551 = vmatprep.mubr.f32.mxu0 %v2946_v48  ;;  %v4312_v48 = vld [vmem:[#allocation9 + $0x100] sm:$0xff] }
 0x329   : > { %9716 = vmatprep.subr.bf16.mxu1 %v9715_v47 }
 0x32a   : > { %9718 = vmatpush3.bf16.msra.mxu1 %v9715_v47 }
 0x32b   : > { %8552 = vmatmul.mubr.f32.gmra.mrb[8].mxu0 %v2947_v49  ;;  %v4313_v49 = vld [vmem:[#allocation9 + $0x108] sm:$0xff] }
 0x32c   : > { %8554 = vmatprep.mubr.f32.mxu0 %v2948_v50  ;;  %v11766_v50 = vpack.c.bf16 %v4313_v49, %v4312_v48 }
 0x32e   : > { %9720 = vmatprep.subr.bf16.mxu1 %v11766_v50 }
 0x32f   : > { %8555 = vmatmul.mubr.f32.gmra.mrb[10].mxu0 %v2949_v51  ;;  %v3400_v51 = vpop.permute.xlu1 %3399 }
 0x330   : > { %8557 = vmatprep.mubr.f32.mxu0 %v2950_v52  ;;  %v3390_v52 = vpop.permute.xlu0 %3389 }
 0x333   : > { %8558 = vmatmul.mubr.f32.gmra.mrb[12].mxu0 %v2951_v53  ;;  %v3405_v53 = vpop.permute.xlu1 %3404 }
 0x334   : > { %8560 = vmatprep.mubr.f32.mxu0 %v2952_v54  ;;  %v3395_v54 = vpop.permute.xlu0 %3394 }
 0x337   : > { %8561 = vmatmul.mubr.f32.gmra.mrb[14].mxu0 %v2953_v55  ;;  %v3415_v55 = vpop.permute.xlu1 %3414 }
 0x338   : > { %8563 = vmatprep.mubr.f32.mxu0 %v2954_v56  ;;  %v3410_v56 = vpop.permute.xlu0 %3409 }
 0x33b   : > { %8564 = vmatmul.mubr.f32.gmra.mrb[16].mxu0 %v2955_v57  ;;  %v3425_v57 = vpop.permute.xlu1 %3424 }
 0x33c   : > { %8566 = vmatprep.mubr.f32.mxu0 %v2956_v58  ;;  %v3420_v58 = vpop.permute.xlu0 %3419 }
 0x33f   : > { %8567 = vmatmul.mubr.f32.gmra.mrb[18].mxu0 %v2957_v59  ;;  %v11769_v59 = vpop.permute.xlu1 %3434 }
 0x340   : > { %8569 = vmatprep.mubr.f32.mxu0 %v2958_v60  ;;  %v11771_v60 = vpop.permute.xlu0 %3429 }
 0x343   : > { %8570 = vmatmul.mubr.f32.gmra.mrb[20].mxu0 %v2959_v61  ;;  %v11773_v61 = vld [vmem:[#allocation8] ss:$0 sm:$0xff] }
 0x344   : > { %8572 = vmatprep.mubr.f32.mxu0 %v2960_v62  ;;  %v11775_v62 = vpop.permute.xlu1 %3444 }
 0x347   : > { %8573 = vmatmul.mubr.f32.gmra.mrb[22].mxu0 %v2961_v63 }
 0x348   : > { %8575 = vmatprep.mubr.f32.mxu0 %v2962_v0  ;;  %v11777_v0 = vpop.permute.xlu0 %3439 }
 0x34b   : > { %8576 = vmatmul.mubr.f32.gmra.mrb[24].mxu0 %v2963_v1 }
 0x34c   : > { %8578 = vmatprep.mubr.f32.mxu0 %v2964_v2  ;;  %v11785_v13 = vpop.permute.xlu0 %3449 }
 0x34f   : > { %8579 = vmatmul.mubr.f32.gmra.mrb[26].mxu0 %v2965_v3 }
 0x350   : > { %8581 = vmatprep.mubr.f32.mxu0 %v2966_v4  ;;  %v11791_v27 = vpop.permute.xlu0 %3459 }
 0x353   : > { %8582 = vmatmul.mubr.f32.gmra.mrb[28].mxu0 %v2967_v5 }
 0x354   : > { %8584 = vmatprep.mubr.f32.mxu0 %v2968_v6  ;;  %v11799_v44 = vpop.permute.xlu0 %3469 }
 0x357   : > { %8585 = vmatmul.mubr.f32.gmra.mrb[30].mxu0 %v2969_v7 }
 0x358   : > { %8587 = vmatprep.mubr.f32.mxu0 %v2970_v8 }
 0x35b   : > { %8588 = vmatmul.mubr.f32.gmra.mrb[32].mxu0 %v2971_v9 }
 0x35c   : > { %8590 = vmatprep.mubr.f32.mxu0 %v2972_v10  ;;  %v11782_v10 = vpop.permute.xlu1 %3454 }
 0x35f   : > { %8591 = vmatmul.mubr.f32.gmra.mrb[34].mxu0 %v2973_v11 }
 0x360   : > { %v11789_v23 = vpop.permute.xlu1 %3464 }
 0x364   : > { %v11796_v42 = vpop.permute.xlu1 %3474 }
 0x3ee   : > { %v8541_v63 = vpop.f32.mrb[0].mxu0 }
 0x3ef   : > { %v3280_v1 = vadd.f32 %v8541_v63, %v11773_v61  ;;  %v3057_v2 = vpop.f32.mrb[1].mxu0  ;;  %v11805_v63 = vpop.permute.xlu1 %3484 }
 0x3f0   : > { %v3279_v3 = vadd.f32 %v11773_v61, %v3057_v2 }
 0x3f1   : > { %v3316_v4 = vmax.f32 %v3280_v1, 0.0 }
 0x3f2   : > { %v3315_v5 = vmax.f32 %v3279_v3, 0.0  ;;  %v8544_v6 = vpop.f32.mrb[2].mxu0  ;;  %v11807_v3 = vpop.permute.xlu0 %3479 }
 0x3f3   : > { %v3568_v7 = vmul.f32 %v3395_v54, %v3316_v4  ;;  %v3282_v8 = vadd.f32 %v8544_v6, %v11773_v61  ;;  %v3067_v9 = vpop.f32.mrb[3].mxu0 }
 0x3f4   : > { %v3567_v11 = vmul.f32 %v3390_v52, %v3315_v5  ;;  %v3281_v12 = vadd.f32 %v11773_v61, %v3067_v9 }
 0x3f5   : > { %3645 = vst [vmem:[#allocation2 + $0x1b] sm:$0xff] %v3568_v7  ;;  %v3318_v14 = vmax.f32 %v3282_v8, 0.0 }
 0x3f6   : > { %3644 = vst [vmem:[#allocation2 + $0x13] sm:$0xff] %v3567_v11  ;;  %v3317_v15 = vmax.f32 %v3281_v12, 0.0  ;;  %v8547_v16 = vpop.f32.mrb[4].mxu0 }
 0x3f7   : > { %v3570_v17 = vmul.f32 %v3405_v53, %v3318_v14  ;;  %v3284_v19 = vadd.f32 %v8547_v16, %v11773_v61  ;;  %v3077_v20 = vpop.f32.mrb[5].mxu0  ;;  %v3495_v16 = vpop.permute.xlu1 %3494 }
 0x3f8   : > { %v3569_v21 = vmul.f32 %v3400_v51, %v3317_v15  ;;  %v3283_v22 = vadd.f32 %v11773_v61, %v3077_v20 }
 0x3f9   : > { %3647 = vst [vmem:[#allocation2 + $0x2b] sm:$0xff] %v3570_v17  ;;  %v3320_v24 = vmax.f32 %v3284_v19, 0.0  ;;  %v3490_v19 = vpop.permute.xlu0 %3489 }
 0x3fa   : > { %3646 = vst [vmem:[#allocation2 + $0x23] sm:$0xff] %v3569_v21  ;;  %v3319_v25 = vmax.f32 %v3283_v22, 0.0  ;;  %v8550_v26 = vpop.f32.mrb[6].mxu0 }
 0x3fb   : > { %v3572_v28 = vmul.f32 %v3415_v55, %v3320_v24  ;;  %v3286_v29 = vadd.f32 %v8550_v26, %v11773_v61  ;;  %v3087_v30 = vpop.f32.mrb[7].mxu0 }
 0x3fc   : > { %v3571_v31 = vmul.f32 %v3410_v56, %v3319_v25  ;;  %v3285_v32 = vadd.f32 %v11773_v61, %v3087_v30 }
 0x3fd   : > { %3649 = vst [vmem:[#allocation2 + $0x3b] sm:$0xff] %v3572_v28  ;;  %v3322_v33 = vmax.f32 %v3286_v29, 0.0  ;;  %v3734_v34 = vld [vmem:[#allocation2 + $0x11] sm:$0xff]  ;;  %v3735_v35 = vld [vmem:[#allocation2 + $0x19] sm:$0xff] }
 0x3fe   : > { %3648 = vst [vmem:[#allocation2 + $0x33] sm:$0xff] %v3571_v31  ;;  %v3321_v36 = vmax.f32 %v3285_v32, 0.0  ;;  %v8553_v37 = vpop.f32.mrb[8].mxu0  ;;  %8628 = vmatprep.mubr.f32.mxu1 %v3734_v34 }
 0x3ff   : > { %v3574_v38 = vmul.f32 %v3425_v57, %v3322_v33  ;;  %v3288_v39 = vadd.f32 %v8553_v37, %v11773_v61  ;;  %v3097_v40 = vpop.f32.mrb[9].mxu0  ;;  %8629 = vmatmul.mubr.f32.gmra.mrb[2].mxu1 %v3735_v35  ;;  %v3505_v33 = vpop.permute.xlu1 %3504 }
 0x400   : > { %v3573_v41 = vmul.f32 %v3420_v58, %v3321_v36  ;;  %v3287_v43 = vadd.f32 %v11773_v61, %v3097_v40  ;;  %v3500_v36 = vpop.permute.xlu0 %3499 }
 0x401   : > { %3651 = vst [vmem:[#allocation2 + $0x4b] sm:$0xff] %v3574_v38  ;;  %v3324_v45 = vmax.f32 %v3288_v39, 0.0  ;;  %v3736_v46 = vld [vmem:[#allocation2 + $0x21] sm:$0xff]  ;;  %v3737_v47 = vld [vmem:[#allocation2 + $0x29] sm:$0xff] }
 0x402   : > { %3650 = vst [vmem:[#allocation2 + $0x43] sm:$0xff] %v3573_v41  ;;  %v3323_v48 = vmax.f32 %v3287_v43, 0.0  ;;  %v8556_v49 = vpop.f32.mrb[10].mxu0  ;;  %8631 = vmatprep.mubr.f32.mxu1 %v3736_v46 }
 0x403   : > { %v3576_v51 = vmul.f32 %v11769_v59, %v3324_v45  ;;  %v3290_v52 = vadd.f32 %v8556_v49, %v11773_v61  ;;  %v3107_v53 = vpop.f32.mrb[11].mxu0  ;;  %8632 = vmatmul.mubr.f32.gmra.mrb[4].mxu1 %v3737_v47  ;;  %v3515_v49 = vpop.permute.xlu1 %3514 }
 0x404   : > { %v3575_v54 = vmul.f32 %v11771_v60, %v3323_v48  ;;  %v3289_v55 = vadd.f32 %v11773_v61, %v3107_v53 }
 0x405   : > { %3653 = vst [vmem:[#allocation2 + $0x5b] sm:$0xff] %v3576_v51  ;;  %v3326_v56 = vmax.f32 %v3290_v52, 0.0  ;;  %v3738_v57 = vld [vmem:[#allocation2 + $0x31] sm:$0xff]  ;;  %v3739_v58 = vld [vmem:[#allocation2 + $0x39] sm:$0xff]  ;;  %v3510_v52 = vpop.permute.xlu0 %3509 }
 0x406   : > { %3652 = vst [vmem:[#allocation2 + $0x53] sm:$0xff] %v3575_v54  ;;  %v3325_v1 = vmax.f32 %v3289_v55, 0.0  ;;  %v8559_v2 = vpop.f32.mrb[12].mxu0  ;;  %8634 = vmatprep.mubr.f32.mxu1 %v3738_v57 }
 0x407   : > { %v3578_v59 = vmul.f32 %v11775_v62, %v3326_v56  ;;  %v3292_v4 = vadd.f32 %v8559_v2, %v11773_v61  ;;  %v3117_v5 = vpop.f32.mrb[13].mxu0  ;;  %8635 = vmatmul.mubr.f32.gmra.mrb[6].mxu1 %v3739_v58 }
 0x408   : > { %v3577_v60 = vmul.f32 %v11777_v0, %v3325_v1  ;;  %v3291_v6 = vadd.f32 %v11773_v61, %v3117_v5 }
 0x409   : > { %3655 = vst [vmem:[#allocation2 + $0x6b] sm:$0xff] %v3578_v59  ;;  %v3328_v7 = vmax.f32 %v3292_v4, 0.0  ;;  %v3740_v8 = vld [vmem:[#allocation2 + $0x41] sm:$0xff]  ;;  %v3741_v9 = vld [vmem:[#allocation2 + $0x49] sm:$0xff] }
 0x40a   : > { %3654 = vst [vmem:[#allocation2 + $0x63] sm:$0xff] %v3577_v60  ;;  %v3327_v11 = vmax.f32 %v3291_v6, 0.0  ;;  %v8562_v12 = vpop.f32.mrb[14].mxu0  ;;  %8637 = vmatprep.mubr.f32.mxu1 %v3740_v8  ;;  %v3525_v60 = vpop.permute.xlu1 %3524 }
 0x40b   : > { %v3580_v14 = vmul.f32 %v11782_v10, %v3328_v7  ;;  %v3294_v62 = vadd.f32 %v8562_v12, %v11773_v61  ;;  %v3127_v15 = vpop.f32.mrb[15].mxu0  ;;  %8638 = vmatmul.mubr.f32.gmra.mrb[8].mxu1 %v3741_v9  ;;  %v3520_v8 = vpop.permute.xlu0 %3519 }
 0x40c   : > { %v3579_v17 = vmul.f32 %v11785_v13, %v3327_v11  ;;  %v3293_v0 = vadd.f32 %v11773_v61, %v3127_v15 }
 0x40d   : > { %3657 = vst [vmem:[#allocation2 + $0x7b] sm:$0xff] %v3580_v14  ;;  %v3330_v20 = vmax.f32 %v3294_v62, 0.0  ;;  %v3742_v21 = vld [vmem:[#allocation2 + $0x51] sm:$0xff]  ;;  %v3743_v22 = vld [vmem:[#allocation2 + $0x59] sm:$0xff] }
 0x40e   : > { %3656 = vst [vmem:[#allocation2 + $0x73] sm:$0xff] %v3579_v17  ;;  %v3329_v24 = vmax.f32 %v3293_v0, 0.0  ;;  %v8565_v25 = vpop.f32.mrb[16].mxu0  ;;  %8640 = vmatprep.mubr.f32.mxu1 %v3742_v21 }
 0x40f   : > { %v3582_v10 = vmul.f32 %v11789_v23, %v3330_v20  ;;  %v3296_v26 = vadd.f32 %v8565_v25, %v11773_v61  ;;  %v3137_v28 = vpop.f32.mrb[17].mxu0  ;;  %8641 = vmatmul.mubr.f32.gmra.mrb[10].mxu1 %v3743_v22 }
 0x410   : > { %v3581_v29 = vmul.f32 %v11791_v27, %v3329_v24  ;;  %v3295_v13 = vadd.f32 %v11773_v61, %v3137_v28  ;;  %v3535_v24 = vpop.permute.xlu1 %3534 }
 0x411   : > { %3659 = vst [vmem:[#allocation2 + $0x8b] sm:$0xff] %v3582_v10  ;;  %v3332_v30 = vmax.f32 %v3296_v26, 0.0  ;;  %v3744_v31 = vld [vmem:[#allocation2 + $0x61] sm:$0xff]  ;;  %v3745_v32 = vld [vmem:[#allocation2 + $0x69] sm:$0xff]  ;;  %v3530_v26 = vpop.permute.xlu0 %3529 }
 0x412   : > { %3658 = vst [vmem:[#allocation2 + $0x83] sm:$0xff] %v3581_v29  ;;  %v3331_v34 = vmax.f32 %v3295_v13, 0.0  ;;  %v8568_v35 = vpop.f32.mrb[18].mxu0  ;;  %8643 = vmatprep.mubr.f32.mxu1 %v3744_v31 }
 0x413   : > { %v3584_v23 = vmul.f32 %v11796_v42, %v3332_v30  ;;  %v3298_v37 = vadd.f32 %v8568_v35, %v11773_v61  ;;  %v3147_v38 = vpop.f32.mrb[19].mxu0  ;;  %8644 = vmatmul.mubr.f32.gmra.mrb[12].mxu1 %v3745_v32 }
 0x414   : > { %v3583_v27 = vmul.f32 %v11799_v44, %v3331_v34  ;;  %v3297_v39 = vadd.f32 %v11773_v61, %v3147_v38 }
 0x415   : > { %3661 = vst [vmem:[#allocation2 + $0x9b] sm:$0xff] %v3584_v23  ;;  %v3334_v40 = vmax.f32 %v3298_v37, 0.0  ;;  %v3746_v41 = vld [vmem:[#allocation2 + $0x71] sm:$0xff]  ;;  %v3747_v43 = vld [vmem:[#allocation2 + $0x79] sm:$0xff] }
 0x416   : > { %3660 = vst [vmem:[#allocation2 + $0x93] sm:$0xff] %v3583_v27  ;;  %v3333_v45 = vmax.f32 %v3297_v39, 0.0  ;;  %v8571_v46 = vpop.f32.mrb[20].mxu0  ;;  %8646 = vmatprep.mubr.f32.mxu1 %v3746_v41  ;;  %v3545_v27 = vpop.permute.xlu1 %3544 }
 0x417   : > { %v3586_v47 = vmul.f32 %v11805_v63, %v3334_v40  ;;  %v3300_v42 = vadd.f32 %v8571_v46, %v11773_v61  ;;  %v3157_v48 = vpop.f32.mrb[21].mxu0  ;;  %8647 = vmatmul.mubr.f32.gmra.mrb[14].mxu1 %v3747_v43  ;;  %v3540_v41 = vpop.permute.xlu0 %3539 }
 0x418   : > { %v3585_v51 = vmul.f32 %v11807_v3, %v3333_v45  ;;  %v3299_v44 = vadd.f32 %v11773_v61, %v3157_v48 }
 0x419   : > { %3663 = vst [vmem:[#allocation2 + $0xab] sm:$0xff] %v3586_v47  ;;  %v3336_v53 = vmax.f32 %v3300_v42, 0.0  ;;  %v3748_v54 = vld [vmem:[#allocation2 + $0x81] sm:$0xff]  ;;  %v3749_v55 = vld [vmem:[#allocation2 + $0x89] sm:$0xff] }
 0x41a   : > { %3662 = vst [vmem:[#allocation2 + $0xa3] sm:$0xff] %v3585_v51  ;;  %v3335_v56 = vmax.f32 %v3299_v44, 0.0  ;;  %v8574_v57 = vpop.f32.mrb[22].mxu0  ;;  %8649 = vmatprep.mubr.f32.mxu1 %v3748_v54 }
 0x41b   : > { %v3588_v58 = vmul.f32 %v3495_v16, %v3336_v53  ;;  %v3302_v63 = vadd.f32 %v8574_v57, %v11773_v61  ;;  %v3167_v1 = vpop.f32.mrb[23].mxu0  ;;  %8650 = vmatmul.mubr.f32.gmra.mrb[16].mxu1 %v3749_v55 }
 0x41c   : > { %v3587_v2 = vmul.f32 %v3490_v19, %v3335_v56  ;;  %v3301_v59 = vadd.f32 %v11773_v61, %v3167_v1  ;;  %v3555_v56 = vpop.permute.xlu1 %3554 }
 0x41d   : > { %3665 = vst [vmem:[#allocation2 + $0xbb] sm:$0xff] %v3588_v58  ;;  %v3338_v3 = vmax.f32 %v3302_v63, 0.0  ;;  %v3750_v4 = vld [vmem:[#allocation2 + $0x91] sm:$0xff]  ;;  %v3751_v5 = vld [vmem:[#allocation2 + $0x99] sm:$0xff]  ;;  %v3550_v63 = vpop.permute.xlu0 %3549 }
 0x41e   : > { %3664 = vst [vmem:[#allocation2 + $0xb3] sm:$0xff] %v3587_v2  ;;  %v3337_v6 = vmax.f32 %v3301_v59, 0.0  ;;  %v8577_v7 = vpop.f32.mrb[24].mxu0  ;;  %8652 = vmatprep.mubr.f32.mxu1 %v3750_v4 }
 0x41f   : > { %v3590_v9 = vmul.f32 %v3505_v33, %v3338_v3  ;;  %v3304_v11 = vadd.f32 %v8577_v7, %v11773_v61  ;;  %v3177_v12 = vpop.f32.mrb[25].mxu0  ;;  %8653 = vmatmul.mubr.f32.gmra.mrb[18].mxu1 %v3751_v5 }
 0x420   : > { %v3589_v14 = vmul.f32 %v3500_v36, %v3337_v6  ;;  %v3303_v62 = vadd.f32 %v11773_v61, %v3177_v12 }
 0x421   : > { %3667 = vst [vmem:[#allocation2 + $0xcb] sm:$0xff] %v3590_v9  ;;  %v3340_v15 = vmax.f32 %v3304_v11, 0.0  ;;  %v3752_v16 = vld [vmem:[#allocation2 + $0xa1] sm:$0xff]  ;;  %v3753_v17 = vld [vmem:[#allocation2 + $0xa9] sm:$0xff] }
 0x422   : > { %3666 = vst [vmem:[#allocation2 + $0xc3] sm:$0xff] %v3589_v14  ;;  %v3339_v0 = vmax.f32 %v3303_v62, 0.0  ;;  %v8580_v19 = vpop.f32.mrb[26].mxu0  ;;  %8655 = vmatprep.mubr.f32.mxu1 %v3752_v16  ;;  %v3565_v14 = vpop.permute.xlu1 %3564 }
 0x423   : > { %v3592_v20 = vmul.f32 %v3515_v49, %v3340_v15  ;;  %v3306_v21 = vadd.f32 %v8580_v19, %v11773_v61  ;;  %v3187_v22 = vpop.f32.mrb[27].mxu0  ;;  %8656 = vmatmul.mubr.f32.gmra.mrb[20].mxu1 %v3753_v17  ;;  %v3560_v15 = vpop.permute.xlu0 %3559 }
 0x424   : > { %v3591_v25 = vmul.f32 %v3510_v52, %v3339_v0  ;;  %v3305_v10 = vadd.f32 %v11773_v61, %v3187_v22  ;;  %v4315_v22 = vld [vmem:[#allocation9 + $0x118] sm:$0xff] }
 0x425   : > { %3669 = vst [vmem:[#allocation2 + $0xdb] sm:$0xff] %v3592_v20  ;;  %v3342_v28 = vmax.f32 %v3306_v21, 0.0  ;;  %v3754_v29 = vld [vmem:[#allocation2 + $0xb1] sm:$0xff]  ;;  %v3755_v13 = vld [vmem:[#allocation2 + $0xb9] sm:$0xff] }
 0x426   : > { %3668 = vst [vmem:[#allocation2 + $0xd3] sm:$0xff] %v3591_v25  ;;  %v3341_v30 = vmax.f32 %v3305_v10, 0.0  ;;  %v8583_v31 = vpop.f32.mrb[28].mxu0  ;;  %8658 = vmatprep.mubr.f32.mxu1 %v3754_v29  ;;  %v4314_v21 = vld [vmem:[#allocation9 + $0x110] sm:$0xff]  ;;  %v4316_v25 = vld [vmem:[#allocation9 + $0x120] sm:$0xff]  ;;  %v4317_v10 = vld [vmem:[#allocation9 + $0x128] sm:$0xff] }
 0x427   : > { %v3594_v32 = vmul.f32 %v3525_v60, %v3342_v28  ;;  %v3308_v33 = vadd.f32 %v8583_v31, %v11773_v61  ;;  %v3197_v34 = vpop.f32.mrb[29].mxu0  ;;  %8659 = vmatmul.mubr.f32.gmra.mrb[22].mxu1 %v3755_v13  ;;  %v9727_v28 = vpack.c.bf16 %v4317_v10, %v4316_v25  ;;  %v3683_v29 = vld [vmem:[#allocation2 + $0x18] sm:$0xff]  ;;  %v4318_v13 = vld [vmem:[#allocation9 + $0x130] sm:$0xff]  ;;  %v3684_v31 = vld [vmem:[#allocation2 + $0x20] sm:$0xff] }
 0x428   : > { %v11836_v35 = vmul.f32 %v3520_v8, %v3341_v30  ;;  %v3307_v36 = vadd.f32 %v11773_v61, %v3197_v34  ;;  %v4319_v30 = vld [vmem:[#allocation9 + $0x138] sm:$0xff]  ;;  %v4320_v34 = vld [vmem:[#allocation9 + $0x140] sm:$0xff]  ;;  %v4648_v10 = vld [vmem:[#allocation9 + $0x190] sm:$0xff] }
 0x429   : > { %3671 = vst [vmem:[#allocation2 + $0xeb] sm:$0xff] %v3594_v32  ;;  %v3344_v23 = vmax.f32 %v3308_v33, 0.0  ;;  %v3756_v37 = vld [vmem:[#allocation2 + $0xc1] sm:$0xff]  ;;  %v3757_v38 = vld [vmem:[#allocation2 + $0xc9] sm:$0xff]  ;;  %v9731_v32 = vpack.c.bf16 %v4319_v30, %v4318_v13 }
 0x42a   : > { %3670 = vst [vmem:[#allocation2 + $0xe3] sm:$0xff] %v11836_v35  ;;  %v3343_v39 = vmax.f32 %v3307_v36, 0.0  ;;  %v8586_v40 = vpop.f32.mrb[30].mxu0  ;;  %8661 = vmatprep.mubr.f32.mxu1 %v3756_v37  ;;  %v3685_v33 = vld [vmem:[#allocation2 + $0x28] sm:$0xff]  ;;  %v4650_v13 = vld [vmem:[#allocation9 + $0x1a0] sm:$0xff] }
 0x42b   : > { %v11840_v43 = vmul.f32 %v3535_v24, %v3344_v23  ;;  %v3310_v45 = vadd.f32 %v8586_v40, %v11773_v61  ;;  %v3207_v46 = vpop.f32.mrb[31].mxu0  ;;  %8662 = vmatmul.mubr.f32.gmra.mrb[24].mxu1 %v3757_v38  ;;  %v9723_v24 = vpack.c.bf16 %v4315_v22, %v4314_v21  ;;  %v4321_v36 = vld [vmem:[#allocation9 + $0x148] sm:$0xff]  ;;  %v3687_v23 = vld [vmem:[#allocation2 + $0x38] sm:$0xff]  ;;  %v4322_v37 = vld [vmem:[#allocation9 + $0x150] sm:$0xff] }
 0x42c   : > { %v11843_v47 = vmul.f32 %v3530_v26, %v3343_v39  ;;  %v3309_v42 = vadd.f32 %v11773_v61, %v3207_v46  ;;  %v3682_v26 = vld [vmem:[#allocation2 + $0x10] sm:$0xff]  ;;  %v3689_v40 = vld [vmem:[#allocation2 + $0x48] sm:$0xff] }
 0x42d   : > { %3673 = vst [vmem:[#allocation2 + $0xfb] sm:$0xff] %v11840_v43  ;;  %v3346_v48 = vmax.f32 %v3310_v45, 0.0  ;;  %v3758_v49 = vld [vmem:[#allocation2 + $0xd1] sm:$0xff]  ;;  %v3759_v51 = vld [vmem:[#allocation2 + $0xd9] sm:$0xff]  ;;  %v4325_v45 = vld [vmem:[#allocation9 + $0x168] sm:$0xff] }
 0x42e   : > { %3672 = vst [vmem:[#allocation2 + $0xf3] sm:$0xff] %v11843_v47  ;;  %v3345_v44 = vmax.f32 %v3309_v42, 0.0  ;;  %v8589_v52 = vpop.f32.mrb[32].mxu0  ;;  %8664 = vmatprep.mubr.f32.mxu1 %v3758_v49  ;;  %v4323_v38 = vld [vmem:[#allocation9 + $0x158] sm:$0xff]  ;;  %v4326_v49 = vld [vmem:[#allocation9 + $0x170] sm:$0xff]  ;;  %v4651_v30 = vld [vmem:[#allocation9 + $0x1a8] sm:$0xff] }
 0x42f   : > { %v11848_v53 = vmul.f32 %v3545_v27, %v3346_v48  ;;  %v3312_v54 = vadd.f32 %v8589_v52, %v11773_v61  ;;  %v3217_v55 = vpop.f32.mrb[33].mxu0  ;;  %8665 = vmatmul.mubr.f32.gmra.mrb[26].mxu1 %v3759_v51  ;;  %v3688_v27 = vld [vmem:[#allocation2 + $0x40] sm:$0xff]  ;;  %v9739_v39 = vpack.c.bf16 %v4323_v38, %v4322_v37  ;;  %v3690_v46 = vld [vmem:[#allocation2 + $0x50] sm:$0xff]  ;;  %v3691_v48 = vld [vmem:[#allocation2 + $0x58] sm:$0xff] }
 0x430   : > { %v11851_v57 = vmul.f32 %v3540_v41, %v3345_v44  ;;  %v3311_v58 = vadd.f32 %v11773_v61, %v3217_v55  ;;  %v4324_v41 = vld [vmem:[#allocation9 + $0x160] sm:$0xff]  ;;  %v4327_v51 = vld [vmem:[#allocation9 + $0x178] sm:$0xff]  ;;  %v4655_v38 = vld [vmem:[#allocation9 + $0x1c8] sm:$0xff] }
 0x431   : > { %3675 = vst [vmem:[#allocation2 + $0x10b] sm:$0xff] %v11848_v53  ;;  %v3348_v1 = vmax.f32 %v3312_v54, 0.0  ;;  %v3760_v2 = vld [vmem:[#allocation2 + $0xe1] sm:$0xff]  ;;  %v3761_v59 = vld [vmem:[#allocation2 + $0xe9] sm:$0xff]  ;;  %v9743_v42 = vpack.c.bf16 %v4325_v45, %v4324_v41  ;;  %v9747_v52 = vpack.c.bf16 %v4327_v51, %v4326_v49  ;;  %v4657_v45 = vld [vmem:[#allocation9 + $0x1d8] sm:$0xff] }
 0x432   : > { %3674 = vst [vmem:[#allocation2 + $0x103] sm:$0xff] %v11851_v57  ;;  %v3347_v3 = vmax.f32 %v3311_v58, 0.0  ;;  %v8592_v4 = vpop.f32.mrb[34].mxu0  ;;  %8667 = vmatprep.mubr.f32.mxu1 %v3760_v2  ;;  %v3692_v44 = vld [vmem:[#allocation2 + $0x60] sm:$0xff]  ;;  %v3693_v54 = vld [vmem:[#allocation2 + $0x68] sm:$0xff]  ;;  %v3694_v58 = vld [vmem:[#allocation2 + $0x70] sm:$0xff] }
 0x433   : > { %v11856_v5 = vmul.f32 %v3555_v56, %v3348_v1  ;;  %v3314_v60 = vadd.f32 %v8592_v4, %v11773_v61  ;;  %v3227_v6 = vpop.f32.mrb[35].mxu0  ;;  %8668 = vmatmul.mubr.f32.gmra.mrb[28].mxu1 %v3761_v59  ;;  %v4646_v55 = vld [vmem:[#allocation9 + $0x180] sm:$0xff]  ;;  %v4647_v56 = vld [vmem:[#allocation9 + $0x188] sm:$0xff]  ;;  %v4656_v41 = vld [vmem:[#allocation9 + $0x1d0] sm:$0xff] }
 0x434   : > { %v11859_v7 = vmul.f32 %v3550_v63, %v3347_v3  ;;  %v3313_v8 = vadd.f32 %v11773_v61, %v3227_v6  ;;  %v9751_v63 = vpack.c.bf16 %v4647_v56, %v4646_v55  ;;  %v3695_v1 = vld [vmem:[#allocation2 + $0x78] sm:$0xff]  ;;  %v3696_v2 = vld [vmem:[#allocation2 + $0x80] sm:$0xff]  ;;  %v3697_v59 = vld [vmem:[#allocation2 + $0x88] sm:$0xff] }
 0x435   : > { %3677 = vst [vmem:[#allocation2 + $0x11b] sm:$0xff] %v11856_v5  ;;  %v3350_v9 = vmax.f32 %v3314_v60, 0.0  ;;  %v3762_v11 = vld [vmem:[#allocation2 + $0xf1] sm:$0xff]  ;;  %v3763_v12 = vld [vmem:[#allocation2 + $0xf9] sm:$0xff]  ;;  %v3701_v6 = vld [vmem:[#allocation2 + $0xa8] sm:$0xff] }
 0x436   : > { %3676 = vst [vmem:[#allocation2 + $0x113] sm:$0xff] %v11859_v7  ;;  %v3349_v62 = vmax.f32 %v3313_v8, 0.0  ;;  %8670 = vmatprep.mubr.f32.mxu1 %v3762_v11  ;;  %v3698_v3 = vld [vmem:[#allocation2 + $0x90] sm:$0xff]  ;;  %v3699_v4 = vld [vmem:[#allocation2 + $0x98] sm:$0xff]  ;;  %v3700_v60 = vld [vmem:[#allocation2 + $0xa0] sm:$0xff] }
 0x437   : > { %v11864_v16 = vmul.f32 %v3565_v14, %v3350_v9  ;;  %8671 = vmatmul.mubr.f32.gmra.mrb[30].mxu1 %v3763_v12  ;;  %v3702_v8 = vld [vmem:[#allocation2 + $0xb0] sm:$0xff]  ;;  %v3703_v9 = vld [vmem:[#allocation2 + $0xb8] sm:$0xff]  ;;  %v3704_v11 = vld [vmem:[#allocation2 + $0xc0] sm:$0xff] }
 0x438   : > { %v11866_v17 = vmul.f32 %v3560_v15, %v3349_v62  ;;  %v3705_v12 = vld [vmem:[#allocation2 + $0xc8] sm:$0xff]  ;;  %v3706_v14 = vld [vmem:[#allocation2 + $0xd0] sm:$0xff]  ;;  %v3707_v62 = vld [vmem:[#allocation2 + $0xd8] sm:$0xff] }
 0x439   : > { %3679 = vst [vmem:[#allocation2 + $0x12b] sm:$0xff] %v11864_v16  ;;  %v3764_v0 = vld [vmem:[#allocation2 + $0x101] sm:$0xff]  ;;  %v3765_v61 = vld [vmem:[#allocation2 + $0x109] sm:$0xff]  ;;  %v4661_v56 = vld [vmem:[#allocation9 + $0x1f8] sm:$0xff] }
 0x43a   : > { %3678 = vst [vmem:[#allocation2 + $0x123] sm:$0xff] %v11866_v17  ;;  %8673 = vmatprep.mubr.f32.mxu1 %v3764_v0  ;;  %v3708_v15 = vld [vmem:[#allocation2 + $0xe0] sm:$0xff]  ;;  %v3709_v0 = vld [vmem:[#allocation2 + $0xe8] sm:$0xff] }
 0x43b   : > { %8674 = vmatmul.mubr.f32.gmra.mrb[32].mxu1 %v3765_v61  ;;  %v3710_v61 = vld [vmem:[#allocation2 + $0xf0] sm:$0xff]  ;;  %v3713_v21 = vld [vmem:[#allocation2 + $0x108] sm:$0xff]  ;;  %v4654_v37 = vld [vmem:[#allocation9 + $0x1c0] sm:$0xff] }
 0x43c   : > { %v4658_v49 = vld [vmem:[#allocation9 + $0x1e0] sm:$0xff]  ;;  %v4659_v51 = vld [vmem:[#allocation9 + $0x1e8] sm:$0xff]  ;;  %v4660_v55 = vld [vmem:[#allocation9 + $0x1f0] sm:$0xff] }
 0x43d   : > { %v3766_v19 = vld [vmem:[#allocation2 + $0x111] sm:$0xff]  ;;  %v3767_v20 = vld [vmem:[#allocation2 + $0x119] sm:$0xff] }
 0x43e   : > { %8676 = vmatprep.mubr.f32.mxu1 %v3766_v19  ;;  %v3711_v19 = vld [vmem:[#allocation2 + $0xf8] sm:$0xff]  ;;  %v3714_v22 = vld [vmem:[#allocation2 + $0x110] sm:$0xff] }
 0x43f   : > { %8677 = vmatmul.mubr.f32.gmra.mrb[34].mxu1 %v3767_v20  ;;  %v3712_v20 = vld [vmem:[#allocation2 + $0x100] sm:$0xff]  ;;  %v3715_v25 = vld [vmem:[#allocation2 + $0x118] sm:$0xff] }
 0x440   : > { %8711 = vmatprep.mubr.f32.mxu1 %v10888_v18 }
 0x443   : > { %8712 = vmatmul.mubr.f32.vlgmr.msra.gmra.mrb[0].mxu1 %v10888_v18  ;;  %v3686_v18 = vld [vmem:[#allocation2 + $0x30] sm:$0xff] }
 0x444   : > { %8714 = vmatprep.mubr.f32.mxu1 %v3682_v26  ;;  %9722 = vmatpush3.bf16.msra.mxu1 %v11766_v50  ;;  %v9735_v50 = vpack.c.bf16 %v4321_v36, %v4320_v34  ;;  %v4649_v26 = vld [vmem:[#allocation9 + $0x198] sm:$0xff]  ;;  %v4652_v34 = vld [vmem:[#allocation9 + $0x1b0] sm:$0xff] }
 0x445   : > { %9724 = vmatprep.subr.bf16.mxu1 %v9723_v24  ;;  %v4653_v36 = vld [vmem:[#allocation9 + $0x1b8] sm:$0xff] }
 0x447   : > { %8715 = vmatmul.mubr.f32.gmra.mrb[2].mxu1 %v3683_v29  ;;  %v9755_v29 = vpack.c.bf16 %v4649_v26, %v4648_v10  ;;  %v11963_v10 = vld [vmem:[#allocation2 + $0x102] sm:$0xff]  ;;  %v11966_v26 = vld [vmem:[#allocation2 + $0x10a] sm:$0xff] }
 0x448   : > { %8717 = vmatprep.mubr.f32.mxu1 %v3684_v31  ;;  %9726 = vmatpush3.bf16.msra.mxu1 %v9723_v24  ;;  %v4275_v24 = vld [vmem:[#allocation2 + $0x2] sm:$0xff]  ;;  %v11873_v31 = vld [vmem:[#allocation2 + $0x12] sm:$0xff] }
 0x449   : > { %9728 = vmatprep.subr.bf16.mxu1 %v9727_v28 }
 0x44b   : > { %8718 = vmatmul.mubr.f32.gmra.mrb[4].mxu1 %v3685_v33  ;;  %v11876_v33 = vld [vmem:[#allocation2 + $0x1a] sm:$0xff] }
 0x44c   : > { %8720 = vmatprep.mubr.f32.mxu1 %v3686_v18  ;;  %9730 = vmatpush3.bf16.msra.mxu1 %v9727_v28  ;;  %v4276_v28 = vld [vmem:[#allocation2 + $0xa] sm:$0xff]  ;;  %v11879_v18 = vld [vmem:[#allocation2 + $0x22] sm:$0xff] }
 0x44d   : > { %9732 = vmatprep.subr.bf16.mxu1 %v9731_v32 }
 0x44f   : > { %8721 = vmatmul.mubr.f32.gmra.mrb[6].mxu1 %v3687_v23  ;;  %v11882_v23 = vld [vmem:[#allocation2 + $0x2a] sm:$0xff] }
 0x450   : > { %8723 = vmatprep.mubr.f32.mxu1 %v3688_v27  ;;  %9734 = vmatpush3.bf16.msra.mxu1 %v9731_v32  ;;  %v9759_v32 = vpack.c.bf16 %v4651_v30, %v4650_v13  ;;  %v11885_v27 = vld [vmem:[#allocation2 + $0x32] sm:$0xff]  ;;  %v4982_v13 = vld [vmem:[#allocation9 + $0x210] sm:$0xff] }
 0x451   : > { %9736 = vmatprep.subr.bf16.mxu1 %v9735_v50  ;;  %v4983_v30 = vld [vmem:[#allocation9 + $0x218] sm:$0xff] }
 0x453   : > { %8724 = vmatmul.mubr.f32.gmra.mrb[8].mxu1 %v3689_v40  ;;  %v11888_v40 = vld [vmem:[#allocation2 + $0x3a] sm:$0xff] }
 0x454   : > { %8726 = vmatprep.mubr.f32.mxu1 %v3690_v46  ;;  %9738 = vmatpush3.bf16.msra.mxu1 %v9735_v50  ;;  %v9763_v50 = vpack.c.bf16 %v4653_v36, %v4652_v34  ;;  %v11891_v46 = vld [vmem:[#allocation2 + $0x42] sm:$0xff]  ;;  %v4984_v34 = vld [vmem:[#allocation9 + $0x220] sm:$0xff] }
 0x455   : > { %9740 = vmatprep.subr.bf16.mxu1 %v9739_v39  ;;  %v4985_v36 = vld [vmem:[#allocation9 + $0x228] sm:$0xff] }
 0x457   : > { %8727 = vmatmul.mubr.f32.gmra.mrb[10].mxu1 %v3691_v48  ;;  %v11894_v48 = vld [vmem:[#allocation2 + $0x4a] sm:$0xff] }
 0x458   : > { %8729 = vmatprep.mubr.f32.mxu1 %v3692_v44  ;;  %9742 = vmatpush3.bf16.msra.mxu1 %v9739_v39  ;;  %v9767_v39 = vpack.c.bf16 %v4655_v38, %v4654_v37  ;;  %v11897_v44 = vld [vmem:[#allocation2 + $0x52] sm:$0xff]  ;;  %v4986_v37 = vld [vmem:[#allocation9 + $0x230] sm:$0xff] }
 0x459   : > { %9744 = vmatprep.subr.bf16.mxu1 %v9743_v42  ;;  %v4987_v38 = vld [vmem:[#allocation9 + $0x238] sm:$0xff] }
 0x45b   : > { %8730 = vmatmul.mubr.f32.gmra.mrb[12].mxu1 %v3693_v54  ;;  %v11900_v54 = vld [vmem:[#allocation2 + $0x5a] sm:$0xff] }
 0x45c   : > { %8732 = vmatprep.mubr.f32.mxu1 %v3694_v58  ;;  %9746 = vmatpush3.bf16.msra.mxu1 %v9743_v42  ;;  %v9771_v42 = vpack.c.bf16 %v4657_v45, %v4656_v41  ;;  %v11903_v58 = vld [vmem:[#allocation2 + $0x62] sm:$0xff]  ;;  %v4991_v45 = vld [vmem:[#allocation9 + $0x258] sm:$0xff] }
 0x45d   : > { %9748 = vmatprep.subr.bf16.mxu1 %v9747_v52  ;;  %v4989_v41 = vld [vmem:[#allocation9 + $0x248] sm:$0xff] }
 0x45f   : > { %8733 = vmatmul.mubr.f32.gmra.mrb[14].mxu1 %v3695_v1  ;;  %v11906_v1 = vld [vmem:[#allocation2 + $0x6a] sm:$0xff] }
 0x460   : > { %8735 = vmatprep.mubr.f32.mxu1 %v3696_v2  ;;  %9750 = vmatpush3.bf16.msra.mxu1 %v9747_v52  ;;  %v9775_v52 = vpack.c.bf16 %v4659_v51, %v4658_v49  ;;  %v4980_v2 = vld [vmem:[#allocation9 + $0x200] sm:$0xff]  ;;  %v4995_v49 = vld [vmem:[#allocation9 + $0x278] sm:$0xff] }
 0x461   : > { %9752 = vmatprep.subr.bf16.mxu1 %v9751_v63  ;;  %v5314_v51 = vld [vmem:[#allocation9 + $0x280] sm:$0xff] }
 0x463   : > { %8736 = vmatmul.mubr.f32.gmra.mrb[16].mxu1 %v3697_v59  ;;  %v4981_v59 = vld [vmem:[#allocation9 + $0x208] sm:$0xff] }
 0x464   : > { %8738 = vmatprep.mubr.f32.mxu1 %v3698_v3  ;;  %v11909_v3 = vld [vmem:[#allocation2 + $0x72] sm:$0xff] }
 0x467   : > { %8739 = vmatmul.mubr.f32.gmra.mrb[18].mxu1 %v3699_v4  ;;  %v9783_v4 = vpack.c.bf16 %v4981_v59, %v4980_v2  ;;  %v4944_v2 = vld [vmem:[#allocation2 + $0x1b] sm:$0xff] }
 0x468   : > { %8741 = vmatprep.mubr.f32.mxu1 %v3700_v60  ;;  %v11912_v60 = vld [vmem:[#allocation2 + $0x7a] sm:$0xff] }
 0x469   : > { %v5318_v59 = vld [vmem:[#allocation9 + $0x2a0] sm:$0xff] }
 0x46b   : > { %8742 = vmatmul.mubr.f32.gmra.mrb[20].mxu1 %v3701_v6  ;;  %v11915_v6 = vld [vmem:[#allocation2 + $0x82] sm:$0xff] }
 0x46c   : > { %8744 = vmatprep.mubr.f32.mxu1 %v3702_v8  ;;  %v11918_v8 = vld [vmem:[#allocation2 + $0x8a] sm:$0xff] }
 0x46f   : > { %8745 = vmatmul.mubr.f32.gmra.mrb[22].mxu1 %v3703_v9  ;;  %v11921_v9 = vld [vmem:[#allocation2 + $0x92] sm:$0xff] }
 0x470   : > { %8747 = vmatprep.mubr.f32.mxu1 %v3704_v11  ;;  %v11924_v11 = vld [vmem:[#allocation2 + $0x9a] sm:$0xff] }
 0x473   : > { %8748 = vmatmul.mubr.f32.gmra.mrb[24].mxu1 %v3705_v12  ;;  %v11927_v12 = vld [vmem:[#allocation2 + $0xa2] sm:$0xff] }
 0x474   : > { %8750 = vmatprep.mubr.f32.mxu1 %v3706_v14  ;;  %v11930_v14 = vld [vmem:[#allocation2 + $0xaa] sm:$0xff] }
 0x477   : > { %8751 = vmatmul.mubr.f32.gmra.mrb[26].mxu1 %v3707_v62  ;;  %v11933_v62 = vld [vmem:[#allocation2 + $0xb2] sm:$0xff] }
 0x478   : > { %8753 = vmatprep.mubr.f32.mxu1 %v3708_v15  ;;  %v11936_v15 = vld [vmem:[#allocation2 + $0xba] sm:$0xff] }
 0x47b   : > { %8754 = vmatmul.mubr.f32.gmra.mrb[28].mxu1 %v3709_v0  ;;  %v11939_v0 = vld [vmem:[#allocation2 + $0xc2] sm:$0xff] }
 0x47c   : > { %8756 = vmatprep.mubr.f32.mxu1 %v3710_v61  ;;  %v11942_v61 = vld [vmem:[#allocation2 + $0xca] sm:$0xff] }
 0x47f   : > { %8757 = vmatmul.mubr.f32.gmra.mrb[30].mxu1 %v3711_v19  ;;  %v11945_v19 = vld [vmem:[#allocation2 + $0xd2] sm:$0xff] }
 0x480   : > { %8759 = vmatprep.mubr.f32.mxu1 %v3712_v20  ;;  %v11948_v20 = vld [vmem:[#allocation2 + $0xda] sm:$0xff] }
 0x483   : > { %8760 = vmatmul.mubr.f32.gmra.mrb[32].mxu1 %v3713_v21  ;;  %v11951_v21 = vld [vmem:[#allocation2 + $0xe2] sm:$0xff] }
 0x484   : > { %8762 = vmatprep.mubr.f32.mxu1 %v3714_v22  ;;  %v11954_v22 = vld [vmem:[#allocation2 + $0xea] sm:$0xff] }
 0x487   : > { %8763 = vmatmul.mubr.f32.gmra.mrb[34].mxu1 %v3715_v25  ;;  %v11960_v25 = vld [vmem:[#allocation2 + $0xfa] sm:$0xff] }
 0x488   : > { %8797 = vmatprep.mubr.f32.mxu1 %v4275_v24  ;;  %v11957_v24 = vld [vmem:[#allocation2 + $0xf2] sm:$0xff] }
 0x48b   : > { %8798 = vmatmul.mubr.f32.vlgmr.msra.gmra.mrb[0].mxu1 %v4276_v28  ;;  %v11969_v28 = vld [vmem:[#allocation2 + $0x112] sm:$0xff] }
 0x48c   : > { %8800 = vmatprep.mubr.f32.mxu1 %v11873_v31  ;;  %9754 = vmatpush3.bf16.msra.mxu1 %v9751_v63  ;;  %v9779_v63 = vpack.c.bf16 %v4661_v56, %v4660_v55  ;;  %v4644_v55 = vld [vmem:[#allocation2 + $0x12a] sm:$0xff] }
 0x48d   : > { %9756 = vmatprep.subr.bf16.mxu1 %v9755_v29  ;;  %v5316_v56 = vld [vmem:[#allocation9 + $0x290] sm:$0xff] }
 0x48f   : > { %8801 = vmatmul.mubr.f32.gmra.mrb[2].mxu1 %v11876_v33 }
 0x490   : > { %8803 = vmatprep.mubr.f32.mxu1 %v11879_v18  ;;  %9758 = vmatpush3.bf16.msra.mxu1 %v9755_v29  ;;  %v11972_v29 = vld [vmem:[#allocation2 + $0x11a] sm:$0xff] }
 0x491   : > { %9760 = vmatprep.subr.bf16.mxu1 %v9759_v32 }
 0x493   : > { %8804 = vmatmul.mubr.f32.gmra.mrb[4].mxu1 %v11882_v23 }
 0x494   : > { %8806 = vmatprep.mubr.f32.mxu1 %v11885_v27  ;;  %9762 = vmatpush3.bf16.msra.mxu1 %v9759_v32  ;;  %v9787_v32 = vpack.c.bf16 %v4983_v30, %v4982_v13  ;;  %v4954_v13 = vld [vmem:[#allocation2 + $0x6b] sm:$0xff] }
 0x495   : > { %9764 = vmatprep.subr.bf16.mxu1 %v9763_v50  ;;  %v5328_v30 = vld [vmem:[#allocation9 + $0x2f0] sm:$0xff] }
 0x497   : > { %8807 = vmatmul.mubr.f32.gmra.mrb[6].mxu1 %v11888_v40 }
 0x498   : > { %8809 = vmatprep.mubr.f32.mxu1 %v11891_v46  ;;  %9766 = vmatpush3.bf16.msra.mxu1 %v9763_v50  ;;  %v9791_v50 = vpack.c.bf16 %v4985_v36, %v4984_v34  ;;  %v4955_v34 = vld [vmem:[#allocation2 + $0x73] sm:$0xff] }
 0x499   : > { %9768 = vmatprep.subr.bf16.mxu1 %v9767_v39 }
 0x49b   : > { %8810 = vmatmul.mubr.f32.gmra.mrb[8].mxu1 %v11894_v48 }
 0x49c   : > { %8812 = vmatprep.mubr.f32.mxu1 %v11897_v44  ;;  %9770 = vmatpush3.bf16.msra.mxu1 %v9767_v39  ;;  %v9795_v39 = vpack.c.bf16 %v4987_v38, %v4986_v37  ;;  %v5648_v37 = vld [vmem:[#allocation9 + $0x300] sm:$0xff]  ;;  %v5649_v38 = vld [vmem:[#allocation9 + $0x308] sm:$0xff] }
 0x49d   : > { %9772 = vmatprep.subr.bf16.mxu1 %v9771_v42 }
 0x49f   : > { %8813 = vmatmul.mubr.f32.gmra.mrb[10].mxu1 %v11900_v54 }
 0x4a0   : > { %8815 = vmatprep.mubr.f32.mxu1 %v11903_v58  ;;  %9774 = vmatpush3.bf16.msra.mxu1 %v9771_v42  ;;  %v4993_v42 = vld [vmem:[#allocation9 + $0x268] sm:$0xff] }
 0x4a1   : > { %9776 = vmatprep.subr.bf16.mxu1 %v9775_v52 }
 0x4a3   : > { %8816 = vmatmul.mubr.f32.gmra.mrb[12].mxu1 %v11906_v1 }
 0x4a4   : > { %8818 = vmatprep.mubr.f32.mxu1 %v11909_v3  ;;  %9778 = vmatpush3.bf16.msra.mxu1 %v9775_v52 }
 0x4a5   : > { %9780 = vmatprep.subr.bf16.mxu1 %v9779_v63 }
 0x4a7   : > { %8819 = vmatmul.mubr.f32.gmra.mrb[14].mxu1 %v11912_v60 }
 0x4a8   : > { %8821 = vmatprep.mubr.f32.mxu1 %v11915_v6  ;;  %9782 = vmatpush3.bf16.msra.mxu1 %v9779_v63  ;;  %v4943_v63 = vld [vmem:[#allocation2 + $0x13] sm:$0xff] }
 0x4a9   : > { %9784 = vmatprep.subr.bf16.mxu1 %v9783_v4 }
 0x4ab   : > { %8822 = vmatmul.mubr.f32.gmra.mrb[16].mxu1 %v11918_v8 }
 0x4ac   : > { %8824 = vmatprep.mubr.f32.mxu1 %v11921_v9 }
 0x4af   : > { %8825 = vmatmul.mubr.f32.gmra.mrb[18].mxu1 %v11924_v11 }
 0x4b0   : > { %8827 = vmatprep.mubr.f32.mxu1 %v11927_v12 }
 0x4b3   : > { %8828 = vmatmul.mubr.f32.gmra.mrb[20].mxu1 %v11930_v14 }
 0x4b4   : > { %8830 = vmatprep.mubr.f32.mxu1 %v11933_v62 }
 0x4b7   : > { %8831 = vmatmul.mubr.f32.gmra.mrb[22].mxu1 %v11936_v15 }
 0x4b8   : > { %8833 = vmatprep.mubr.f32.mxu1 %v11939_v0 }
 0x4bb   : > { %8834 = vmatmul.mubr.f32.gmra.mrb[24].mxu1 %v11942_v61 }
 0x4bc   : > { %8836 = vmatprep.mubr.f32.mxu1 %v11945_v19 }
 0x4bf   : > { %8837 = vmatmul.mubr.f32.gmra.mrb[26].mxu1 %v11948_v20 }
 0x4c0   : > { %8839 = vmatprep.mubr.f32.mxu1 %v11951_v21 }
 0x4c3   : > { %8840 = vmatmul.mubr.f32.gmra.mrb[28].mxu1 %v11954_v22 }
 0x4c4   : > { %8842 = vmatprep.mubr.f32.mxu1 %v11957_v24 }
 0x4c7   : > { %8843 = vmatmul.mubr.f32.gmra.mrb[30].mxu1 %v11960_v25 }
 0x4c8   : > { %8845 = vmatprep.mubr.f32.mxu1 %v11963_v10 }
 0x4cb   : > { %8846 = vmatmul.mubr.f32.gmra.mrb[32].mxu1 %v11966_v26 }
 0x4cc   : > { %8848 = vmatprep.mubr.f32.mxu1 %v11969_v28 }
 0x4cf   : > { %8849 = vmatmul.mubr.f32.gmra.mrb[34].mxu1 %v11972_v29 }
 0x4d0   : > { %8883 = vmatprep.mubr.f32.mxu1 %v11873_v31  ;;  %v4988_v31 = vld [vmem:[#allocation9 + $0x240] sm:$0xff] }
 0x4d3   : > { %8884 = vmatmul.mubr.f32.vlgmr.msra.gmra.mrb[0].mxu1 %v11876_v33  ;;  %v9799_v33 = vpack.c.bf16 %v4989_v41, %v4988_v31  ;;  %v9847_v31 = vpack.c.bf16 %v5649_v38, %v5648_v37  ;;  %v4958_v41 = vld [vmem:[#allocation2 + $0x8b] sm:$0xff]  ;;  %v12084_v37 = vld [vmem:[#allocation2 + $0xd4] sm:$0xff]  ;;  %v12087_v38 = vld [vmem:[#allocation2 + $0xdc] sm:$0xff] }
 0x4d4   : > { %8886 = vmatprep.mubr.f32.mxu1 %v11879_v18  ;;  %9786 = vmatpush3.bf16.msra.mxu1 %v9783_v4  ;;  %v4990_v18 = vld [vmem:[#allocation9 + $0x250] sm:$0xff] }
 0x4d5   : > { %9788 = vmatprep.subr.bf16.mxu1 %v9787_v32  ;;  %v4945_v4 = vld [vmem:[#allocation2 + $0x23] sm:$0xff] }
 0x4d7   : > { %8887 = vmatmul.mubr.f32.gmra.mrb[2].mxu1 %v11882_v23  ;;  %v9803_v23 = vpack.c.bf16 %v4991_v45, %v4990_v18  ;;  %v4960_v18 = vld [vmem:[#allocation2 + $0x9b] sm:$0xff]  ;;  %v4961_v45 = vld [vmem:[#allocation2 + $0xa3] sm:$0xff] }
 0x4d8   : > { %8889 = vmatprep.mubr.f32.mxu1 %v11885_v27  ;;  %9790 = vmatpush3.bf16.msra.mxu1 %v9787_v32  ;;  %v4992_v27 = vld [vmem:[#allocation9 + $0x260] sm:$0xff]  ;;  %v5329_v32 = vld [vmem:[#allocation9 + $0x2f8] sm:$0xff] }
 0x4d9   : > { %9792 = vmatprep.subr.bf16.mxu1 %v9791_v50  ;;  %v9843_v36 = vpack.c.bf16 %v5329_v32, %v5328_v30  ;;  %v12069_v30 = vld [vmem:[#allocation2 + $0xac] sm:$0xff]  ;;  %v12072_v32 = vld [vmem:[#allocation2 + $0xb4] sm:$0xff] }
 0x4db   : > { %8890 = vmatmul.mubr.f32.gmra.mrb[4].mxu1 %v11888_v40  ;;  %v9807_v40 = vpack.c.bf16 %v4993_v42, %v4992_v27  ;;  %v4963_v27 = vld [vmem:[#allocation2 + $0xb3] sm:$0xff]  ;;  %v4964_v42 = vld [vmem:[#allocation2 + $0xbb] sm:$0xff] }
 0x4dc   : > { %8892 = vmatprep.mubr.f32.mxu1 %v11891_v46  ;;  %9794 = vmatpush3.bf16.msra.mxu1 %v9791_v50  ;;  %v4994_v46 = vld [vmem:[#allocation9 + $0x270] sm:$0xff]  ;;  %v4956_v50 = vld [vmem:[#allocation2 + $0x7b] sm:$0xff] }
 0x4dd   : > { %9796 = vmatprep.subr.bf16.mxu1 %v9795_v39 }
 0x4df   : > { %8893 = vmatmul.mubr.f32.gmra.mrb[6].mxu1 %v11894_v48  ;;  %v9811_v48 = vpack.c.bf16 %v4995_v49, %v4994_v46  ;;  %v4966_v46 = vld [vmem:[#allocation2 + $0xcb] sm:$0xff]  ;;  %v4967_v49 = vld [vmem:[#allocation2 + $0xd3] sm:$0xff] }
 0x4e0   : > { %8895 = vmatprep.mubr.f32.mxu1 %v11897_v44  ;;  %9798 = vmatpush3.bf16.msra.mxu1 %v9795_v39  ;;  %v5315_v44 = vld [vmem:[#allocation9 + $0x288] sm:$0xff] }
 0x4e1   : > { %9800 = vmatprep.subr.bf16.mxu1 %v9799_v33  ;;  %v9815_v52 = vpack.c.bf16 %v5315_v44, %v5314_v51  ;;  %v4957_v39 = vld [vmem:[#allocation2 + $0x83] sm:$0xff]  ;;  %v4970_v51 = vld [vmem:[#allocation2 + $0xeb] sm:$0xff] }
 0x4e2   : > { %v5650_v44 = vld [vmem:[#allocation9 + $0x310] sm:$0xff] }
 0x4e3   : > { %8896 = vmatmul.mubr.f32.gmra.mrb[8].mxu1 %v11900_v54  ;;  %v4643_v54 = vld [vmem:[#allocation2 + $0x122] sm:$0xff] }
 0x4e4   : > { %8898 = vmatprep.mubr.f32.mxu1 %v11903_v58  ;;  %9802 = vmatpush3.bf16.msra.mxu1 %v9799_v33  ;;  %v5317_v58 = vld [vmem:[#allocation9 + $0x298] sm:$0xff] }
 0x4e5   : > { %9804 = vmatprep.subr.bf16.mxu1 %v9803_v23  ;;  %v4959_v33 = vld [vmem:[#allocation2 + $0x93] sm:$0xff] }
 0x4e7   : > { %8899 = vmatmul.mubr.f32.gmra.mrb[10].mxu1 %v11906_v1  ;;  %v9819_v1 = vpack.c.bf16 %v5317_v58, %v5316_v56  ;;  %v12027_v58 = vld [vmem:[#allocation2 + $0x3c] sm:$0xff] }
 0x4e8   : > { %8901 = vmatprep.mubr.f32.mxu1 %v11909_v3  ;;  %9806 = vmatpush3.bf16.msra.mxu1 %v9803_v23  ;;  %v5319_v3 = vld [vmem:[#allocation9 + $0x2a8] sm:$0xff]  ;;  %v4962_v23 = vld [vmem:[#allocation2 + $0xab] sm:$0xff] }
 0x4e9   : > { %9808 = vmatprep.subr.bf16.mxu1 %v9807_v40 }
 0x4eb   : > { %8902 = vmatmul.mubr.f32.gmra.mrb[12].mxu1 %v11912_v60  ;;  %v9823_v60 = vpack.c.bf16 %v5319_v3, %v5318_v59  ;;  %v12033_v3 = vld [vmem:[#allocation2 + $0x4c] sm:$0xff] }
 0x4ec   : > { %8904 = vmatprep.mubr.f32.mxu1 %v11915_v6  ;;  %9810 = vmatpush3.bf16.msra.mxu1 %v9807_v40  ;;  %v4946_v6 = vld [vmem:[#allocation2 + $0x2b] sm:$0xff]  ;;  %v4965_v40 = vld [vmem:[#allocation2 + $0xc3] sm:$0xff] }
 0x4ed   : > { %9812 = vmatprep.subr.bf16.mxu1 %v9811_v48 }
 0x4ef   : > { %8905 = vmatmul.mubr.f32.gmra.mrb[14].mxu1 %v11918_v8  ;;  %v5320_v8 = vld [vmem:[#allocation9 + $0x2b0] sm:$0xff] }
 0x4f0   : > { %8907 = vmatprep.mubr.f32.mxu1 %v11921_v9  ;;  %9814 = vmatpush3.bf16.msra.mxu1 %v9811_v48  ;;  %v5321_v9 = vld [vmem:[#allocation9 + $0x2b8] sm:$0xff]  ;;  %v4968_v48 = vld [vmem:[#allocation2 + $0xdb] sm:$0xff] }
 0x4f1   : > { %9816 = vmatprep.subr.bf16.mxu1 %v9815_v52 }
 0x4f3   : > { %8908 = vmatmul.mubr.f32.gmra.mrb[16].mxu1 %v11924_v11  ;;  %v4947_v11 = vld [vmem:[#allocation2 + $0x33] sm:$0xff] }
 0x4f4   : > { %8910 = vmatprep.mubr.f32.mxu1 %v11927_v12  ;;  %v9827_v12 = vpack.c.bf16 %v5321_v9, %v5320_v8  ;;  %v12039_v9 = vld [vmem:[#allocation2 + $0x5c] sm:$0xff] }
 0x4f7   : > { %8911 = vmatmul.mubr.f32.gmra.mrb[18].mxu1 %v11930_v14  ;;  %v4948_v14 = vld [vmem:[#allocation2 + $0x3b] sm:$0xff] }
 0x4f8   : > { %8913 = vmatprep.mubr.f32.mxu1 %v11933_v62  ;;  %v5322_v62 = vld [vmem:[#allocation9 + $0x2c0] sm:$0xff] }
 0x4fb   : > { %8914 = vmatmul.mubr.f32.gmra.mrb[20].mxu1 %v11936_v15  ;;  %v5323_v15 = vld [vmem:[#allocation9 + $0x2c8] sm:$0xff] }
 0x4fc   : > { %8916 = vmatprep.mubr.f32.mxu1 %v11939_v0  ;;  %v4949_v0 = vld [vmem:[#allocation2 + $0x43] sm:$0xff] }
 0x4ff   : > { %8917 = vmatmul.mubr.f32.gmra.mrb[22].mxu1 %v11942_v61  ;;  %v9831_v61 = vpack.c.bf16 %v5323_v15, %v5322_v62  ;;  %v12045_v15 = vld [vmem:[#allocation2 + $0x6c] sm:$0xff] }
 0x500   : > { %8919 = vmatprep.mubr.f32.mxu1 %v11945_v19  ;;  %v4950_v19 = vld [vmem:[#allocation2 + $0x4b] sm:$0xff] }
 0x503   : > { %8920 = vmatmul.mubr.f32.gmra.mrb[24].mxu1 %v11948_v20  ;;  %v5324_v20 = vld [vmem:[#allocation9 + $0x2d0] sm:$0xff] }
 0x504   : > { %8922 = vmatprep.mubr.f32.mxu1 %v11951_v21  ;;  %v5325_v21 = vld [vmem:[#allocation9 + $0x2d8] sm:$0xff] }
 0x507   : > { %8923 = vmatmul.mubr.f32.gmra.mrb[26].mxu1 %v11954_v22  ;;  %v4951_v22 = vld [vmem:[#allocation2 + $0x53] sm:$0xff] }
 0x508   : > { %8925 = vmatprep.mubr.f32.mxu1 %v11957_v24  ;;  %v9835_v24 = vpack.c.bf16 %v5325_v21, %v5324_v20  ;;  %v12051_v21 = vld [vmem:[#allocation2 + $0x7c] sm:$0xff] }
 0x50b   : > { %8926 = vmatmul.mubr.f32.gmra.mrb[28].mxu1 %v11960_v25  ;;  %v4952_v25 = vld [vmem:[#allocation2 + $0x5b] sm:$0xff] }
 0x50c   : > { %8928 = vmatprep.mubr.f32.mxu1 %v11963_v10  ;;  %v5326_v10 = vld [vmem:[#allocation9 + $0x2e0] sm:$0xff] }
 0x50f   : > { %8929 = vmatmul.mubr.f32.gmra.mrb[30].mxu1 %v11966_v26  ;;  %v5327_v26 = vld [vmem:[#allocation9 + $0x2e8] sm:$0xff] }
 0x510   : > { %8931 = vmatprep.mubr.f32.mxu1 %v11969_v28  ;;  %v4953_v28 = vld [vmem:[#allocation2 + $0x63] sm:$0xff] }
 0x513   : > { %8932 = vmatmul.mubr.f32.gmra.mrb[32].mxu1 %v11972_v29  ;;  %v9839_v29 = vpack.c.bf16 %v5327_v26, %v5326_v10  ;;  %v12057_v26 = vld [vmem:[#allocation2 + $0x8c] sm:$0xff] }
 0x514   : > { %8934 = vmatprep.mubr.f32.mxu1 %v4643_v54 }
 0x517   : > { %8935 = vmatmul.mubr.f32.gmra.mrb[34].mxu1 %v4644_v55  ;;  %v5652_v55 = vld [vmem:[#allocation9 + $0x320] sm:$0xff] }
 0x518   : > { %8969 = vmatprep.mubr.f32.mxu1 %v4943_v63  ;;  %v5656_v63 = vld [vmem:[#allocation9 + $0x340] sm:$0xff] }
 0x51b   : > { %8970 = vmatmul.mubr.f32.vlgmr.msra.gmra.mrb[0].mxu1 %v4944_v2  ;;  %v12030_v2 = vld [vmem:[#allocation2 + $0x44] sm:$0xff] }
 0x51c   : > { %8972 = vmatprep.mubr.f32.mxu1 %v4945_v4  ;;  %9818 = vmatpush3.bf16.msra.mxu1 %v9815_v52  ;;  %v5651_v52 = vld [vmem:[#allocation9 + $0x318] sm:$0xff]  ;;  %v5658_v4 = vld [vmem:[#allocation9 + $0x350] sm:$0xff] }
 0x51d   : > { %9820 = vmatprep.subr.bf16.mxu1 %v9819_v1  ;;  %v9851_v54 = vpack.c.bf16 %v5651_v52, %v5650_v44  ;;  %v5987_v44 = vld [vmem:[#allocation9 + $0x3a8] sm:$0xff] }
 0x51f   : > { %8973 = vmatmul.mubr.f32.gmra.mrb[2].mxu1 %v4946_v6  ;;  %v12036_v6 = vld [vmem:[#allocation2 + $0x54] sm:$0xff] }
 0x520   : > { %8975 = vmatprep.mubr.f32.mxu1 %v4947_v11  ;;  %9822 = vmatpush3.bf16.msra.mxu1 %v9819_v1  ;;  %v5657_v1 = vld [vmem:[#allocation9 + $0x348] sm:$0xff]  ;;  %v5660_v11 = vld [vmem:[#allocation9 + $0x360] sm:$0xff] }
 0x521   : > { %9824 = vmatprep.subr.bf16.mxu1 %v9823_v60  ;;  %v9863_v59 = vpack.c.bf16 %v5657_v1, %v5656_v63  ;;  %v5997_v63 = vld [vmem:[#allocation9 + $0x3f8] sm:$0xff] }
 0x523   : > { %8976 = vmatmul.mubr.f32.gmra.mrb[4].mxu1 %v4948_v14  ;;  %v12042_v14 = vld [vmem:[#allocation2 + $0x64] sm:$0xff] }
 0x524   : > { %8978 = vmatprep.mubr.f32.mxu1 %v4949_v0  ;;  %9826 = vmatpush3.bf16.msra.mxu1 %v9823_v60  ;;  %v5659_v60 = vld [vmem:[#allocation9 + $0x358] sm:$0xff]  ;;  %v5662_v0 = vld [vmem:[#allocation9 + $0x370] sm:$0xff] }
 0x525   : > { %9828 = vmatprep.subr.bf16.mxu1 %v9827_v12  ;;  %v9867_v8 = vpack.c.bf16 %v5659_v60, %v5658_v4  ;;  %v5645_v4 = vld [vmem:[#allocation2 + $0x134] sm:$0xff]  ;;  %v5646_v60 = vld [vmem:[#allocation2 + $0x13c] sm:$0xff] }
 0x527   : > { %8979 = vmatmul.mubr.f32.gmra.mrb[6].mxu1 %v4950_v19  ;;  %v12048_v19 = vld [vmem:[#allocation2 + $0x74] sm:$0xff] }
 0x528   : > { %8981 = vmatprep.mubr.f32.mxu1 %v4951_v22  ;;  %9830 = vmatpush3.bf16.msra.mxu1 %v9827_v12  ;;  %v5661_v12 = vld [vmem:[#allocation9 + $0x368] sm:$0xff]  ;;  %v5982_v22 = vld [vmem:[#allocation9 + $0x380] sm:$0xff] }
 0x529   : > { %9832 = vmatprep.subr.bf16.mxu1 %v9831_v61  ;;  %v9871_v62 = vpack.c.bf16 %v5661_v12, %v5660_v11  ;;  %v5946_v12 = vld [vmem:[#allocation2 + $0x2d] sm:$0xff] }
 0x52b   : > { %8982 = vmatmul.mubr.f32.gmra.mrb[8].mxu1 %v4952_v25  ;;  %v12054_v25 = vld [vmem:[#allocation2 + $0x84] sm:$0xff] }
 0x52c   : > { %8984 = vmatprep.mubr.f32.mxu1 %v4953_v28  ;;  %9834 = vmatpush3.bf16.msra.mxu1 %v9831_v61  ;;  %v5663_v61 = vld [vmem:[#allocation9 + $0x378] sm:$0xff] }
 0x52d   : > { %9836 = vmatprep.subr.bf16.mxu1 %v9835_v24  ;;  %v9875_v20 = vpack.c.bf16 %v5663_v61, %v5662_v0  ;;  %v12060_v28 = vld [vmem:[#allocation2 + $0x94] sm:$0xff]  ;;  %v5948_v61 = vld [vmem:[#allocation2 + $0x3d] sm:$0xff] }
 0x52f   : > { %8985 = vmatmul.mubr.f32.gmra.mrb[10].mxu1 %v4954_v13  ;;  %v12066_v13 = vld [vmem:[#allocation2 + $0xa4] sm:$0xff] }
 0x530   : > { %8987 = vmatprep.mubr.f32.mxu1 %v4955_v34  ;;  %9838 = vmatpush3.bf16.msra.mxu1 %v9835_v24  ;;  %v5983_v24 = vld [vmem:[#allocation9 + $0x388] sm:$0xff] }
 0x531   : > { %9840 = vmatprep.subr.bf16.mxu1 %v9839_v29  ;;  %v9879_v10 = vpack.c.bf16 %v5983_v24, %v5982_v22  ;;  %v12075_v34 = vld [vmem:[#allocation2 + $0xbc] sm:$0xff]  ;;  %v5950_v24 = vld [vmem:[#allocation2 + $0x4d] sm:$0xff] }
 0x533   : > { %8988 = vmatmul.mubr.f32.gmra.mrb[12].mxu1 %v4956_v50  ;;  %v12081_v50 = vld [vmem:[#allocation2 + $0xcc] sm:$0xff] }
 0x534   : > { %8990 = vmatprep.mubr.f32.mxu1 %v4957_v39  ;;  %9842 = vmatpush3.bf16.msra.mxu1 %v9839_v29  ;;  %v12063_v29 = vld [vmem:[#allocation2 + $0x9c] sm:$0xff]  ;;  %v12090_v39 = vld [vmem:[#allocation2 + $0xe4] sm:$0xff] }
 0x535   : > { %9844 = vmatprep.subr.bf16.mxu1 %v9843_v36 }
 0x537   : > { %8991 = vmatmul.mubr.f32.gmra.mrb[14].mxu1 %v4958_v41  ;;  %v12096_v41 = vld [vmem:[#allocation2 + $0xf4] sm:$0xff] }
 0x538   : > { %8993 = vmatprep.mubr.f32.mxu1 %v4959_v33  ;;  %9846 = vmatpush3.bf16.msra.mxu1 %v9843_v36  ;;  %v12078_v36 = vld [vmem:[#allocation2 + $0xc4] sm:$0xff]  ;;  %v12099_v33 = vld [vmem:[#allocation2 + $0xfc] sm:$0xff] }
 0x539   : > { %9848 = vmatprep.subr.bf16.mxu1 %v9847_v31 }
 0x53b   : > { %8994 = vmatmul.mubr.f32.gmra.mrb[16].mxu1 %v4960_v18  ;;  %v12102_v18 = vld [vmem:[#allocation2 + $0x104] sm:$0xff] }
 0x53c   : > { %8996 = vmatprep.mubr.f32.mxu1 %v4961_v45  ;;  %v12105_v45 = vld [vmem:[#allocation2 + $0x10c] sm:$0xff] }
 0x53f   : > { %8997 = vmatmul.mubr.f32.gmra.mrb[18].mxu1 %v4962_v23  ;;  %v12108_v23 = vld [vmem:[#allocation2 + $0x114] sm:$0xff] }
 0x540   : > { %8999 = vmatprep.mubr.f32.mxu1 %v4963_v27  ;;  %v12111_v27 = vld [vmem:[#allocation2 + $0x11c] sm:$0xff] }
 0x543   : > { %9000 = vmatmul.mubr.f32.gmra.mrb[20].mxu1 %v4964_v42  ;;  %v12114_v42 = vld [vmem:[#allocation2 + $0x124] sm:$0xff] }
 0x544   : > { %9002 = vmatprep.mubr.f32.mxu1 %v4965_v40  ;;  %v12117_v40 = vld [vmem:[#allocation2 + $0x12c] sm:$0xff] }
 0x547   : > { %9003 = vmatmul.mubr.f32.gmra.mrb[22].mxu1 %v4966_v46  ;;  %v5984_v46 = vld [vmem:[#allocation9 + $0x390] sm:$0xff] }
 0x548   : > { %9005 = vmatprep.mubr.f32.mxu1 %v4967_v49  ;;  %v5985_v49 = vld [vmem:[#allocation9 + $0x398] sm:$0xff] }
 0x54b   : > { %9006 = vmatmul.mubr.f32.gmra.mrb[24].mxu1 %v4968_v48  ;;  %v9883_v48 = vpack.c.bf16 %v5985_v49, %v5984_v46  ;;  %v5962_v46 = vld [vmem:[#allocation2 + $0xad] sm:$0xff]  ;;  %v5963_v49 = vld [vmem:[#allocation2 + $0xb5] sm:$0xff] }
 0x54c   : > { %9008 = vmatprep.mubr.f32.mxu1 %v11836_v35  ;;  %v5277_v35 = vld [vmem:[#allocation2 + $0x14] sm:$0xff] }
 0x54f   : > { %9009 = vmatmul.mubr.f32.gmra.mrb[26].mxu1 %v4970_v51  ;;  %v5986_v51 = vld [vmem:[#allocation9 + $0x3a0] sm:$0xff] }
 0x550   : > { %9011 = vmatprep.mubr.f32.mxu1 %v11843_v47  ;;  %v5278_v47 = vld [vmem:[#allocation2 + $0x1c] sm:$0xff]  ;;  %v9887_v52 = vpack.c.bf16 %v5987_v44, %v5986_v51  ;;  %v5965_v51 = vld [vmem:[#allocation2 + $0xc5] sm:$0xff]  ;;  %v5966_v44 = vld [vmem:[#allocation2 + $0xcd] sm:$0xff] }
 0x553   : > { %9012 = vmatmul.mubr.f32.gmra.mrb[28].mxu1 %v11840_v43  ;;  %v5653_v43 = vld [vmem:[#allocation9 + $0x328] sm:$0xff] }
 0x554   : > { %9014 = vmatprep.mubr.f32.mxu1 %v11851_v57  ;;  %v12018_v57 = vld [vmem:[#allocation2 + $0x24] sm:$0xff] }
 0x557   : > { %9015 = vmatmul.mubr.f32.gmra.mrb[30].mxu1 %v11848_v53  ;;  %v9855_v53 = vpack.c.bf16 %v5653_v43, %v5652_v55  ;;  %v5990_v55 = vld [vmem:[#allocation9 + $0x3c0] sm:$0xff]  ;;  %v5991_v43 = vld [vmem:[#allocation9 + $0x3c8] sm:$0xff] }
 0x558   : > { %9017 = vmatprep.mubr.f32.mxu1 %v11859_v7  ;;  %v5654_v7 = vld [vmem:[#allocation9 + $0x330] sm:$0xff] }
 0x55b   : > { %9018 = vmatmul.mubr.f32.gmra.mrb[32].mxu1 %v11856_v5  ;;  %v12021_v5 = vld [vmem:[#allocation2 + $0x2c] sm:$0xff] }
 0x55c   : > { %9020 = vmatprep.mubr.f32.mxu1 %v11866_v17  ;;  %v5655_v17 = vld [vmem:[#allocation9 + $0x338] sm:$0xff] }
 0x55d   : > { %v9859_v56 = vpack.c.bf16 %v5655_v17, %v5654_v7  ;;  %v5994_v17 = vld [vmem:[#allocation9 + $0x3e0] sm:$0xff] }
 0x55f   : > { %9021 = vmatmul.mubr.f32.gmra.mrb[34].mxu1 %v11864_v16  ;;  %v12024_v16 = vld [vmem:[#allocation2 + $0x34] sm:$0xff] }
 0x560   : > { %9055 = vmatprep.mubr.f32.mxu1 %v5277_v35  ;;  %v5988_v35 = vld [vmem:[#allocation9 + $0x3b0] sm:$0xff] }
 0x563   : > { %9056 = vmatmul.mubr.f32.vlgmr.msra.gmra.mrb[0].mxu1 %v5278_v47 }
 0x564   : > { %9058 = vmatprep.mubr.f32.mxu1 %v12018_v57  ;;  %9850 = vmatpush3.bf16.msra.mxu1 %v9847_v31  ;;  %v12093_v31 = vld [vmem:[#allocation2 + $0xec] sm:$0xff] }
 0x565   : > { %9852 = vmatprep.subr.bf16.mxu1 %v9851_v54 }
 0x567   : > { %9059 = vmatmul.mubr.f32.gmra.mrb[2].mxu1 %v12021_v5 }
 0x568   : > { %9061 = vmatprep.mubr.f32.mxu1 %v12024_v16  ;;  %9854 = vmatpush3.bf16.msra.mxu1 %v9851_v54  ;;  %v5989_v54 = vld [vmem:[#allocation9 + $0x3b8] sm:$0xff] }
 0x569   : > { %9856 = vmatprep.subr.bf16.mxu1 %v9855_v53  ;;  %v9891_v47 = vpack.c.bf16 %v5989_v54, %v5988_v35  ;;  %v5968_v35 = vld [vmem:[#allocation2 + $0xdd] sm:$0xff]  ;;  %v5969_v54 = vld [vmem:[#allocation2 + $0xe5] sm:$0xff] }
 0x56b   : > { %9062 = vmatmul.mubr.f32.gmra.mrb[4].mxu1 %v12027_v58 }
 0x56c   : > { %9064 = vmatprep.mubr.f32.mxu1 %v12030_v2  ;;  %9858 = vmatpush3.bf16.msra.mxu1 %v9855_v53  ;;  %v5992_v53 = vld [vmem:[#allocation9 + $0x3d0] sm:$0xff] }
 0x56d   : > { %9860 = vmatprep.subr.bf16.mxu1 %v9859_v56 }
 0x56f   : > { %9065 = vmatmul.mubr.f32.gmra.mrb[6].mxu1 %v12033_v3 }
 0x570   : > { %9067 = vmatprep.mubr.f32.mxu1 %v12036_v6  ;;  %9862 = vmatpush3.bf16.msra.mxu1 %v9859_v56 }
 0x571   : > { %9864 = vmatprep.subr.bf16.mxu1 %v9863_v59 }
 0x573   : > { %9068 = vmatmul.mubr.f32.gmra.mrb[8].mxu1 %v12039_v9 }
 0x574   : > { %9070 = vmatprep.mubr.f32.mxu1 %v12042_v14  ;;  %9866 = vmatpush3.bf16.msra.mxu1 %v9863_v59  ;;  %v6317_v59 = vld [vmem:[#allocation9 + $0x408] sm:$0xff] }
 0x575   : > { %9868 = vmatprep.subr.bf16.mxu1 %v9867_v8 }
 0x577   : > { %9071 = vmatmul.mubr.f32.gmra.mrb[10].mxu1 %v12045_v15 }
 0x578   : > { %9073 = vmatprep.mubr.f32.mxu1 %v12048_v19  ;;  %9870 = vmatpush3.bf16.msra.mxu1 %v9867_v8  ;;  %v6319_v8 = vld [vmem:[#allocation9 + $0x418] sm:$0xff] }
 0x579   : > { %9872 = vmatprep.subr.bf16.mxu1 %v9871_v62 }
 0x57b   : > { %9074 = vmatmul.mubr.f32.gmra.mrb[12].mxu1 %v12051_v21 }
 0x57c   : > { %9076 = vmatprep.mubr.f32.mxu1 %v12054_v25  ;;  %9874 = vmatpush3.bf16.msra.mxu1 %v9871_v62  ;;  %v6321_v62 = vld [vmem:[#allocation9 + $0x428] sm:$0xff] }
 0x57d   : > { %9876 = vmatprep.subr.bf16.mxu1 %v9875_v20 }
 0x57f   : > { %9077 = vmatmul.mubr.f32.gmra.mrb[14].mxu1 %v12057_v26 }
 0x580   : > { %9079 = vmatprep.mubr.f32.mxu1 %v12060_v28  ;;  %9878 = vmatpush3.bf16.msra.mxu1 %v9875_v20  ;;  %v6323_v20 = vld [vmem:[#allocation9 + $0x438] sm:$0xff] }
 0x581   : > { %9880 = vmatprep.subr.bf16.mxu1 %v9879_v10 }
 0x583   : > { %9080 = vmatmul.mubr.f32.gmra.mrb[16].mxu1 %v12063_v29 }
 0x584   : > { %9082 = vmatprep.mubr.f32.mxu1 %v12066_v13 }
 0x587   : > { %9083 = vmatmul.mubr.f32.gmra.mrb[18].mxu1 %v12069_v30 }
 0x588   : > { %9085 = vmatprep.mubr.f32.mxu1 %v12072_v32 }
 0x58b   : > { %9086 = vmatmul.mubr.f32.gmra.mrb[20].mxu1 %v12075_v34 }
 0x58c   : > { %9088 = vmatprep.mubr.f32.mxu1 %v12078_v36 }
 0x58f   : > { %9089 = vmatmul.mubr.f32.gmra.mrb[22].mxu1 %v12081_v50 }
 0x590   : > { %9091 = vmatprep.mubr.f32.mxu1 %v12084_v37 }
 0x593   : > { %9092 = vmatmul.mubr.f32.gmra.mrb[24].mxu1 %v12087_v38 }
 0x594   : > { %9094 = vmatprep.mubr.f32.mxu1 %v12090_v39 }
 0x597   : > { %9095 = vmatmul.mubr.f32.gmra.mrb[26].mxu1 %v12093_v31 }
 0x598   : > { %9097 = vmatprep.mubr.f32.mxu1 %v12096_v41 }
 0x59b   : > { %9098 = vmatmul.mubr.f32.gmra.mrb[28].mxu1 %v12099_v33 }
 0x59c   : > { %9100 = vmatprep.mubr.f32.mxu1 %v12102_v18 }
 0x59f   : > { %9101 = vmatmul.mubr.f32.gmra.mrb[30].mxu1 %v12105_v45 }
 0x5a0   : > { %9103 = vmatprep.mubr.f32.mxu1 %v12108_v23 }
 0x5a3   : > { %9104 = vmatmul.mubr.f32.gmra.mrb[32].mxu1 %v12111_v27 }
 0x5a4   : > { %9106 = vmatprep.mubr.f32.mxu1 %v12114_v42 }
 0x5a7   : > { %9107 = vmatmul.mubr.f32.gmra.mrb[34].mxu1 %v12117_v40 }
 0x5a8   : > { %9141 = vmatprep.mubr.f32.mxu1 %v12018_v57  ;;  %v9895_v57 = vpack.c.bf16 %v5991_v43, %v5990_v55  ;;  %v5971_v55 = vld [vmem:[#allocation2 + $0xf5] sm:$0xff]  ;;  %v5972_v43 = vld [vmem:[#allocation2 + $0xfd] sm:$0xff] }
 0x5ab   : > { %9142 = vmatmul.mubr.f32.vlgmr.msra.gmra.mrb[0].mxu1 %v12021_v5  ;;  %v5993_v5 = vld [vmem:[#allocation9 + $0x3d8] sm:$0xff] }
 0x5ac   : > { %9144 = vmatprep.mubr.f32.mxu1 %v12024_v16  ;;  %9882 = vmatpush3.bf16.msra.mxu1 %v9879_v10  ;;  %v9899_v7 = vpack.c.bf16 %v5993_v5, %v5992_v53  ;;  %v5995_v16 = vld [vmem:[#allocation9 + $0x3e8] sm:$0xff]  ;;  %v5974_v53 = vld [vmem:[#allocation2 + $0x10d] sm:$0xff]  ;;  %v5975_v5 = vld [vmem:[#allocation2 + $0x115] sm:$0xff] }
 0x5ad   : > { %9884 = vmatprep.subr.bf16.mxu1 %v9883_v48  ;;  %v9903_v56 = vpack.c.bf16 %v5995_v16, %v5994_v17  ;;  %v6325_v10 = vld [vmem:[#allocation9 + $0x448] sm:$0xff]  ;;  %v5979_v16 = vld [vmem:[#allocation2 + $0x135] sm:$0xff] }
 0x5ae   : > { %v5977_v17 = vld [vmem:[#allocation2 + $0x125] sm:$0xff] }
 0x5af   : > { %9145 = vmatmul.mubr.f32.gmra.mrb[2].mxu1 %v12027_v58  ;;  %v5996_v58 = vld [vmem:[#allocation9 + $0x3f0] sm:$0xff] }
 0x5b0   : > { %9147 = vmatprep.mubr.f32.mxu1 %v12030_v2  ;;  %9886 = vmatpush3.bf16.msra.mxu1 %v9883_v48  ;;  %v9907_v1 = vpack.c.bf16 %v5997_v63, %v5996_v58  ;;  %v6316_v2 = vld [vmem:[#allocation9 + $0x400] sm:$0xff]  ;;  %v6279_v63 = vld [vmem:[#allocation2 + $0x26] sm:$0xff] }
 0x5b1   : > { %9888 = vmatprep.subr.bf16.mxu1 %v9887_v52  ;;  %v5964_v48 = vld [vmem:[#allocation2 + $0xbd] sm:$0xff] }
 0x5b2   : > { %v5980_v58 = vld [vmem:[#allocation2 + $0x13d] sm:$0xff] }
 0x5b3   : > { %9148 = vmatmul.mubr.f32.gmra.mrb[4].mxu1 %v12033_v3  ;;  %v9911_v3 = vpack.c.bf16 %v6317_v59, %v6316_v2  ;;  %v6281_v2 = vld [vmem:[#allocation2 + $0x36] sm:$0xff]  ;;  %v6282_v59 = vld [vmem:[#allocation2 + $0x3e] sm:$0xff] }
 0x5b4   : > { %9150 = vmatprep.mubr.f32.mxu1 %v12036_v6  ;;  %9890 = vmatpush3.bf16.msra.mxu1 %v9887_v52  ;;  %v6318_v6 = vld [vmem:[#allocation9 + $0x410] sm:$0xff]  ;;  %v5967_v52 = vld [vmem:[#allocation2 + $0xd5] sm:$0xff] }
 0x5b5   : > { %9892 = vmatprep.subr.bf16.mxu1 %v9891_v47  ;;  %v9915_v11 = vpack.c.bf16 %v6319_v8, %v6318_v6  ;;  %v6286_v6 = vld [vmem:[#allocation2 + $0x5e] sm:$0xff]  ;;  %v6287_v8 = vld [vmem:[#allocation2 + $0x66] sm:$0xff] }
 0x5b7   : > { %9151 = vmatmul.mubr.f32.gmra.mrb[6].mxu1 %v12039_v9  ;;  %v5945_v9 = vld [vmem:[#allocation2 + $0x25] sm:$0xff] }
 0x5b8   : > { %9153 = vmatprep.mubr.f32.mxu1 %v12042_v14  ;;  %9894 = vmatpush3.bf16.msra.mxu1 %v9891_v47  ;;  %v6320_v14 = vld [vmem:[#allocation9 + $0x420] sm:$0xff]  ;;  %v5970_v47 = vld [vmem:[#allocation2 + $0xed] sm:$0xff] }
 0x5b9   : > { %9896 = vmatprep.subr.bf16.mxu1 %v9895_v57  ;;  %v9919_v0 = vpack.c.bf16 %v6321_v62, %v6320_v14  ;;  %v6291_v14 = vld [vmem:[#allocation2 + $0x86] sm:$0xff]  ;;  %v6292_v62 = vld [vmem:[#allocation2 + $0x8e] sm:$0xff] }
 0x5bb   : > { %9154 = vmatmul.mubr.f32.gmra.mrb[8].mxu1 %v12045_v15  ;;  %v5947_v15 = vld [vmem:[#allocation2 + $0x35] sm:$0xff] }
 0x5bc   : > { %9156 = vmatprep.mubr.f32.mxu1 %v12048_v19  ;;  %9898 = vmatpush3.bf16.msra.mxu1 %v9895_v57  ;;  %v6322_v19 = vld [vmem:[#allocation9 + $0x430] sm:$0xff] }
 0x5bd   : > { %9900 = vmatprep.subr.bf16.mxu1 %v9899_v7  ;;  %v9923_v22 = vpack.c.bf16 %v6323_v20, %v6322_v19  ;;  %v5973_v57 = vld [vmem:[#allocation2 + $0x105] sm:$0xff]  ;;  %v6296_v19 = vld [vmem:[#allocation2 + $0xae] sm:$0xff]  ;;  %v6297_v20 = vld [vmem:[#allocation2 + $0xb6] sm:$0xff] }
 0x5bf   : > { %9157 = vmatmul.mubr.f32.gmra.mrb[10].mxu1 %v12051_v21  ;;  %v5949_v21 = vld [vmem:[#allocation2 + $0x45] sm:$0xff] }
 0x5c0   : > { %9159 = vmatprep.mubr.f32.mxu1 %v12054_v25  ;;  %9902 = vmatpush3.bf16.msra.mxu1 %v9899_v7  ;;  %v6324_v25 = vld [vmem:[#allocation9 + $0x440] sm:$0xff] }
 0x5c1   : > { %9904 = vmatprep.subr.bf16.mxu1 %v9903_v56  ;;  %v5976_v7 = vld [vmem:[#allocation2 + $0x11d] sm:$0xff] }
 0x5c3   : > { %9160 = vmatmul.mubr.f32.gmra.mrb[12].mxu1 %v12057_v26  ;;  %v5951_v26 = vld [vmem:[#allocation2 + $0x55] sm:$0xff] }
 0x5c4   : > { %9162 = vmatprep.mubr.f32.mxu1 %v12060_v28  ;;  %9906 = vmatpush3.bf16.msra.mxu1 %v9903_v56  ;;  %v9927_v28 = vpack.c.bf16 %v6325_v10, %v6324_v25  ;;  %v5978_v56 = vld [vmem:[#allocation2 + $0x12d] sm:$0xff]  ;;  %v6301_v25 = vld [vmem:[#allocation2 + $0xd6] sm:$0xff]  ;;  %v6302_v10 = vld [vmem:[#allocation2 + $0xde] sm:$0xff] }
 0x5c5   : > { %9908 = vmatprep.subr.bf16.mxu1 %v9907_v1 }
 0x5c7   : > { %9163 = vmatmul.mubr.f32.gmra.mrb[14].mxu1 %v12063_v29  ;;  %v5952_v29 = vld [vmem:[#allocation2 + $0x5d] sm:$0xff] }
 0x5c8   : > { %9165 = vmatprep.mubr.f32.mxu1 %v12066_v13  ;;  %9910 = vmatpush3.bf16.msra.mxu1 %v9907_v1  ;;  %v6326_v13 = vld [vmem:[#allocation9 + $0x450] sm:$0xff] }
 0x5c9   : > { %9912 = vmatprep.subr.bf16.mxu1 %v9911_v3  ;;  %v6280_v1 = vld [vmem:[#allocation2 + $0x2e] sm:$0xff] }
 0x5cb   : > { %9166 = vmatmul.mubr.f32.gmra.mrb[16].mxu1 %v12069_v30  ;;  %v6327_v30 = vld [vmem:[#allocation9 + $0x458] sm:$0xff] }
 0x5cc   : > { %9168 = vmatprep.mubr.f32.mxu1 %v12072_v32  ;;  %v5953_v32 = vld [vmem:[#allocation2 + $0x65] sm:$0xff] }
 0x5cf   : > { %9169 = vmatmul.mubr.f32.gmra.mrb[18].mxu1 %v12075_v34  ;;  %v9931_v34 = vpack.c.bf16 %v6327_v30, %v6326_v13  ;;  %v6306_v13 = vld [vmem:[#allocation2 + $0xfe] sm:$0xff]  ;;  %v6307_v30 = vld [vmem:[#allocation2 + $0x106] sm:$0xff] }
 0x5d0   : > { %9171 = vmatprep.mubr.f32.mxu1 %v12078_v36  ;;  %v5954_v36 = vld [vmem:[#allocation2 + $0x6d] sm:$0xff] }
 0x5d3   : > { %9172 = vmatmul.mubr.f32.gmra.mrb[20].mxu1 %v12081_v50  ;;  %v6328_v50 = vld [vmem:[#allocation9 + $0x460] sm:$0xff] }
 0x5d4   : > { %9174 = vmatprep.mubr.f32.mxu1 %v12084_v37  ;;  %v6329_v37 = vld [vmem:[#allocation9 + $0x468] sm:$0xff] }
 0x5d7   : > { %9175 = vmatmul.mubr.f32.gmra.mrb[22].mxu1 %v12087_v38  ;;  %v5955_v38 = vld [vmem:[#allocation2 + $0x75] sm:$0xff] }
 0x5d8   : > { %9177 = vmatprep.mubr.f32.mxu1 %v12090_v39  ;;  %v9935_v39 = vpack.c.bf16 %v6329_v37, %v6328_v50  ;;  %v6311_v50 = vld [vmem:[#allocation2 + $0x126] sm:$0xff]  ;;  %v6313_v37 = vld [vmem:[#allocation2 + $0x136] sm:$0xff] }
 0x5db   : > { %9178 = vmatmul.mubr.f32.gmra.mrb[24].mxu1 %v12093_v31  ;;  %v5956_v31 = vld [vmem:[#allocation2 + $0x7d] sm:$0xff] }
 0x5dc   : > { %9180 = vmatprep.mubr.f32.mxu1 %v12096_v41  ;;  %v6330_v41 = vld [vmem:[#allocation9 + $0x470] sm:$0xff] }
 0x5df   : > { %9181 = vmatmul.mubr.f32.gmra.mrb[26].mxu1 %v12099_v33  ;;  %v6331_v33 = vld [vmem:[#allocation9 + $0x478] sm:$0xff] }
 0x5e0   : > { %9183 = vmatprep.mubr.f32.mxu1 %v12102_v18  ;;  %v5957_v18 = vld [vmem:[#allocation2 + $0x85] sm:$0xff] }
 0x5e3   : > { %9184 = vmatmul.mubr.f32.gmra.mrb[28].mxu1 %v12105_v45  ;;  %v9939_v45 = vpack.c.bf16 %v6331_v33, %v6330_v41 }
 0x5e4   : > { %9186 = vmatprep.mubr.f32.mxu1 %v12108_v23  ;;  %v5958_v23 = vld [vmem:[#allocation2 + $0x8d] sm:$0xff] }
 0x5e7   : > { %9187 = vmatmul.mubr.f32.gmra.mrb[30].mxu1 %v12111_v27  ;;  %v5959_v27 = vld [vmem:[#allocation2 + $0x95] sm:$0xff] }
 0x5e8   : > { %9189 = vmatprep.mubr.f32.mxu1 %v12114_v42  ;;  %v5960_v42 = vld [vmem:[#allocation2 + $0x9d] sm:$0xff] }
 0x5eb   : > { %9190 = vmatmul.mubr.f32.gmra.mrb[32].mxu1 %v12117_v40  ;;  %v5961_v40 = vld [vmem:[#allocation2 + $0xa5] sm:$0xff] }
 0x5ec   : > { %9192 = vmatprep.mubr.f32.mxu1 %v5645_v4  ;;  %v6284_v4 = vld [vmem:[#allocation2 + $0x4e] sm:$0xff] }
 0x5ef   : > { %9193 = vmatmul.mubr.f32.gmra.mrb[34].mxu1 %v5646_v60  ;;  %v6285_v60 = vld [vmem:[#allocation2 + $0x56] sm:$0xff] }
 0x5f0   : > { %9227 = vmatprep.mubr.f32.mxu1 %v5945_v9  ;;  %v6288_v9 = vld [vmem:[#allocation2 + $0x6e] sm:$0xff] }
 0x5f3   : > { %9228 = vmatmul.mubr.f32.vlgmr.msra.gmra.mrb[0].mxu1 %v5946_v12  ;;  %v6290_v12 = vld [vmem:[#allocation2 + $0x7e] sm:$0xff] }
 0x5f4   : > { %9230 = vmatprep.mubr.f32.mxu1 %v5947_v15  ;;  %9914 = vmatpush3.bf16.msra.mxu1 %v9911_v3  ;;  %v6283_v3 = vld [vmem:[#allocation2 + $0x46] sm:$0xff]  ;;  %v6293_v15 = vld [vmem:[#allocation2 + $0x96] sm:$0xff] }
 0x5f5   : > { %9916 = vmatprep.subr.bf16.mxu1 %v9915_v11 }
 0x5f7   : > { %9231 = vmatmul.mubr.f32.gmra.mrb[2].mxu1 %v5948_v61  ;;  %v6295_v61 = vld [vmem:[#allocation2 + $0xa6] sm:$0xff] }
 0x5f8   : > { %9233 = vmatprep.mubr.f32.mxu1 %v5949_v21  ;;  %9918 = vmatpush3.bf16.msra.mxu1 %v9915_v11  ;;  %v6289_v11 = vld [vmem:[#allocation2 + $0x76] sm:$0xff]  ;;  %v6298_v21 = vld [vmem:[#allocation2 + $0xbe] sm:$0xff] }
 0x5f9   : > { %9920 = vmatprep.subr.bf16.mxu1 %v9919_v0 }
 0x5fb   : > { %9234 = vmatmul.mubr.f32.gmra.mrb[4].mxu1 %v5950_v24  ;;  %v6300_v24 = vld [vmem:[#allocation2 + $0xce] sm:$0xff] }
 0x5fc   : > { %9236 = vmatprep.mubr.f32.mxu1 %v5951_v26  ;;  %9922 = vmatpush3.bf16.msra.mxu1 %v9919_v0  ;;  %v6294_v0 = vld [vmem:[#allocation2 + $0x9e] sm:$0xff]  ;;  %v6303_v26 = vld [vmem:[#allocation2 + $0xe6] sm:$0xff] }
 0x5fd   : > { %9924 = vmatprep.subr.bf16.mxu1 %v9923_v22 }
 0x5ff   : > { %9237 = vmatmul.mubr.f32.gmra.mrb[6].mxu1 %v5952_v29  ;;  %v6305_v29 = vld [vmem:[#allocation2 + $0xf6] sm:$0xff] }
 0x600   : > { %9239 = vmatprep.mubr.f32.mxu1 %v5953_v32  ;;  %9926 = vmatpush3.bf16.msra.mxu1 %v9923_v22  ;;  %v6299_v22 = vld [vmem:[#allocation2 + $0xc6] sm:$0xff]  ;;  %v6308_v32 = vld [vmem:[#allocation2 + $0x10e] sm:$0xff] }
 0x601   : > { %9928 = vmatprep.subr.bf16.mxu1 %v9927_v28 }
 0x603   : > { %9240 = vmatmul.mubr.f32.gmra.mrb[8].mxu1 %v5954_v36  ;;  %v6310_v36 = vld [vmem:[#allocation2 + $0x11e] sm:$0xff] }
 0x604   : > { %9242 = vmatprep.mubr.f32.mxu1 %v5955_v38  ;;  %9930 = vmatpush3.bf16.msra.mxu1 %v9927_v28  ;;  %v6304_v28 = vld [vmem:[#allocation2 + $0xee] sm:$0xff] }
 0x605   : > { %9932 = vmatprep.subr.bf16.mxu1 %v9931_v34  ;;  %v6312_v38 = vld [vmem:[#allocation2 + $0x12e] sm:$0xff] }
 0x607   : > { %9243 = vmatmul.mubr.f32.gmra.mrb[10].mxu1 %v5956_v31  ;;  %v12155_v31 = vld [vmem:[#allocation11] ss:$0 sm:$0xff] }
 0x608   : > { %9245 = vmatprep.mubr.f32.mxu1 %v5957_v18  ;;  %9934 = vmatpush3.bf16.msra.mxu1 %v9931_v34  ;;  %v6309_v34 = vld [vmem:[#allocation2 + $0x116] sm:$0xff] }
 0x609   : > { %9936 = vmatprep.subr.bf16.mxu1 %v9935_v39 }
 0x60b   : > { %9246 = vmatmul.mubr.f32.gmra.mrb[12].mxu1 %v5958_v23 }
 0x60c   : > { %9248 = vmatprep.mubr.f32.mxu1 %v5959_v27  ;;  %9938 = vmatpush3.bf16.msra.mxu1 %v9935_v39  ;;  %v6314_v39 = vld [vmem:[#allocation2 + $0x13e] sm:$0xff] }
 0x60d   : > { %9940 = vmatprep.subr.bf16.mxu1 %v9939_v45 }
 0x60f   : > { %9249 = vmatmul.mubr.f32.gmra.mrb[14].mxu1 %v5960_v42 }
 0x610   : > { %9251 = vmatprep.mubr.f32.mxu1 %v5961_v40  ;;  %9942 = vmatpush3.bf16.msra.mxu1 %v9939_v45 }
 0x613   : > { %9252 = vmatmul.mubr.f32.gmra.mrb[16].mxu1 %v5962_v46 }
 0x614   : > { %9254 = vmatprep.mubr.f32.mxu1 %v5963_v49 }
 0x617   : > { %9255 = vmatmul.mubr.f32.gmra.mrb[18].mxu1 %v5964_v48 }
 0x618   : > { %9257 = vmatprep.mubr.f32.mxu1 %v5965_v51 }
 0x61b   : > { %9258 = vmatmul.mubr.f32.gmra.mrb[20].mxu1 %v5966_v44 }
 0x61c   : > { %9260 = vmatprep.mubr.f32.mxu1 %v5967_v52 }
 0x61f   : > { %9261 = vmatmul.mubr.f32.gmra.mrb[22].mxu1 %v5968_v35 }
 0x620   : > { %9263 = vmatprep.mubr.f32.mxu1 %v5969_v54 }
 0x623   : > { %9264 = vmatmul.mubr.f32.gmra.mrb[24].mxu1 %v5970_v47 }
 0x624   : > { %9266 = vmatprep.mubr.f32.mxu1 %v5971_v55 }
 0x627   : > { %9267 = vmatmul.mubr.f32.gmra.mrb[26].mxu1 %v5972_v43 }
 0x628   : > { %9269 = vmatprep.mubr.f32.mxu1 %v5973_v57 }
 0x62b   : > { %9270 = vmatmul.mubr.f32.gmra.mrb[28].mxu1 %v5974_v53 }
 0x62c   : > { %9272 = vmatprep.mubr.f32.mxu1 %v5975_v5 }
 0x62f   : > { %9273 = vmatmul.mubr.f32.gmra.mrb[30].mxu1 %v5976_v7 }
 0x630   : > { %9275 = vmatprep.mubr.f32.mxu1 %v5977_v17 }
 0x633   : > { %9276 = vmatmul.mubr.f32.gmra.mrb[32].mxu1 %v5978_v56 }
 0x634   : > { %9278 = vmatprep.mubr.f32.mxu1 %v5979_v16 }
 0x637   : > { %9279 = vmatmul.mubr.f32.gmra.mrb[34].mxu1 %v5980_v58 }
 0x638   : > { %9313 = vmatprep.mubr.f32.mxu1 %v6279_v63 }
 0x63b   : > { %9314 = vmatmul.mubr.f32.vlgmr.msra.gmra.mrb[0].mxu1 %v6280_v1 }
 0x63c   : > { %9316 = vmatprep.mubr.f32.mxu1 %v6281_v2 }
 0x63f   : > { %9317 = vmatmul.mubr.f32.gmra.mrb[2].mxu1 %v6282_v59 }
 0x640   : > { %9319 = vmatprep.mubr.f32.mxu1 %v6283_v3 }
 0x643   : > { %9320 = vmatmul.mubr.f32.gmra.mrb[4].mxu1 %v6284_v4 }
 0x644   : > { %9322 = vmatprep.mubr.f32.mxu1 %v6285_v60 }
 0x647   : > { %9323 = vmatmul.mubr.f32.gmra.mrb[6].mxu1 %v6286_v6 }
 0x648   : > { %9325 = vmatprep.mubr.f32.mxu1 %v6287_v8 }
 0x64b   : > { %9326 = vmatmul.mubr.f32.gmra.mrb[8].mxu1 %v6288_v9 }
 0x64c   : > { %9328 = vmatprep.mubr.f32.mxu1 %v6289_v11 }
 0x64f   : > { %9329 = vmatmul.mubr.f32.gmra.mrb[10].mxu1 %v6290_v12 }
 0x650   : > { %9331 = vmatprep.mubr.f32.mxu1 %v6291_v14 }
 0x653   : > { %9332 = vmatmul.mubr.f32.gmra.mrb[12].mxu1 %v6292_v62 }
 0x654   : > { %9334 = vmatprep.mubr.f32.mxu1 %v6293_v15 }
 0x657   : > { %9335 = vmatmul.mubr.f32.gmra.mrb[14].mxu1 %v6294_v0 }
 0x658   : > { %9337 = vmatprep.mubr.f32.mxu1 %v6295_v61 }
 0x65b   : > { %9338 = vmatmul.mubr.f32.gmra.mrb[16].mxu1 %v6296_v19 }
 0x65c   : > { %9340 = vmatprep.mubr.f32.mxu1 %v6297_v20 }
 0x65f   : > { %9341 = vmatmul.mubr.f32.gmra.mrb[18].mxu1 %v6298_v21 }
 0x660   : > { %9343 = vmatprep.mubr.f32.mxu1 %v6299_v22 }
 0x663   : > { %9344 = vmatmul.mubr.f32.gmra.mrb[20].mxu1 %v6300_v24 }
 0x664   : > { %9346 = vmatprep.mubr.f32.mxu1 %v6301_v25 }
 0x667   : > { %9347 = vmatmul.mubr.f32.gmra.mrb[22].mxu1 %v6302_v10 }
 0x668   : > { %9349 = vmatprep.mubr.f32.mxu1 %v6303_v26 }
 0x66b   : > { %9350 = vmatmul.mubr.f32.gmra.mrb[24].mxu1 %v6304_v28 }
 0x66c   : > { %9352 = vmatprep.mubr.f32.mxu1 %v6305_v29 }
 0x66f   : > { %9353 = vmatmul.mubr.f32.gmra.mrb[26].mxu1 %v6306_v13 }
 0x670   : > { %9355 = vmatprep.mubr.f32.mxu1 %v6307_v30 }
 0x673   : > { %9356 = vmatmul.mubr.f32.gmra.mrb[28].mxu1 %v6308_v32 }
 0x674   : > { %9358 = vmatprep.mubr.f32.mxu1 %v6309_v34 }
 0x677   : > { %9359 = vmatmul.mubr.f32.gmra.mrb[30].mxu1 %v6310_v36 }
 0x678   : > { %9361 = vmatprep.mubr.f32.mxu1 %v6311_v50 }
 0x67b   : > { %9362 = vmatmul.mubr.f32.gmra.mrb[32].mxu1 %v6312_v38 }
 0x67c   : > { %9364 = vmatprep.mubr.f32.mxu1 %v6313_v37 }
 0x67f   : > { %9365 = vmatmul.mubr.f32.gmra.mrb[34].mxu1 %v6314_v39 }
 0x70e   : > { %v9315_v41 = vpop.f32.mrb[0].mxu1 }
 0x70f   : > { %v6621_v33 = vadd.f32 %v9315_v41, %v12155_v31  ;;  %v6398_v18 = vpop.f32.mrb[1].mxu1 }
 0x710   : > { %v6620_v45 = vadd.f32 %v12155_v31, %v6398_v18 }
 0x711   : > { %v6657_v23 = vmax.f32 %v6621_v33, 0.0 }
 0x712   : > { %v6656_v27 = vmax.f32 %v6620_v45, 0.0  ;;  %v9318_v42 = vpop.f32.mrb[2].mxu1 }
 0x713   : > { %6693 = vst [vmem:[%s12159_s25 + $0x8] sm:$0xff] %v6657_v23  ;;  %v6623_v40 = vadd.f32 %v9318_v42, %v12155_v31  ;;  %v6408_v46 = vpop.f32.mrb[3].mxu1 }
 0x714   : > { %6692 = vst [vmem:[%s12159_s25] sm:$0xff] %v6656_v27  ;;  %v6622_v49 = vadd.f32 %v12155_v31, %v6408_v46 }
 0x715   : > { %v6659_v48 = vmax.f32 %v6623_v40, 0.0 }
 0x716   : > { %v6658_v51 = vmax.f32 %v6622_v49, 0.0  ;;  %v9321_v44 = vpop.f32.mrb[4].mxu1 }
 0x717   : > { %6695 = vst [vmem:[%s12159_s25 + $0x18] sm:$0xff] %v6659_v48  ;;  %v6625_v52 = vadd.f32 %v9321_v44, %v12155_v31  ;;  %v6418_v35 = vpop.f32.mrb[5].mxu1 }
 0x718   : > { %6694 = vst [vmem:[%s12159_s25 + $0x10] sm:$0xff] %v6658_v51  ;;  %v6624_v54 = vadd.f32 %v12155_v31, %v6418_v35 }
 0x719   : > { %v6661_v47 = vmax.f32 %v6625_v52, 0.0 }
 0x71a   : > { %v6660_v55 = vmax.f32 %v6624_v54, 0.0  ;;  %v9324_v43 = vpop.f32.mrb[6].mxu1 }
 0x71b   : > { %6697 = vst [vmem:[%s12159_s25 + $0x28] sm:$0xff] %v6661_v47  ;;  %v6627_v57 = vadd.f32 %v9324_v43, %v12155_v31  ;;  %v6428_v53 = vpop.f32.mrb[7].mxu1 }
 0x71c   : > { %6696 = vst [vmem:[%s12159_s25 + $0x20] sm:$0xff] %v6660_v55  ;;  %v6626_v5 = vadd.f32 %v12155_v31, %v6428_v53 }
 0x71d   : > { %v6663_v7 = vmax.f32 %v6627_v57, 0.0 }
 0x71e   : > { %v6662_v17 = vmax.f32 %v6626_v5, 0.0  ;;  %v9327_v16 = vpop.f32.mrb[8].mxu1 }
 0x71f   : > { %6699 = vst [vmem:[%s12159_s25 + $0x38] sm:$0xff] %v6663_v7  ;;  %v6629_v56 = vadd.f32 %v9327_v16, %v12155_v31  ;;  %v6438_v58 = vpop.f32.mrb[9].mxu1 }
 0x720   : > { %6698 = vst [vmem:[%s12159_s25 + $0x30] sm:$0xff] %v6662_v17  ;;  %v6628_v63 = vadd.f32 %v12155_v31, %v6438_v58 }
 0x721   : > { %v6665_v1 = vmax.f32 %v6629_v56, 0.0 }
 0x722   : > { %v6664_v2 = vmax.f32 %v6628_v63, 0.0  ;;  %v9330_v59 = vpop.f32.mrb[10].mxu1 }
 0x723   : > { %6701 = vst [vmem:[%s12159_s25 + $0x48] sm:$0xff] %v6665_v1  ;;  %v6631_v3 = vadd.f32 %v9330_v59, %v12155_v31  ;;  %v6448_v4 = vpop.f32.mrb[11].mxu1 }
 0x724   : > { %6700 = vst [vmem:[%s12159_s25 + $0x40] sm:$0xff] %v6664_v2  ;;  %v6630_v60 = vadd.f32 %v12155_v31, %v6448_v4 }
 0x725   : > { %v6667_v6 = vmax.f32 %v6631_v3, 0.0 }
 0x726   : > { %v6666_v8 = vmax.f32 %v6630_v60, 0.0  ;;  %v9333_v9 = vpop.f32.mrb[12].mxu1 }
 0x727   : > { %6703 = vst [vmem:[%s12159_s25 + $0x58] sm:$0xff] %v6667_v6  ;;  %v6633_v11 = vadd.f32 %v9333_v9, %v12155_v31  ;;  %v6458_v12 = vpop.f32.mrb[13].mxu1 }
 0x728   : > { %6702 = vst [vmem:[%s12159_s25 + $0x50] sm:$0xff] %v6666_v8  ;;  %v6632_v14 = vadd.f32 %v12155_v31, %v6458_v12 }
 0x729   : > { %v6669_v62 = vmax.f32 %v6633_v11, 0.0 }
 0x72a   : > { %v6668_v15 = vmax.f32 %v6632_v14, 0.0  ;;  %v9336_v0 = vpop.f32.mrb[14].mxu1 }
 0x72b   : > { %6705 = vst [vmem:[%s12159_s25 + $0x68] sm:$0xff] %v6669_v62  ;;  %v6635_v61 = vadd.f32 %v9336_v0, %v12155_v31  ;;  %v6468_v19 = vpop.f32.mrb[15].mxu1 }
 0x72c   : > { %6704 = vst [vmem:[%s12159_s25 + $0x60] sm:$0xff] %v6668_v15  ;;  %v6634_v20 = vadd.f32 %v12155_v31, %v6468_v19 }
 0x72d   : > { %v6671_v21 = vmax.f32 %v6635_v61, 0.0 }
 0x72e   : > { %v6670_v22 = vmax.f32 %v6634_v20, 0.0  ;;  %v9339_v24 = vpop.f32.mrb[16].mxu1 }
 0x72f   : > { %6707 = vst [vmem:[%s12159_s25 + $0x78] sm:$0xff] %v6671_v21  ;;  %v6637_v25 = vadd.f32 %v9339_v24, %v12155_v31  ;;  %v6478_v10 = vpop.f32.mrb[17].mxu1 }
 0x730   : > { %6706 = vst [vmem:[%s12159_s25 + $0x70] sm:$0xff] %v6670_v22  ;;  %v6636_v26 = vadd.f32 %v12155_v31, %v6478_v10 }
 0x731   : > { %v6673_v28 = vmax.f32 %v6637_v25, 0.0 }
 0x732   : > { %v6672_v29 = vmax.f32 %v6636_v26, 0.0  ;;  %v9342_v13 = vpop.f32.mrb[18].mxu1 }
 0x733   : > { %6709 = vst [vmem:[%s12159_s25 + $0x88] sm:$0xff] %v6673_v28  ;;  %v6639_v30 = vadd.f32 %v9342_v13, %v12155_v31  ;;  %v6488_v32 = vpop.f32.mrb[19].mxu1 }
 0x734   : > { %6708 = vst [vmem:[%s12159_s25 + $0x80] sm:$0xff] %v6672_v29  ;;  %v6638_v34 = vadd.f32 %v12155_v31, %v6488_v32 }
 0x735   : > { %v6675_v36 = vmax.f32 %v6639_v30, 0.0 }
 0x736   : > { %v6674_v50 = vmax.f32 %v6638_v34, 0.0  ;;  %v9345_v37 = vpop.f32.mrb[20].mxu1 }
 0x737   : > { %6711 = vst [vmem:[%s12159_s25 + $0x98] sm:$0xff] %v6675_v36  ;;  %v6641_v38 = vadd.f32 %v9345_v37, %v12155_v31  ;;  %v6498_v39 = vpop.f32.mrb[21].mxu1 }
 0x738   : > { %6710 = vst [vmem:[%s12159_s25 + $0x90] sm:$0xff] %v6674_v50  ;;  %v6640_v41 = vadd.f32 %v12155_v31, %v6498_v39 }
 0x739   : > { %v6677_v33 = vmax.f32 %v6641_v38, 0.0 }
 0x73a   : > { %v6676_v18 = vmax.f32 %v6640_v41, 0.0  ;;  %v9348_v45 = vpop.f32.mrb[22].mxu1 }
 0x73b   : > { %6713 = vst [vmem:[%s12159_s25 + $0xa8] sm:$0xff] %v6677_v33  ;;  %v6643_v23 = vadd.f32 %v9348_v45, %v12155_v31  ;;  %v6508_v27 = vpop.f32.mrb[23].mxu1 }
 0x73c   : > { %6712 = vst [vmem:[%s12159_s25 + $0xa0] sm:$0xff] %v6676_v18  ;;  %v6642_v42 = vadd.f32 %v12155_v31, %v6508_v27 }
 0x73d   : > { %v6679_v40 = vmax.f32 %v6643_v23, 0.0 }
 0x73e   : > { %v6678_v46 = vmax.f32 %v6642_v42, 0.0  ;;  %v9351_v49 = vpop.f32.mrb[24].mxu1 }
 0x73f   : > { %6715 = vst [vmem:[%s12159_s25 + $0xb8] sm:$0xff] %v6679_v40  ;;  %v6645_v48 = vadd.f32 %v9351_v49, %v12155_v31  ;;  %v6518_v51 = vpop.f32.mrb[25].mxu1 }
 0x740   : > { %6714 = vst [vmem:[%s12159_s25 + $0xb0] sm:$0xff] %v6678_v46  ;;  %v6644_v44 = vadd.f32 %v12155_v31, %v6518_v51 }
 0x741   : > { %v6681_v52 = vmax.f32 %v6645_v48, 0.0 }
 0x742   : > { %v6680_v35 = vmax.f32 %v6644_v44, 0.0  ;;  %v9354_v54 = vpop.f32.mrb[26].mxu1 }
 0x743   : > { %6717 = vst [vmem:[%s12159_s25 + $0xc8] sm:$0xff] %v6681_v52  ;;  %v6647_v47 = vadd.f32 %v9354_v54, %v12155_v31  ;;  %v6528_v55 = vpop.f32.mrb[27].mxu1 }
 0x744   : > { %6716 = vst [vmem:[%s12159_s25 + $0xc0] sm:$0xff] %v6680_v35  ;;  %v6646_v43 = vadd.f32 %v12155_v31, %v6528_v55 }
 0x745   : > { %v6683_v57 = vmax.f32 %v6647_v47, 0.0 }
 0x746   : > { %v6682_v53 = vmax.f32 %v6646_v43, 0.0  ;;  %v9357_v5 = vpop.f32.mrb[28].mxu1 }
 0x747   : > { %6719 = vst [vmem:[%s12159_s25 + $0xd8] sm:$0xff] %v6683_v57  ;;  %v6649_v7 = vadd.f32 %v9357_v5, %v12155_v31  ;;  %v6538_v17 = vpop.f32.mrb[29].mxu1 }
 0x748   : > { %6718 = vst [vmem:[%s12159_s25 + $0xd0] sm:$0xff] %v6682_v53  ;;  %v6648_v16 = vadd.f32 %v12155_v31, %v6538_v17 }
 0x749   : > { %v6685_v56 = vmax.f32 %v6649_v7, 0.0 }
 0x74a   : > { %v6684_v58 = vmax.f32 %v6648_v16, 0.0  ;;  %v9360_v63 = vpop.f32.mrb[30].mxu1 }
 0x74b   : > { %6721 = vst [vmem:[%s12159_s25 + $0xe8] sm:$0xff] %v6685_v56  ;;  %v6651_v1 = vadd.f32 %v9360_v63, %v12155_v31  ;;  %v6548_v2 = vpop.f32.mrb[31].mxu1 }
 0x74c   : > { %6720 = vst [vmem:[%s12159_s25 + $0xe0] sm:$0xff] %v6684_v58  ;;  %v6650_v59 = vadd.f32 %v12155_v31, %v6548_v2 }
 0x74d   : > { %v6687_v3 = vmax.f32 %v6651_v1, 0.0 }
 0x74e   : > { %v6686_v4 = vmax.f32 %v6650_v59, 0.0  ;;  %v9363_v60 = vpop.f32.mrb[32].mxu1 }
 0x74f   : > { %6723 = vst [vmem:[%s12159_s25 + $0xf8] sm:$0xff] %v6687_v3  ;;  %v6653_v6 = vadd.f32 %v9363_v60, %v12155_v31  ;;  %v6558_v8 = vpop.f32.mrb[33].mxu1 }
 0x750   : > { %6722 = vst [vmem:[%s12159_s25 + $0xf0] sm:$0xff] %v6686_v4  ;;  %v6652_v9 = vadd.f32 %v12155_v31, %v6558_v8 }
 0x751   : > { %v6689_v11 = vmax.f32 %v6653_v6, 0.0 }
 0x752   : > { %v6688_v12 = vmax.f32 %v6652_v9, 0.0  ;;  %v9366_v14 = vpop.f32.mrb[34].mxu1 }
 0x753   : > { %6725 = vst [vmem:[%s12159_s25 + $0x108] sm:$0xff] %v6689_v11  ;;  %v6655_v62 = vadd.f32 %v9366_v14, %v12155_v31  ;;  %v6568_v15 = vpop.f32.mrb[35].mxu1 }
 0x754   : > { %6724 = vst [vmem:[%s12159_s25 + $0x100] sm:$0xff] %v6688_v12  ;;  %v6654_v0 = vadd.f32 %v12155_v31, %v6568_v15 }
 0x755   : > { %v6691_v61 = vmax.f32 %v6655_v62, 0.0 }
 0x756   : > { %v6690_v19 = vmax.f32 %v6654_v0, 0.0 }
 0x757   : > { %6727 = vst [vmem:[%s12159_s25 + $0x118] sm:$0xff] %v6691_v61 }
 0x758   : > { %6726 = vst [vmem:[%s12159_s25 + $0x110] sm:$0xff] %v6690_v19 }
 0x759   : > { %10812 = shalt.err (!%p10809_p8)
}
 0x75a   : > { %s10813_s30 = scalar_lea.hbm %s12234_s11, 4608  ;;  %s10817_s28 = scalar_lea.hbm %s12288_s6, 9216 }
 0x75b   : > { %p10814_p6 = scmp.ne.s32.totalorder %s12234_s11, %s10813_s30  ;;  %p10818_p0 = scmp.lt.u32.totalorder %s12234_s11, %s12288_s6 }
 0x75c   : > { %p10819_p5 = scmp.lt.u32.totalorder %s10817_s28, %s10813_s30  ;;  %p10821_p7 = scmp.lt.u32.totalorder %s10813_s30, %s12234_s11 }
 0x75d   : > { %p10815_p10 = pnand %p10814_p6, %p12311_p4 }
 0x75e   : > { %p10820_p9 = por %p10819_p5, %p10818_p0 }
 0x75f   : > { %p10816_p11 = pneg %p10815_p10 }
 0x760   : > { %p10822_p12 = por %p10821_p7, %p10820_p9 }
 0x762   : > { %p10823_p13 = pnand %p10822_p12, %p10816_p11 }
 0x764   : > { %10826 = shalt.err (!%p10823_p13)
}
 0x765   : > { %s10890_s7 = smov 128   ;;  %s10891_s16 = smov 8  }
 0x766   : > { %10546 = dma.vmem_to_hbm [thread:$0]  (%p12311_p4), %s12236_s18, 4608, %s12234_s11, %s6729_s27, %s10890_s7, %s10890_s7, %s10891_s16  }
 0x767 PF: > { %s6757_s9 = sand.u32 1, %s10865_s21   ;;  %p12312_p1 = scmp.ne.s32.totalorder %s12300_s10, 0 }
 0x768   : > { %p12313_p3 = scmp.ge.s32.totalorder %s10877_s24, 2  ;;  %s6758_s19 = scalar_lea.sflag [#allocation5], %s6757_s9 }
 0x76a   : > { %p10569_p2 = pnand %p12313_p3, %p12312_p1 }
 0x76c   : > { %10860 = dma.done.wait (!%p10569_p2), %s6758_s19, 4608  }
 0x76d   : > { %10862 = vsyncadd (!%p10569_p2), %s6758_s19, 4294962688  ;;  %p22_p8 = scmp.ge.s32.totalorder %s11095_s15, 4   ;;  %s12314_s21 = smov %s10869_s22 }
 0x76e   : > { %s12315_s22 = smov %s10873_s23  ;;  %s12316_s23 = smov %s11107_s17 }
 0x76f   : > { %s12317_s24 = smov %s11095_s15  ;;  %24 = sbr.rel (!%p22_p8) target bundleno = 8 (0x8), region = 125 }
 0x776   :  { %6763 = vsyncpa [#allocation4], 1 }
 0x777   :  { %6765 = vsyncpa [#allocation4 + $0x1], 1 }
 0x778   :  { %6766 = vsyncpa [#allocation7], 1 }
 0x779   :  { %6767 = vsyncpa [#allocation10], 1 }
 0x77a   :  { %6768 = vsyncpa [#allocation13], 1 }
 0x77b   :  { %6769 = vsyncpa [#allocation5], 1 }
 0x77c   :  { %6771 = vsyncpa [#allocation5 + $0x1], 1 }

</bundles_post_ra>
